<compile_context>
chip_gen: v7x
topology: tpu7x:2x2x1
jax: 0.10.0
libtpu: 0.0.40
codegen_flags: <defaults>
</compile_context>

<pallas_src>
import functools

import jax
import jax.numpy as jnp
from jax.experimental import pallas as pl
from jax.experimental.pallas import tpu as pltpu


def _global_attention_kernel(tgt_ref, xproj_ref, ctx_ref, w_wc_ref,
                             out_ref, attn_ref,
                             m_sc, l_sc, acc_sc, mtile_sc,
                             *, src_len, padded_src_len, num_src_tiles):
    k = pl.program_id(1)
    nk = num_src_tiles
    TB, TS, D = ctx_ref.shape

    @pl.when(k == 0)
    def _init():
        m_sc[...] = jnp.full_like(m_sc, -jnp.inf)
        l_sc[...] = jnp.zeros_like(l_sc)
        acc_sc[...] = jnp.zeros_like(acc_sc)
        mtile_sc[...] = jnp.zeros_like(mtile_sc)

    ctx = ctx_ref[...]                                   # [TB, TS, D] f32
    tgt = tgt_ref[...]                                   # [TB, D]     f32

    # scores s[b, t] = sum_d ctx[b, t, d] * tgt[b, d]
    # q=1 batched matvec -> VPU multiply + lane reduce (MXU would be a
    # <=1/256-utilized weight push per single output row per batch element).
    s = jnp.sum(ctx * tgt[:, None, :], axis=-1)          # [TB, TS] f32

    if padded_src_len != src_len:
        # mask padded source columns to -inf (only the last tile has any)
        col = k * TS + jax.lax.broadcasted_iota(jnp.int32, (TB, TS), 1)
        s = jnp.where(col < src_len, s, -jnp.inf)

    # online softmax update (single pass over context)
    m_prev = m_sc[...]                                   # [TB, 1]
    m_new = jnp.maximum(m_prev, jnp.max(s, axis=-1, keepdims=True))
    alpha = jnp.exp(m_prev - m_new)                      # [TB, 1]
    p = jnp.exp(s - m_new)                               # [TB, TS]
    l_sc[...] = alpha * l_sc[...] + jnp.sum(p, axis=-1, keepdims=True)
    # weighted-context partial: VPU multiply + reduce over the source axis
    acc_sc[...] = alpha * acc_sc[...] + jnp.sum(p[:, :, None] * ctx, axis=1)
    m_sc[...] = m_new

    # Write p straight into the resident attn output block (one [TB, TS]
    # store per step) and record this tile's running max for the final rescale.
    col0 = pl.multiple_of(k * TS, TS)
    attn_ref[:, pl.ds(col0, TS)] = p.astype(attn_ref.dtype)
    tile_id = jax.lax.broadcasted_iota(jnp.int32, (TB, nk), 1)
    mtile_sc[...] = jnp.where(tile_id == k, m_new, mtile_sc[...])

    @pl.when(k == nk - 1)
    def _finalize():
        m_final = m_sc[...]                              # [TB, 1]
        inv_l = pl.reciprocal(l_sc[...], approx=False)   # [TB, 1]

        # attn[:, tile j] = p_j * exp(m_j - m_final) / l  (no second full exp)
        scale = jnp.exp(mtile_sc[...] - m_final) * inv_l     # [TB, nk]
        for j in range(nk):                                  # static unroll
            blk = attn_ref[:, j * TS:(j + 1) * TS]
            attn_ref[:, j * TS:(j + 1) * TS] = (
                blk * scale[:, j:j + 1]).astype(attn_ref.dtype)

        # context_output = tanh(weighted @ W_wc + x @ W_x); x-half precomputed.
        weighted = (acc_sc[...] * inv_l).astype(w_wc_ref.dtype)   # [TB, D]
        out = jnp.tanh(
            jnp.dot(weighted, w_wc_ref[...], preferred_element_type=jnp.float32)
            + xproj_ref[...])
        out_ref[...] = out.astype(out_ref.dtype)


def _round_up(x, m):
    return ((x + m - 1) // m) * m


def _select_tiles(b_pad, s_pad, d, itemsize=4, budget_bytes=36 * 1024 * 1024):
    """Pick (TB, TS) against an explicit VMEM budget (safe on v7x's 64 MiB)."""
    ts_cands = [t for t in (2048, 1024, 512, 256, 128) if s_pad % t == 0] or [s_pad]
    tb_cands = [t for t in (128, 64, 32, 16, 8) if b_pad % t == 0] or [b_pad]

    def est_bytes(tb, ts):
        nk = s_pad // ts
        return itemsize * (
            4 * tb * ts * d          # ctx double-buffer + ~2 elementwise temps
            + 2 * tb * s_pad         # resident attn output block (dbl-buffered)
            + 8 * tb * d             # target/xproj/out blocks + acc scratch
            + 2 * d * d              # w_wc (constant index, dbl-buffered)
            + tb * (nk + 2))         # m / l / per-tile-max scratch

    # Prefer >=2 steps on the parallel batch axis (feeds both v7x TensorCores),
    # then the largest batch tile, then the largest source tile, under budget.
    for need_multi in (True, False):
        for tb in tb_cands:
            if need_multi and b_pad // tb < 2:
                continue
            for ts in ts_cands:
                if est_bytes(tb, ts) <= budget_bytes:
                    return tb, ts
    return tb_cands[-1], ts_cands[-1]


def global_attention(attn_input, context, w_in, w_out):
    """Pallas GlobalAttention forward.

    attn_input: [B, D]; context: [B, S, D]
    w_in:  [D, D]   (nn.Linear(dim, dim, bias=False).weight, [out, in])
    w_out: [D, 2D]  (nn.Linear(2*dim, dim, bias=False).weight)
    returns (context_output [B, D], attn [B, S])
    """
    B, D = attn_input.shape
    Bc, S, Dc = context.shape
    assert (Bc, Dc) == (B, D)
    dtype = attn_input.dtype

    # Hoisted linears (w_in / w_x never enter kernel VMEM).
    target = attn_input @ w_in.T                         # [B, D]
    xproj = attn_input @ w_out[:, D:].T                  # [B, D]
    w_wc = jnp.transpose(w_out[:, :D])                   # [D, D], acts on weighted ctx

    # Pad B to a sublane multiple and S to a lane multiple (lane-dense stores);
    # padded score columns are masked to -inf inside the kernel.
    B_pad = _round_up(B, 8)
    S_pad = _round_up(S, 128)
    if B_pad != B:
        target = jnp.pad(target, ((0, B_pad - B), (0, 0)))
        xproj = jnp.pad(xproj, ((0, B_pad - B), (0, 0)))
    if (B_pad != B) or (S_pad != S):
        context = jnp.pad(context, ((0, B_pad - B), (0, S_pad - S), (0, 0)))

    TB, TS = _select_tiles(B_pad, S_pad, D, itemsize=jnp.dtype(dtype).itemsize)
    nk = S_pad // TS
    grid = (B_pad // TB, nk)

    kernel = functools.partial(_global_attention_kernel,
                               src_len=S, padded_src_len=S_pad, num_src_tiles=nk)

    out, attn = pl.pallas_call(
        kernel,
        out_shape=(jax.ShapeDtypeStruct((B_pad, D), dtype),
                   jax.ShapeDtypeStruct((B_pad, S_pad), dtype)),
        grid_spec=pltpu.PrefetchScalarGridSpec(
            num_scalar_prefetch=0,
            grid=grid,
            in_specs=[
                pl.BlockSpec((TB, D), lambda i, k: (i, 0)),          # target
                pl.BlockSpec((TB, D), lambda i, k: (i, 0)),          # xproj
                pl.BlockSpec((TB, TS, D), lambda i, k: (i, k, 0)),   # context tile
                # TODO(synk): pipeline_mode=pl.Buffered(1) would drop the
                # redundant second buffer for this constant-index weight.
                pl.BlockSpec((D, D), lambda i, k: (0, 0)),           # w_wc (resident)
            ],
            out_specs=(
                pl.BlockSpec((TB, D), lambda i, k: (i, 0)),          # context_output
                pl.BlockSpec((TB, S_pad), lambda i, k: (i, 0)),      # attn (resident)
            ),
            scratch_shapes=[
                pltpu.VMEM((TB, 1), jnp.float32),    # running max
                pltpu.VMEM((TB, 1), jnp.float32),    # running denominator
                pltpu.VMEM((TB, D), jnp.float32),    # weighted-context accumulator
                pltpu.VMEM((TB, nk), jnp.float32),   # per-tile running max
            ],
        ),
        compiler_params=pltpu.CompilerParams(
            dimension_semantics=("parallel", "arbitrary"),
            vmem_limit_bytes=64 * 1024 * 1024),
    )(target, xproj, context, w_wc)

    return out[:B], attn[:B, :S]


def global_attention_ref(attn_input, context, w_in, w_out):
    target = attn_input @ w_in.T
    scores = jnp.einsum('bsd,bd->bs', context, target)
    attn = jax.nn.softmax(scores, axis=-1)
    weighted = jnp.einsum('bs,bsd->bd', attn, context)
    combined = jnp.concatenate([weighted, attn_input], axis=1)
    out = jnp.tanh(combined @ w_out.T)
    return out, attn


def _run_case(B, S, D):
    key = jax.random.PRNGKey(0)
    k1, k2, k3, k4 = jax.random.split(key, 4)

    attn_input = jax.random.normal(k1, (B, D), dtype=jnp.float32)
    # mildly scaled context keeps the softmax well conditioned for the check
    context = 0.25 * jax.random.normal(k2, (B, S, D), dtype=jnp.float32)

    # nn.Linear default init: U(-1/sqrt(fan_in), 1/sqrt(fan_in)), bias=False
    bound_in = 1.0 / (D ** 0.5)
    bound_out = 1.0 / ((2 * D) ** 0.5)
    w_in = jax.random.uniform(k3, (D, D), jnp.float32, -bound_in, bound_in)
    w_out = jax.random.uniform(k4, (D, 2 * D), jnp.float32, -bound_out, bound_out)

    out, attn = global_attention(attn_input, context, w_in, w_out)
    jax.block_until_ready((out, attn))

    ref_out, ref_attn = global_attention_ref(attn_input, context, w_in, w_out)
    assert out.shape == ref_out.shape and attn.shape == ref_attn.shape
    assert jnp.allclose(out, ref_out, atol=5e-4, rtol=2e-3), (
        f"out mismatch (B={B},S={S},D={D}): "
        f"max abs diff {float(jnp.max(jnp.abs(out - ref_out)))}")
    assert jnp.allclose(attn, ref_attn, atol=5e-5, rtol=2e-3), (
        f"attn mismatch (B={B},S={S},D={D}): "
        f"max abs diff {float(jnp.max(jnp.abs(attn - ref_attn)))}")


if __name__ == "__main__":
    # tiny case: B padded 2->8, S padded 8->128, single tile, mask path
    _run_case(B=2, S=8, D=32)
    # ragged source: S padded 300->384, 3 source tiles, online softmax + rescale
    _run_case(B=8, S=300, D=128)
    # lane-dense source, 2 steps on the parallel batch axis (megacore/v7x)
    _run_case(B=16, S=1024, D=128)
    print("KERNEL_OK")
</pallas_src>

<mosaic_0001>
module attributes {stable_mosaic.version = 11 : i64} {
  func.func @_global_attention_kernel(%arg0: i32, %arg1: i32, %arg2: memref<8x32xf32, #tpu.memory_space<vmem>>, %arg3: memref<8x32xf32, #tpu.memory_space<vmem>>, %arg4: memref<8x128x32xf32, #tpu.memory_space<vmem>>, %arg5: memref<32x32xf32, #tpu.memory_space<vmem>>, %arg6: memref<8x32xf32, #tpu.memory_space<vmem>>, %arg7: memref<8x128xf32, #tpu.memory_space<vmem>>, %arg8: memref<8x1xf32, #tpu.memory_space<vmem>>, %arg9: memref<8x1xf32, #tpu.memory_space<vmem>>, %arg10: memref<8x32xf32, #tpu.memory_space<vmem>>, %arg11: memref<8x1xf32, #tpu.memory_space<vmem>>) attributes {dimension_semantics = [#tpu.dimension_semantics<parallel>, #tpu.dimension_semantics<arbitrary>], iteration_bounds = array<i64: 1, 1>, scalar_prefetch = 0 : i64, scratch_operands = 4 : i64, tpu.core_type = #tpu.core_type<tc>, window_params = [{transform_indices = @transform_0, window_bounds = array<i64: 8, 32>}, {transform_indices = @transform_1, window_bounds = array<i64: 8, 32>}, {transform_indices = @transform_2, window_bounds = array<i64: 8, 128, 32>}, {pipeline_mode = #tpu.pipeline_mode<synchronous>, transform_indices = @transform_3, window_bounds = array<i64: 32, 32>}, {transform_indices = @transform_4, window_bounds = array<i64: 8, 32>}, {transform_indices = @transform_5, window_bounds = array<i64: 8, 128>}]} {
    %c0_i32 = arith.constant 0 : i32
    %0 = arith.cmpi eq, %arg1, %c0_i32 : i32
    %1 = arith.extui %0 : i1 to i32
    %c0_i32_0 = arith.constant 0 : i32
    %2 = arith.cmpi ne, %1, %c0_i32_0 : i32
    scf.if %2 {
      %cst_29 = arith.constant 0xFF800000 : f32
      %55 = vector.broadcast %cst_29 : f32 to vector<8x1xf32>
      %c0_30 = arith.constant 0 : index
      %c0_31 = arith.constant 0 : index
      %56 = vector.load %arg8[%c0_30, %c0_31] : memref<8x1xf32, #tpu.memory_space<vmem>>, vector<8x1xf32>
      tpu.vector_store %arg8[%c0_30, %c0_31], %55 {strides = array<i32>} : memref<8x1xf32, #tpu.memory_space<vmem>>, vector<8x1xf32>,
      %cst_32 = arith.constant 0.000000e+00 : f32
      %57 = vector.broadcast %cst_32 : f32 to vector<8x1xf32>
      %c0_33 = arith.constant 0 : index
      %c0_34 = arith.constant 0 : index
      %58 = vector.load %arg9[%c0_33, %c0_34] : memref<8x1xf32, #tpu.memory_space<vmem>>, vector<8x1xf32>
      tpu.vector_store %arg9[%c0_33, %c0_34], %57 {strides = array<i32>} : memref<8x1xf32, #tpu.memory_space<vmem>>, vector<8x1xf32>,
      %cst_35 = arith.constant 0.000000e+00 : f32
      %59 = vector.broadcast %cst_35 : f32 to vector<8x32xf32>
      %c0_36 = arith.constant 0 : index
      %c0_37 = arith.constant 0 : index
      %60 = vector.load %arg10[%c0_36, %c0_37] : memref<8x32xf32, #tpu.memory_space<vmem>>, vector<8x32xf32>
      tpu.vector_store %arg10[%c0_36, %c0_37], %59 {strides = array<i32>} : memref<8x32xf32, #tpu.memory_space<vmem>>, vector<8x32xf32>,
      %cst_38 = arith.constant 0.000000e+00 : f32
      %61 = vector.broadcast %cst_38 : f32 to vector<8x1xf32>
      %c0_39 = arith.constant 0 : index
      %c0_40 = arith.constant 0 : index
      %62 = vector.load %arg11[%c0_39, %c0_40] : memref<8x1xf32, #tpu.memory_space<vmem>>, vector<8x1xf32>
      tpu.vector_store %arg11[%c0_39, %c0_40], %61 {strides = array<i32>} : memref<8x1xf32, #tpu.memory_space<vmem>>, vector<8x1xf32>,
    } else {
    }
    %c0 = arith.constant 0 : index
    %c0_1 = arith.constant 0 : index
    %c0_2 = arith.constant 0 : index
    %3 = vector.load %arg4[%c0, %c0_1, %c0_2] : memref<8x128x32xf32, #tpu.memory_space<vmem>>, vector<8x128x32xf32>
    %c0_3 = arith.constant 0 : index
    %c0_4 = arith.constant 0 : index
    %4 = vector.load %arg2[%c0_3, %c0_4] : memref<8x32xf32, #tpu.memory_space<vmem>>, vector<8x32xf32>
    %5 = vector.shape_cast %4 : vector<8x32xf32> to vector<8x1x32xf32>
    %6 = vector.broadcast %5 : vector<8x1x32xf32> to vector<8x128x32xf32>
    %7 = arith.mulf %3, %6 : vector<8x128x32xf32>
    %cst = arith.constant dense<0.000000e+00> : vector<8x128xf32>
    %8 = vector.multi_reduction <add>, %7, %cst [2] : vector<8x128x32xf32> to vector<8x128xf32>
    %c128_i32 = arith.constant 128 : i32
    %9 = arith.muli %arg1, %c128_i32 : i32
    %10 = tpu.iota {dimensions = array<i32: 1>} : vector<8x128xi32>
    %11 = vector.broadcast %9 : i32 to vector<8x128xi32>
    %12 = arith.addi %11, %10 : vector<8x128xi32>
    %c8_i32 = arith.constant 8 : i32
    %13 = vector.broadcast %c8_i32 : i32 to vector<8x128xi32>
    %14 = arith.cmpi slt, %12, %13 : vector<8x128xi32>
    %cst_5 = arith.constant 0xFF800000 : f32
    %15 = vector.broadcast %cst_5 : f32 to vector<8x128xf32>
    %16 = arith.select %14, %8, %15 : vector<8x128xi1>, vector<8x128xf32>
    %c0_6 = arith.constant 0 : index
    %c0_7 = arith.constant 0 : index
    %17 = vector.load %arg8[%c0_6, %c0_7] : memref<8x1xf32, #tpu.memory_space<vmem>>, vector<8x1xf32>
    %cst_8 = arith.constant dense<0xFF800000> : vector<8xf32>
    %18 = vector.multi_reduction <maximumf>, %16, %cst_8 [1] : vector<8x128xf32> to vector<8xf32>
    %19 = vector.shape_cast %18 : vector<8xf32> to vector<8x1xf32>
    %20 = arith.maximumf %17, %19 : vector<8x1xf32>
    %21 = arith.subf %17, %20 : vector<8x1xf32>
    %22 = math.exp %21 : vector<8x1xf32>
    %23 = vector.broadcast %20 : vector<8x1xf32> to vector<8x128xf32>
    %24 = arith.subf %16, %23 : vector<8x128xf32>
    %25 = math.exp %24 : vector<8x128xf32>
    %c0_9 = arith.constant 0 : index
    %c0_10 = arith.constant 0 : index
    %26 = vector.load %arg9[%c0_9, %c0_10] : memref<8x1xf32, #tpu.memory_space<vmem>>, vector<8x1xf32>
    %27 = arith.mulf %22, %26 : vector<8x1xf32>
    %cst_11 = arith.constant dense<0.000000e+00> : vector<8xf32>
    %28 = vector.multi_reduction <add>, %25, %cst_11 [1] : vector<8x128xf32> to vector<8xf32>
    %29 = vector.shape_cast %28 : vector<8xf32> to vector<8x1xf32>
    %30 = arith.addf %27, %29 : vector<8x1xf32>
    %c0_12 = arith.constant 0 : index
    %c0_13 = arith.constant 0 : index
    %31 = vector.load %arg9[%c0_12, %c0_13] : memref<8x1xf32, #tpu.memory_space<vmem>>, vector<8x1xf32>
    tpu.vector_store %arg9[%c0_12, %c0_13], %30 {strides = array<i32>} : memref<8x1xf32, #tpu.memory_space<vmem>>, vector<8x1xf32>,
    %c0_14 = arith.constant 0 : index
    %c0_15 = arith.constant 0 : index
    %32 = vector.load %arg10[%c0_14, %c0_15] : memref<8x32xf32, #tpu.memory_space<vmem>>, vector<8x32xf32>
    %33 = vector.broadcast %22 : vector<8x1xf32> to vector<8x32xf32>
    %34 = arith.mulf %33, %32 : vector<8x32xf32>
    %35 = vector.shape_cast %25 : vector<8x128xf32> to vector<8x128x1xf32>
    %36 = vector.broadcast %35 : vector<8x128x1xf32> to vector<8x128x32xf32>
    %37 = arith.mulf %36, %3 : vector<8x128x32xf32>
    %cst_16 = arith.constant dense<0.000000e+00> : vector<8x32xf32>
    %38 = vector.multi_reduction <add>, %37, %cst_16 [1] : vector<8x128x32xf32> to vector<8x32xf32>
    %39 = arith.addf %34, %38 : vector<8x32xf32>
    %c0_17 = arith.constant 0 : index
    %c0_18 = arith.constant 0 : index
    %40 = vector.load %arg10[%c0_17, %c0_18] : memref<8x32xf32, #tpu.memory_space<vmem>>, vector<8x32xf32>
    tpu.vector_store %arg10[%c0_17, %c0_18], %39 {strides = array<i32>} : memref<8x32xf32, #tpu.memory_space<vmem>>, vector<8x32xf32>,
    %c0_19 = arith.constant 0 : index
    %c0_20 = arith.constant 0 : index
    %41 = vector.load %arg8[%c0_19, %c0_20] : memref<8x1xf32, #tpu.memory_space<vmem>>, vector<8x1xf32>
    tpu.vector_store %arg8[%c0_19, %c0_20], %20 {strides = array<i32>} : memref<8x1xf32, #tpu.memory_space<vmem>>, vector<8x1xf32>,
    %c128_i32_21 = arith.constant 128 : i32
    %42 = arith.muli %arg1, %c128_i32_21 : i32
    %43 = tpu.assume_multiple %42, 128 : i32
    %c0_22 = arith.constant 0 : index
    %44 = arith.index_cast %43 : i32 to index
    %45 = vector.load %arg7[%c0_22, %44] : memref<8x128xf32, #tpu.memory_space<vmem>>, vector<8x128xf32>
    tpu.vector_store %arg7[%c0_22, %44], %25 {strides = array<i32>} : memref<8x128xf32, #tpu.memory_space<vmem>>, vector<8x128xf32>,
    %46 = tpu.iota {dimensions = array<i32: 1>} : vector<8x1xi32>
    %47 = vector.broadcast %arg1 : i32 to vector<8x1xi32>
    %48 = arith.cmpi eq, %46, %47 : vector<8x1xi32>
    %c0_23 = arith.constant 0 : index
    %c0_24 = arith.constant 0 : index
    %49 = vector.load %arg11[%c0_23, %c0_24] : memref<8x1xf32, #tpu.memory_space<vmem>>, vector<8x1xf32>
    %50 = arith.select %48, %20, %49 : vector<8x1xi1>, vector<8x1xf32>
    %c0_25 = arith.constant 0 : index
    %c0_26 = arith.constant 0 : index
    %51 = vector.load %arg11[%c0_25, %c0_26] : memref<8x1xf32, #tpu.memory_space<vmem>>, vector<8x1xf32>
    tpu.vector_store %arg11[%c0_25, %c0_26], %50 {strides = array<i32>} : memref<8x1xf32, #tpu.memory_space<vmem>>, vector<8x1xf32>,
    %c0_i32_27 = arith.constant 0 : i32
    %52 = arith.cmpi eq, %arg1, %c0_i32_27 : i32
    %53 = arith.extui %52 : i1 to i32
    %c0_i32_28 = arith.constant 0 : i32
    %54 = arith.cmpi ne, %53, %c0_i32_28 : i32
    scf.if %54 {
      %c0_29 = arith.constant 0 : index
      %c0_30 = arith.constant 0 : index
      %55 = vector.load %arg8[%c0_29, %c0_30] : memref<8x1xf32, #tpu.memory_space<vmem>>, vector<8x1xf32>
      %c0_31 = arith.constant 0 : index
      %c0_32 = arith.constant 0 : index
      %56 = vector.load %arg9[%c0_31, %c0_32] : memref<8x1xf32, #tpu.memory_space<vmem>>, vector<8x1xf32>
      %57 = tpu.reciprocal %56 : vector<8x1xf32> -> vector<8x1xf32>
      %c0_33 = arith.constant 0 : index
      %c0_34 = arith.constant 0 : index
      %58 = vector.load %arg11[%c0_33, %c0_34] : memref<8x1xf32, #tpu.memory_space<vmem>>, vector<8x1xf32>
      %59 = arith.subf %58, %55 : vector<8x1xf32>
      %60 = math.exp %59 : vector<8x1xf32>
      %61 = arith.mulf %60, %57 : vector<8x1xf32>
      %c0_35 = arith.constant 0 : index
      %c0_36 = arith.constant 0 : index
      %62 = vector.load %arg7[%c0_35, %c0_36] : memref<8x128xf32, #tpu.memory_space<vmem>>, vector<8x128xf32>
      %63 = vector.broadcast %61 : vector<8x1xf32> to vector<8x128xf32>
      %64 = arith.mulf %62, %63 : vector<8x128xf32>
      %c0_37 = arith.constant 0 : index
      %c0_38 = arith.constant 0 : index
      %65 = vector.load %arg7[%c0_37, %c0_38] : memref<8x128xf32, #tpu.memory_space<vmem>>, vector<8x128xf32>
      tpu.vector_store %arg7[%c0_37, %c0_38], %64 {strides = array<i32>} : memref<8x128xf32, #tpu.memory_space<vmem>>, vector<8x128xf32>,
      %c0_39 = arith.constant 0 : index
      %c0_40 = arith.constant 0 : index
      %66 = vector.load %arg10[%c0_39, %c0_40] : memref<8x32xf32, #tpu.memory_space<vmem>>, vector<8x32xf32>
      %67 = vector.broadcast %57 : vector<8x1xf32> to vector<8x32xf32>
      %68 = arith.mulf %66, %67 : vector<8x32xf32>
      %c0_41 = arith.constant 0 : index
      %c0_42 = arith.constant 0 : index
      %69 = vector.load %arg5[%c0_41, %c0_42] : memref<32x32xf32, #tpu.memory_space<vmem>>, vector<32x32xf32>
      %cst_43 = arith.constant dense<0.000000e+00> : vector<8x32xf32>
      %70 = tpu.matmul %68, %69, %cst_43 {dimension_numbers = #tpu.dot_dimension_numbers<[1], [0], [0], [1], [0, 0, 1, 1], [], []>} : vector<8x32xf32>, vector<32x32xf32>, vector<8x32xf32> -> vector<8x32xf32>
      %c0_44 = arith.constant 0 : index
      %c0_45 = arith.constant 0 : index
      %71 = vector.load %arg3[%c0_44, %c0_45] : memref<8x32xf32, #tpu.memory_space<vmem>>, vector<8x32xf32>
      %72 = arith.addf %70, %71 : vector<8x32xf32>
      %73 = math.tanh %72 : vector<8x32xf32>
      %c0_46 = arith.constant 0 : index
      %c0_47 = arith.constant 0 : index
      %74 = vector.load %arg6[%c0_46, %c0_47] : memref<8x32xf32, #tpu.memory_space<vmem>>, vector<8x32xf32>
      tpu.vector_store %arg6[%c0_46, %c0_47], %73 {strides = array<i32>} : memref<8x32xf32, #tpu.memory_space<vmem>>, vector<8x32xf32>,
    } else {
    }
    return
  }
  func.func @transform_0(%arg0: i32, %arg1: i32) -> (i32, i32) {
    %c0_i32 = arith.constant 0 : i32
    %c0_i32_0 = arith.constant 0 : i32
    return %arg0, %c0_i32 : i32, i32
  }
  func.func @transform_1(%arg0: i32, %arg1: i32) -> (i32, i32) {
    %c0_i32 = arith.constant 0 : i32
    %c0_i32_0 = arith.constant 0 : i32
    return %arg0, %c0_i32 : i32, i32
  }
  func.func @transform_2(%arg0: i32, %arg1: i32) -> (i32, i32, i32) {
    %c0_i32 = arith.constant 0 : i32
    %c0_i32_0 = arith.constant 0 : i32
    return %arg0, %arg1, %c0_i32 : i32, i32, i32
  }
  func.func @transform_3(%arg0: i32, %arg1: i32) -> (i32, i32) {
    %c0_i32 = arith.constant 0 : i32
    %c0_i32_0 = arith.constant 0 : i32
    %c0_i32_1 = arith.constant 0 : i32
    return %c0_i32, %c0_i32_0 : i32, i32
  }
  func.func @transform_4(%arg0: i32, %arg1: i32) -> (i32, i32) {
    %c0_i32 = arith.constant 0 : i32
    %c0_i32_0 = arith.constant 0 : i32
    return %arg0, %c0_i32 : i32, i32
  }
  func.func @transform_5(%arg0: i32, %arg1: i32) -> (i32, i32) {
    %c0_i32 = arith.constant 0 : i32
    %c0_i32_0 = arith.constant 0 : i32
    return %arg0, %c0_i32 : i32, i32
  }
}

</mosaic_0001>

<bundles_post_ra>
// kernel: tpu_custom_call.1
= control target key start
LH: loop header
LB: loop body
LE: loop exit
PB: predicated region body
PF: predicated region fallthrough
CT: control target
= control target key end

     0   :  { %11 = vsyncpa [#allocation7], 0  ;;  %s4605_s0 = inlined_call_operand.hbm [shape: f32[8,32], index: 0, kind: input, shape index: {}]   ;;  %s4606_s1 = inlined_call_operand.hbm [shape: f32[8,32], index: 1, kind: input, shape index: {}]   ;;  %s4607_s2 = inlined_call_operand.hbm [shape: f32[8,128,32], index: 2, kind: input, shape index: {}]   ;;  %s4608_s3 = inlined_call_operand.hbm [shape: f32[32,32], index: 3, kind: input, shape index: {}]   ;;  %s4609_s4 = inlined_call_operand.hbm [shape: f32[8,32], index: 4, kind: output, shape index: {0}]   ;;  %s4610_s5 = inlined_call_operand.hbm [shape: f32[8,128], index: 5, kind: output, shape index: {1}]  }
   0x1   :  { %12 = vsyncpa [#allocation10], 0 }
   0x2   :  { %13 = vsyncpa [#allocation13], 0 }
   0x3   :  { %14 = vsyncpa [#allocation8], 0 }
   0x4   :  { %15 = vsyncpa [#allocation16], 0  ;;  %s3101_s18 = smov [#allocation9]   ;;  %s3102_s20 = smov [#allocation6]  }
   0x5   :  { %s32_s19 = sshll.u32 %s3101_s18, 4  ;;  %s22_s21 = sshll.u32 %s3102_s20, 4  ;;  %s33_s19 = int_to_ptr.vmem [resolvable:$true] %s32_s19  ;;  %s23_s21 = int_to_ptr.vmem [resolvable:$true] %s22_s21 }
   0x6   :  { %s2959_s24 = scalar_lea.hbm %s4606_s1, 128 }
   0x7   :  { %p2960_p0 = scmp.ne.s32.totalorder %s4606_s1, %s2959_s24  ;;  %p2963_p1 = scmp.lt.u32.totalorder %s2959_s24, %s4606_s1 }
   0x9   :  { %p2965_p2 = pnand %p2963_p1, %p2960_p0 }
   0xb   :  { %2968 = shalt.err (!%p2965_p2)
}
   0xc   :  { %s2969_s29 = scalar_lea.vmem %s33_s19, 128  ;;  %p2974_p4 = scmp.lt.s32.totalorder %s33_s19, %s33_s19 }
   0xd   :  { %p2970_p3 = scmp.ne.s32.totalorder %s33_s19, %s2969_s29  ;;  %p2975_p5 = scmp.lt.s32.totalorder %s2969_s29, %s2969_s29 }
   0xf   :  { %p2976_p6 = por %p2975_p5, %p2974_p4 }
  0x11   :  { %p2977_p7 = pnand %p2976_p6, %p2970_p3 }
  0x13   :  { %2980 = shalt.err (!%p2977_p7)
}
  0x14   :  { %35 = dma.hbm_to_vmem [thread:$0]  %s4606_s1, 128, %s33_s19, [#allocation10]  }
  0x15   :  { %s2981_s9 = scalar_lea.hbm %s4605_s0, 128 }
  0x16   :  { %p2982_p8 = scmp.ne.s32.totalorder %s4605_s0, %s2981_s9  ;;  %p2985_p9 = scmp.lt.u32.totalorder %s2981_s9, %s4605_s0 }
  0x18   :  { %p2987_p10 = pnand %p2985_p9, %p2982_p8 }
  0x1a   :  { %2990 = shalt.err (!%p2987_p10)
}
  0x1b   :  { %s2991_s14 = scalar_lea.vmem %s23_s21, 128  ;;  %p2996_p12 = scmp.lt.s32.totalorder %s23_s21, %s23_s21 }
  0x1c   :  { %p2992_p11 = scmp.ne.s32.totalorder %s23_s21, %s2991_s14  ;;  %p2997_p13 = scmp.lt.s32.totalorder %s2991_s14, %s2991_s14 }
  0x1e   :  { %p2998_p0 = por %p2997_p13, %p2996_p12 }
  0x20   :  { %p2999_p1 = pnand %p2998_p0, %p2992_p11 }
  0x22   :  { %3002 = shalt.err (!%p2999_p1)
}
  0x23   :  { %25 = dma.hbm_to_vmem [thread:$0]  %s4605_s0, 128, %s23_s21, [#allocation7]  }
  0x24   :  { %s3103_s16 = smov [#allocation11]   ;;  %s3003_s20 = scalar_lea.hbm %s4607_s2, 16384 }
  0x25   :  { %s41_s17 = sshll.u32 %s3103_s16, 4  ;;  %p3004_p2 = scmp.ne.s32.totalorder %s4607_s2, %s3003_s20  ;;  %s42_s17 = int_to_ptr.vmem [resolvable:$true] %s41_s17 }
  0x26   :  { %p3007_p3 = scmp.lt.u32.totalorder %s3003_s20, %s4607_s2 }
  0x28   :  { %p3009_p4 = pnand %p3007_p3, %p3004_p2 }
  0x2a   :  { %3012 = shalt.err (!%p3009_p4)
}
  0x2b   :  { %s3013_s26 = scalar_lea.vmem %s42_s17, 16384  ;;  %p3018_p6 = scmp.lt.s32.totalorder %s42_s17, %s42_s17 }
  0x2c   :  { %p3014_p5 = scmp.ne.s32.totalorder %s42_s17, %s3013_s26  ;;  %p3019_p7 = scmp.lt.s32.totalorder %s3013_s26, %s3013_s26 }
  0x2e   :  { %p3020_p8 = por %p3019_p7, %p3018_p6 }
  0x30   :  { %p3021_p9 = pnand %p3020_p8, %p3014_p5 }
  0x32   :  { %3024 = shalt.err (!%p3021_p9)
}
  0x33   :  { %s3104_s0 = smov 128   ;;  %s3105_s21 = smov 8  }
  0x34   :  { %47 = dma.hbm_to_vmem [thread:$0]  %s4607_s2, 16384, %s42_s17, [#allocation10], %s3104_s0, %s3104_s0, %s3105_s21  }
  0x35   :  { %s3106_s29 = smov [#allocation12]   ;;  %s3025_s8 = scalar_lea.hbm %s4608_s3, 512 }
  0x36   :  { %s53_s30 = sshll.u32 %s3106_s29, 4  ;;  %p3026_p10 = scmp.ne.s32.totalorder %s4608_s3, %s3025_s8  ;;  %s54_s30 = int_to_ptr.vmem [resolvable:$true] %s53_s30 }
  0x37   :  { %p3029_p11 = scmp.lt.u32.totalorder %s3025_s8, %s4608_s3 }
  0x39   :  { %p3031_p12 = pnand %p3029_p11, %p3026_p10 }
  0x3b   :  { %3034 = shalt.err (!%p3031_p12)
}
  0x3c   :  { %s3035_s13 = scalar_lea.vmem %s54_s30, 512  ;;  %p3040_p0 = scmp.lt.s32.totalorder %s54_s30, %s54_s30 }
  0x3d   :  { %p3036_p13 = scmp.ne.s32.totalorder %s54_s30, %s3035_s13  ;;  %p3041_p1 = scmp.lt.s32.totalorder %s3035_s13, %s3035_s13 }
  0x3f   :  { %p3042_p2 = por %p3041_p1, %p3040_p0 }
  0x41   :  { %p3043_p3 = pnand %p3042_p2, %p3036_p13 }
  0x43   :  { %3046 = shalt.err (!%p3043_p3)
}
  0x44   :  { %59 = dma.hbm_to_vmem [thread:$0]  %s4608_s3, 512, %s54_s30, [#allocation13], %s3104_s0, %s3104_s0, %s3105_s21  }
  0x45   :  { %3091 = dma.done.wait [#allocation7], 128  }
  0x46   :  { %3092 = vsyncadd [#allocation7], 4294967168 }
  0x47   :  { %3093 = dma.done.wait [#allocation10], 16512  }
  0x48   :  { %3094 = vsyncadd [#allocation10], 4294950784 }
  0x49   :  { %3095 = dma.done.wait [#allocation13], 512  }
  0x4a   :  { %3096 = vsyncadd [#allocation13], 4294966784  ;;  %v216_v0 = vlaneseq  ;;  %v3107_v1 = vmov 1966171168   ;;  %v210_v6 = vld [vmem:[#allocation6] sm:$0xff]  ;;  %v82_v11 = vld [vmem:[#allocation11] sm:$0xff] }
  0x4b   :  { %v214_v2 = vunpack.c.l.s4 %v3107_v1  ;;  %v83_v12 = vld [vmem:[#allocation11 + $0x8] sm:$0xff]  ;;  %vm4617_vm0 = vcmask 261120   ;;  %v98_v15 = vld [vmem:[#allocation11 + $0x80] sm:$0xff]  ;;  %v84_v20 = vld [vmem:[#allocation11 + $0x10] sm:$0xff]  ;;  %v212_v44 = vcombine.high %v210_v6, %v210_v6  ;;  %vm957_vm1 = vcmask 130112   ;;  %s3113_s3 = smov [#allocation15]  }
  0x4c   :  { %v3194_v3 = vshrl.u32 %v216_v0, 7  ;;  %v99_v16 = vld [vmem:[#allocation11 + $0x88] sm:$0xff]  ;;  %v100_v25 = vld [vmem:[#allocation11 + $0x90] sm:$0xff]  ;;  %v85_v29 = vld [vmem:[#allocation11 + $0x18] sm:$0xff]  ;;  %vm964_vm2 = vcmask 195712   ;;  %vm971_vm3 = vcmask 261312  }
  0x4d   :  { %v215_v4 = vunpack.c.0.s8 %v214_v2  ;;  %v115_v33 = vld [vmem:[#allocation11 + $0x108] sm:$0xff]  ;;  %v114_v36 = vld [vmem:[#allocation11 + $0x100] sm:$0xff]  ;;  %v101_v40 = vld [vmem:[#allocation11 + $0x98] sm:$0xff]  ;;  %vm978_vm4 = vcmask 326912   ;;  %vm985_vm5 = vcmask 392512   ;;  %vm992_vm6 = vcmask 458112  }
  0x4e   :  { %4621 = vst [vmem:[#allocation22_spill] sm:$0xff] %v3194_v3  ;;  %v3201_v8 = vsub.s32 0, %v3194_v3  ;;  %v116_v43 = vld [vmem:[#allocation11 + $0x110] sm:$0xff]  ;;  %v130_v48 = vld [vmem:[#allocation11 + $0x180] sm:$0xff]  ;;  %v131_v51 = vld [vmem:[#allocation11 + $0x188] sm:$0xff]  ;;  %vm4618_vm7 = vcmask 7168  }
  0x4f   :  { %v3197_v5 = vsub.s32 %v215_v4, %v3194_v3  ;;  %v86_v55 = vld [vmem:[#allocation11 + $0x20] sm:$0xff]  ;;  %v117_v62 = vld [vmem:[#allocation11 + $0x118] sm:$0xff]  ;;  %v132_v2 = vld [vmem:[#allocation11 + $0x190] sm:$0xff]  ;;  %vm999_vm8 = vcmask 523712   ;;  %vm1006_vm9 = vcmask 589312   ;;  %vm1013_vm10 = vcmask 654912  }
  0x50   :  { %4622 = vst [vmem:[#allocation23_spill] sm:$0xff] %v3201_v8  ;;  %v102_v58 = vld [vmem:[#allocation11 + $0xa0] sm:$0xff]  ;;  %vm1020_vm11 = vcmask 720512   ;;  %vm1027_vm12 = vcmask 786112   ;;  %vm1034_vm13 = vcmask 851712   ;;  %vm1041_vm14 = vcmask 917312  }
  0x51   :  { %v219_v7 = vrot.slane %v210_v6, %v3197_v5  ;;  %v226_v54 = vrot.slane %v212_v44, %v3197_v5  ;;  %v104_v44 = vld [vmem:[#allocation11 + $0xb0] sm:$0xff]  ;;  %vm1048_vm15 = vcmask 982912   ;;  %s2765_s1 = sshll.u32 %s3113_s3, 4  ;;  %s2766_s1 = int_to_ptr.vmem [resolvable:$true] %s2765_s1 }
  0x52   :  { %s3047_s15 = scalar_lea.vmem %s2766_s1, 128  ;;  %p3052_p5 = scmp.lt.s32.totalorder %s2766_s1, %s2766_s1 }
  0x53   :  { %v235_v9 = vrot.slane %v219_v7, %v3197_v5  ;;  %v227_v10 = vcombine.high %v219_v7, %v219_v7  ;;  %v3245_v61 = vrot.slane %v226_v54, %v3197_v5  ;;  %p3048_p4 = scmp.ne.s32.totalorder %s2766_s1, %s3047_s15  ;;  %p3053_p6 = scmp.lt.s32.totalorder %s3047_s15, %s3047_s15 }
  0x55   :  { %v3205_v13 = vrot.slane %v235_v9, %v3201_v8  ;;  %v249_v14 = vrot.slane %v227_v10, %v3197_v5  ;;  %v257_v24 = vcombine.high %v235_v9, %v235_v9  ;;  %v3253_v7 = vrot.slane %v3245_v61, %v3201_v8  ;;  %v146_v9 = vld [vmem:[#allocation11 + $0x200] sm:$0xff]  ;;  %p3054_p7 = por %p3053_p6, %p3052_p5 }
  0x57   :  { %v301_v17 = vmul.f32 %v3205_v13, %v82_v11  ;;  %v3210_v18 = vrot.slane %v249_v14, %v3201_v8  ;;  %v302_v19 = vmul.f32 %v3205_v13, %v83_v12  ;;  %v303_v28 = vmul.f32 %v3205_v13, %v84_v20  ;;  %v147_v12 = vld [vmem:[#allocation11 + $0x208] sm:$0xff]  ;;  %p3055_p8 = pnand %p3054_p7, %p3048_p4 }
  0x58   :  { %v3222_v32 = vrot.slane %v257_v24, %v3201_v8  ;;  %v304_v35 = vmul.f32 %v3205_v13, %v85_v29  ;;  %v259_v39 = vcombine.high %v249_v14, %v249_v14  ;;  %v305_v60 = vmul.f32 %v3205_v13, %v86_v55  ;;  %v118_v24 = vld [vmem:[#allocation11 + $0x120] sm:$0xff]  ;;  %v149_v55 = vld [vmem:[#allocation11 + $0x218] sm:$0xff] }
  0x59   :  { %v430_v21 = vsel %vm4617_vm0, %v301_v17, 0.0  ;;  %v317_v22 = vmul.f32 %v3210_v18, %v98_v15  ;;  %v318_v23 = vmul.f32 %v3210_v18, %v99_v16  ;;  %v433_v27 = vsel %vm4617_vm0, %v302_v19, 0.0  ;;  %v87_v16 = vld [vmem:[#allocation11 + $0x28] sm:$0xff] }
  0x5a   :  { %431 = vadd.xlane.f32.xlu0 %v430_v21  ;;  %v319_v31 = vmul.f32 %v3210_v18, %v100_v25  ;;  %v436_v34 = vsel %vm4617_vm0, %v303_v28, 0.0  ;;  %v334_v38 = vmul.f32 %v3222_v32, %v115_v33  ;;  %v439_v41 = vsel %vm4617_vm0, %v304_v35, 0.0  ;;  %v103_v21 = vld [vmem:[#allocation11 + $0xa8] sm:$0xff]  ;;  %v133_v28 = vld [vmem:[#allocation11 + $0x198] sm:$0xff] }
  0x5b   :  { %v478_v26 = vsel %vm4617_vm0, %v317_v22, 0.0  ;;  %v481_v30 = vsel %vm4617_vm0, %v318_v23, 0.0  ;;  %v333_v42 = vmul.f32 %v3222_v32, %v114_v36  ;;  %v320_v46 = vmul.f32 %v3210_v18, %v101_v40  ;;  %v162_v36 = vld [vmem:[#allocation11 + $0x280] sm:$0xff] }
  0x5c   :  { %479 = vadd.xlane.f32.xlu1 %v478_v26  ;;  %v484_v37 = vsel %vm4617_vm0, %v319_v31, 0.0  ;;  %v529_v45 = vsel %vm4617_vm0, %v334_v38, 0.0  ;;  %v3233_v47 = vrot.slane %v259_v39, %v3201_v8  ;;  %v335_v50 = vmul.f32 %v3222_v32, %v116_v43  ;;  %v148_v31 = vld [vmem:[#allocation11 + $0x210] sm:$0xff]  ;;  %v163_v38 = vld [vmem:[#allocation11 + $0x288] sm:$0xff] }
  0x5d   :  { %v526_v49 = vsel %vm4617_vm0, %v333_v42, 0.0  ;;  %v487_v52 = vsel %vm4617_vm0, %v320_v46, 0.0  ;;  %v321_v1 = vmul.f32 %v3210_v18, %v102_v58  ;;  %v442_v4 = vsel %vm4617_vm0, %v305_v60, 0.0  ;;  %v164_v58 = vld [vmem:[#allocation11 + $0x290] sm:$0xff] }
  0x5e   :  { %434 = vadd.xlane.f32.xlu0 %v433_v27  ;;  %v349_v53 = vmul.f32 %v3233_v47, %v130_v48  ;;  %v532_v56 = vsel %vm4617_vm0, %v335_v50, 0.0  ;;  %v350_v57 = vmul.f32 %v3233_v47, %v131_v51  ;;  %v336_v6 = vmul.f32 %v3222_v32, %v117_v62  ;;  %v119_v48 = vld [vmem:[#allocation11 + $0x128] sm:$0xff]  ;;  %v134_v51 = vld [vmem:[#allocation11 + $0x1a0] sm:$0xff] }
  0x5f   :  { %v490_v10 = vsel %vm4617_vm0, %v321_v1, 0.0  ;;  %v351_v11 = vmul.f32 %v3233_v47, %v132_v2  ;;  %v365_v15 = vmul.f32 %v3253_v7, %v146_v9  ;;  %v366_v19 = vmul.f32 %v3253_v7, %v147_v12  ;;  %v179_v2 = vld [vmem:[#allocation11 + $0x308] sm:$0xff]  ;;  %v89_v9 = vld [vmem:[#allocation11 + $0x38] sm:$0xff] }
  0x60   :  { %482 = vadd.xlane.f32.xlu1 %v481_v30  ;;  %v574_v59 = vsel %vm4617_vm0, %v349_v53, 0.0  ;;  %v577_v63 = vsel %vm4617_vm0, %v350_v57, 0.0  ;;  %v535_v14 = vsel %vm4617_vm0, %v336_v6, 0.0  ;;  %v228_v20 = vcombine.high %v226_v54, %v226_v54  ;;  %v105_v12 = vld [vmem:[#allocation11 + $0xb8] sm:$0xff] }
  0x61   :  { %v580_v17 = vsel %vm4617_vm0, %v351_v11, 0.0  ;;  %v622_v22 = vsel %vm4617_vm0, %v365_v15, 0.0  ;;  %v306_v23 = vmul.f32 %v3205_v13, %v87_v16  ;;  %v625_v25 = vsel %vm4617_vm0, %v366_v19, 0.0  ;;  %v120_v16 = vld [vmem:[#allocation11 + $0x130] sm:$0xff] }
  0x62   :  { %437 = vadd.xlane.f32.xlu0 %v436_v34  ;;  %v322_v26 = vmul.f32 %v3210_v18, %v103_v21  ;;  %v3266_v27 = vrot.slane %v228_v20, %v3197_v5  ;;  %v337_v30 = vmul.f32 %v3222_v32, %v118_v24  ;;  %v352_v34 = vmul.f32 %v3233_v47, %v133_v28  ;;  %v135_v20 = vld [vmem:[#allocation11 + $0x1a8] sm:$0xff]  ;;  %v165_v28 = vld [vmem:[#allocation11 + $0x298] sm:$0xff] }
  0x63   :  { %v445_v29 = vsel %vm4617_vm0, %v306_v23, 0.0  ;;  %v323_v50 = vmul.f32 %v3210_v18, %v104_v44  ;;  %v338_v53 = vmul.f32 %v3222_v32, %v119_v48  ;;  %v258_v54 = vcombine.high %v3245_v61, %v3245_v61  ;;  %v150_v23 = vld [vmem:[#allocation11 + $0x220] sm:$0xff]  ;;  %v121_v48 = vld [vmem:[#allocation11 + $0x138] sm:$0xff] }
  0x64   :  { %485 = vadd.xlane.f32.xlu1 %v484_v37  ;;  %v493_v33 = vsel %vm4617_vm0, %v322_v26, 0.0  ;;  %v3274_v35 = vrot.slane %v3266_v27, %v3201_v8  ;;  %v538_v5 = vsel %vm4617_vm0, %v337_v30, 0.0  ;;  %v367_v37 = vmul.f32 %v3253_v7, %v148_v31  ;;  %v180_v31 = vld [vmem:[#allocation11 + $0x310] sm:$0xff]  ;;  %v106_v44 = vld [vmem:[#allocation11 + $0xc0] sm:$0xff] }
  0x65   :  { %v583_v39 = vsel %vm4617_vm0, %v352_v34, 0.0  ;;  %v353_v57 = vmul.f32 %v3233_v47, %v134_v51  ;;  %v368_v60 = vmul.f32 %v3253_v7, %v149_v55  ;;  %v3295_v62 = vrot.slane %v258_v54, %v3201_v8  ;;  %v136_v51 = vld [vmem:[#allocation11 + $0x1b0] sm:$0xff]  ;;  %v151_v54 = vld [vmem:[#allocation11 + $0x228] sm:$0xff] }
  0x66   :  { %440 = vadd.xlane.f32.xlu0 %v439_v41  ;;  %v381_v40 = vmul.f32 %v3274_v35, %v162_v36  ;;  %v88_v41 = vld [vmem:[#allocation11 + $0x30] sm:$0xff]  ;;  %v628_v42 = vsel %vm4617_vm0, %v367_v37, 0.0  ;;  %v382_v43 = vmul.f32 %v3274_v35, %v163_v38  ;;  %v383_v61 = vmul.f32 %v3274_v35, %v164_v58  ;;  %v195_v38 = vld [vmem:[#allocation11 + $0x388] sm:$0xff] }
  0x67   :  { %v307_v46 = vmul.f32 %v3205_v13, %v88_v41  ;;  %v586_v1 = vsel %vm4617_vm0, %v353_v57, 0.0  ;;  %v398_v11 = vmul.f32 %v3295_v62, %v179_v2  ;;  %v308_v15 = vmul.f32 %v3205_v13, %v89_v9  ;;  %v90_v41 = vld [vmem:[#allocation11 + $0x40] sm:$0xff] }
  0x68   :  { %530 = vadd.xlane.f32.xlu1 %v529_v45  ;;  %v670_v45 = vsel %vm4617_vm0, %v381_v40, 0.0  ;;  %v324_v19 = vmul.f32 %v3210_v18, %v105_v12  ;;  %v260_v26 = vcombine.high %v3266_v27, %v3266_v27  ;;  %v369_v30 = vmul.f32 %v3253_v7, %v150_v23  ;;  %v166_v57 = vld [vmem:[#allocation11 + $0x2a0] sm:$0xff] }
  0x69   :  { %v451_v21 = vsel %vm4617_vm0, %v308_v15, 0.0  ;;  %v384_v34 = vmul.f32 %v3274_v35, %v165_v28  ;;  %v399_v27 = vmul.f32 %v3295_v62, %v180_v31  ;;  %v122_v15 = vld [vmem:[#allocation11 + $0x140] sm:$0xff] }
  0x6a   :  { %527 = vadd.xlane.f32.xlu0 %v526_v49  ;;  %v673_v49 = vsel %vm4617_vm0, %v382_v43, 0.0  ;;  %v499_v24 = vsel %vm4617_vm0, %v324_v19, 0.0  ;;  %v3318_v36 = vrot.slane %v260_v26, %v3201_v8  ;;  %v634_v37 = vsel %vm4617_vm0, %v369_v30, 0.0  ;;  %v137_v19 = vld [vmem:[#allocation11 + $0x1b8] sm:$0xff] }
  0x6c   :  { %488 = vadd.xlane.f32.xlu1 %v487_v52  ;;  %v448_v52 = vsel %vm4617_vm0, %v307_v46, 0.0  ;;  %v414_v43 = vmul.f32 %v3318_v36, %v195_v38  ;;  %v309_v46 = vmul.f32 %v3205_v13, %v90_v41 }
  0x6e   :  { %533 = vadd.xlane.f32.xlu0 %v532_v56  ;;  %v496_v56 = vsel %vm4617_vm0, %v323_v50, 0.0  ;;  %v325_v50 = vmul.f32 %v3210_v18, %v106_v44 }
  0x70   :  { %575 = vadd.xlane.f32.xlu1 %v574_v59  ;;  %v541_v59 = vsel %vm4617_vm0, %v338_v53, 0.0  ;;  %v340_v53 = vmul.f32 %v3222_v32, %v121_v48  ;;  %v502_v55 = vsel %vm4617_vm0, %v325_v50, 0.0 }
  0x72   :  { %578 = vadd.xlane.f32.xlu0 %v577_v63  ;;  %v178_v63 = vld [vmem:[#allocation11 + $0x300] sm:$0xff]  ;;  %v547_v58 = vsel %vm4617_vm0, %v340_v53, 0.0 }
  0x73   :  { %v397_v6 = vmul.f32 %v3295_v62, %v178_v63 }
  0x74   :  { %443 = vadd.xlane.f32.xlu1 %v442_v4  ;;  %v631_v4 = vsel %vm4617_vm0, %v368_v60, 0.0  ;;  %v181_v60 = vld [vmem:[#allocation11 + $0x318] sm:$0xff] }
  0x76   :  { %491 = vadd.xlane.f32.xlu0 %v490_v10  ;;  %v676_v10 = vsel %vm4617_vm0, %v383_v61, 0.0  ;;  %v196_v61 = vld [vmem:[#allocation11 + $0x390] sm:$0xff] }
  0x78   :  { %536 = vadd.xlane.f32.xlu1 %v535_v14  ;;  %v718_v14 = vsel %vm4617_vm0, %v397_v6, 0.0  ;;  %v91_v6 = vld [vmem:[#allocation11 + $0x48] sm:$0xff] }
  0x7a   :  { %581 = vadd.xlane.f32.xlu0 %v580_v17  ;;  %v721_v17 = vsel %vm4617_vm0, %v398_v11, 0.0  ;;  %v107_v11 = vld [vmem:[#allocation11 + $0xc8] sm:$0xff] }
  0x7c   :  { %623 = vadd.xlane.f32.xlu1 %v622_v22  ;;  %v339_v22 = vmul.f32 %v3222_v32, %v120_v16 }
  0x7e   :  { %626 = vadd.xlane.f32.xlu0 %v625_v25  ;;  %v354_v25 = vmul.f32 %v3233_v47, %v135_v20 }
  0x80   :  { %446 = vadd.xlane.f32.xlu1 %v445_v29  ;;  %v544_v29 = vsel %vm4617_vm0, %v339_v22, 0.0  ;;  %v152_v22 = vld [vmem:[#allocation11 + $0x230] sm:$0xff] }
  0x81   :  { %v371_v28 = vmul.f32 %v3253_v7, %v152_v22 }
  0x82   :  { %494 = vadd.xlane.f32.xlu0 %v493_v33  ;;  %v589_v33 = vsel %vm4617_vm0, %v354_v25, 0.0  ;;  %v167_v25 = vld [vmem:[#allocation11 + $0x2a8] sm:$0xff] }
  0x83   :  { %v386_v31 = vmul.f32 %v3274_v35, %v167_v25 }
  0x84   :  { %539 = vadd.xlane.f32.xlu1 %v538_v5  ;;  %v194_v5 = vld [vmem:[#allocation11 + $0x380] sm:$0xff] }
  0x85   :  { %v413_v40 = vmul.f32 %v3318_v36, %v194_v5 }
  0x86   :  { %584 = vadd.xlane.f32.xlu0 %v583_v39  ;;  %v679_v39 = vsel %vm4617_vm0, %v384_v34, 0.0  ;;  %v640_v34 = vsel %vm4617_vm0, %v371_v28, 0.0 }
  0x88   :  { %629 = vadd.xlane.f32.xlu1 %v628_v42  ;;  %v724_v42 = vsel %vm4617_vm0, %v399_v27, 0.0  ;;  %v685_v27 = vsel %vm4617_vm0, %v386_v31, 0.0  ;;  %v94_v31 = vld [vmem:[#allocation11 + $0x60] sm:$0xff] }
  0x8a   :  { %671 = vadd.xlane.f32.xlu0 %v670_v45  ;;  %v766_v45 = vsel %vm4617_vm0, %v413_v40, 0.0 }
  0x8c   :  { %674 = vadd.xlane.f32.xlu1 %v673_v49  ;;  %v769_v49 = vsel %vm4617_vm0, %v414_v43, 0.0 }
  0x8e   :  { %449 = vadd.xlane.f32.xlu0 %v448_v52  ;;  %v454_v52 = vsel %vm4617_vm0, %v309_v46, 0.0 }
  0x90   :  { %497 = vadd.xlane.f32.xlu1 %v496_v56  ;;  %v355_v56 = vmul.f32 %v3233_v47, %v136_v51 }
  0x92   :  { %542 = vadd.xlane.f32.xlu0 %v541_v59  ;;  %v370_v59 = vmul.f32 %v3253_v7, %v151_v54  ;;  %v592_v63 = vsel %vm4617_vm0, %v355_v56, 0.0 }
  0x94   :  { %587 = vadd.xlane.f32.xlu1 %v586_v1  ;;  %v385_v1 = vmul.f32 %v3274_v35, %v166_v57  ;;  %v637_v2 = vsel %vm4617_vm0, %v370_v59, 0.0 }
  0x96   :  { %632 = vadd.xlane.f32.xlu0 %v631_v4  ;;  %v400_v4 = vmul.f32 %v3295_v62, %v181_v60  ;;  %v682_v9 = vsel %vm4617_vm0, %v385_v1, 0.0 }
  0x98   :  { %677 = vadd.xlane.f32.xlu1 %v676_v10  ;;  %v415_v10 = vmul.f32 %v3318_v36, %v196_v61  ;;  %v727_v12 = vsel %vm4617_vm0, %v400_v4, 0.0 }
  0x9a   :  { %719 = vadd.xlane.f32.xlu0 %v718_v14  ;;  %v310_v14 = vmul.f32 %v3205_v13, %v91_v6  ;;  %v772_v16 = vsel %vm4617_vm0, %v415_v10, 0.0 }
  0x9c   :  { %722 = vadd.xlane.f32.xlu1 %v721_v17  ;;  %v326_v17 = vmul.f32 %v3210_v18, %v107_v11  ;;  %v457_v20 = vsel %vm4617_vm0, %v310_v14, 0.0 }
  0x9e   :  { %452 = vadd.xlane.f32.xlu0 %v451_v21  ;;  %v341_v21 = vmul.f32 %v3222_v32, %v122_v15  ;;  %v505_v23 = vsel %vm4617_vm0, %v326_v17, 0.0 }
  0xa0   :  { %500 = vadd.xlane.f32.xlu1 %v499_v24  ;;  %v356_v24 = vmul.f32 %v3233_v47, %v137_v19  ;;  %v550_v26 = vsel %vm4617_vm0, %v341_v21, 0.0  ;;  %v169_v21 = vld [vmem:[#allocation11 + $0x2b8] sm:$0xff] }
  0xa2   :  { %545 = vadd.xlane.f32.xlu0 %v544_v29  ;;  %v182_v29 = vld [vmem:[#allocation11 + $0x320] sm:$0xff]  ;;  %v595_v30 = vsel %vm4617_vm0, %v356_v24, 0.0  ;;  %v184_v24 = vld [vmem:[#allocation11 + $0x330] sm:$0xff] }
  0xa3   :  { %v401_v5 = vmul.f32 %v3295_v62, %v182_v29  ;;  %v199_v29 = vld [vmem:[#allocation11 + $0x3a8] sm:$0xff] }
  0xa4   :  { %590 = vadd.xlane.f32.xlu1 %v589_v33  ;;  %v197_v33 = vld [vmem:[#allocation11 + $0x398] sm:$0xff] }
  0xa5   :  { %v416_v38 = vmul.f32 %v3318_v36, %v197_v33  ;;  %v730_v40 = vsel %vm4617_vm0, %v401_v5, 0.0  ;;  %v418_v5 = vmul.f32 %v3318_v36, %v199_v29  ;;  %v95_v29 = vld [vmem:[#allocation11 + $0x68] sm:$0xff] }
  0xa6   :  { %635 = vadd.xlane.f32.xlu0 %v634_v37  ;;  %v92_v37 = vld [vmem:[#allocation11 + $0x50] sm:$0xff] }
  0xa7   :  { %v311_v41 = vmul.f32 %v3205_v13, %v92_v37  ;;  %v775_v43 = vsel %vm4617_vm0, %v416_v38, 0.0 }
  0xa8   :  { %680 = vadd.xlane.f32.xlu1 %v679_v39  ;;  %v108_v39 = vld [vmem:[#allocation11 + $0xd0] sm:$0xff] }
  0xa9   :  { %v327_v44 = vmul.f32 %v3210_v18, %v108_v39  ;;  %v460_v46 = vsel %vm4617_vm0, %v311_v41, 0.0  ;;  %v110_v39 = vld [vmem:[#allocation11 + $0xe0] sm:$0xff] }
  0xaa   :  { %725 = vadd.xlane.f32.xlu0 %v724_v42  ;;  %v123_v42 = vld [vmem:[#allocation11 + $0x148] sm:$0xff] }
  0xab   :  { %v342_v48 = vmul.f32 %v3222_v32, %v123_v42  ;;  %v508_v50 = vsel %vm4617_vm0, %v327_v44, 0.0  ;;  %v313_v42 = vmul.f32 %v3205_v13, %v94_v31 }
  0xac   :  { %767 = vadd.xlane.f32.xlu1 %v766_v45  ;;  %v138_v45 = vld [vmem:[#allocation11 + $0x1c0] sm:$0xff] }
  0xad   :  { %v357_v51 = vmul.f32 %v3233_v47, %v138_v45  ;;  %v553_v53 = vsel %vm4617_vm0, %v342_v48, 0.0  ;;  %v781_v45 = vsel %vm4617_vm0, %v418_v5, 0.0  ;;  %v111_v5 = vld [vmem:[#allocation11 + $0xe8] sm:$0xff] }
  0xae   :  { %770 = vadd.xlane.f32.xlu0 %v769_v49  ;;  %v153_v49 = vld [vmem:[#allocation11 + $0x238] sm:$0xff] }
  0xaf   :  { %v372_v54 = vmul.f32 %v3253_v7, %v153_v49  ;;  %v598_v56 = vsel %vm4617_vm0, %v357_v51, 0.0 }
  0xb0   :  { %455 = vadd.xlane.f32.xlu1 %v454_v52  ;;  %v168_v52 = vld [vmem:[#allocation11 + $0x2b0] sm:$0xff] }
  0xb1   :  { %v387_v57 = vmul.f32 %v3274_v35, %v168_v52  ;;  %v643_v59 = vsel %vm4617_vm0, %v372_v54, 0.0  ;;  %v140_v52 = vld [vmem:[#allocation11 + $0x1d0] sm:$0xff]  ;;  %v466_v54 = vsel %vm4617_vm0, %v313_v42, 0.0 }
  0xb2   :  { %503 = vadd.xlane.f32.xlu0 %v502_v55  ;;  %v183_v55 = vld [vmem:[#allocation11 + $0x328] sm:$0xff] }
  0xb3   :  { %v402_v60 = vmul.f32 %v3295_v62, %v183_v55  ;;  %v688_v1 = vsel %vm4617_vm0, %v387_v57, 0.0 }
  0xb4   :  { %548 = vadd.xlane.f32.xlu1 %v547_v58  ;;  %v198_v58 = vld [vmem:[#allocation11 + $0x3a0] sm:$0xff] }
  0xb5   :  { %v417_v61 = vmul.f32 %v3318_v36, %v198_v58  ;;  %v733_v4 = vsel %vm4617_vm0, %v402_v60, 0.0 }
  0xb6   :  { %593 = vadd.xlane.f32.xlu0 %v592_v63  ;;  %v93_v63 = vld [vmem:[#allocation11 + $0x58] sm:$0xff] }
  0xb7   :  { %v312_v6 = vmul.f32 %v3205_v13, %v93_v63  ;;  %v778_v10 = vsel %vm4617_vm0, %v417_v61, 0.0 }
  0xb8   :  { %638 = vadd.xlane.f32.xlu1 %v637_v2  ;;  %v109_v2 = vld [vmem:[#allocation11 + $0xd8] sm:$0xff] }
  0xb9   :  { %v328_v11 = vmul.f32 %v3210_v18, %v109_v2  ;;  %v463_v14 = vsel %vm4617_vm0, %v312_v6, 0.0  ;;  %v170_v6 = vld [vmem:[#allocation11 + $0x2c0] sm:$0xff] }
  0xba   :  { %683 = vadd.xlane.f32.xlu0 %v682_v9  ;;  %v124_v9 = vld [vmem:[#allocation11 + $0x150] sm:$0xff] }
  0xbb   :  { %v343_v15 = vmul.f32 %v3222_v32, %v124_v9  ;;  %v511_v17 = vsel %vm4617_vm0, %v328_v11, 0.0 }
  0xbc   :  { %728 = vadd.xlane.f32.xlu1 %v727_v12  ;;  %v139_v12 = vld [vmem:[#allocation11 + $0x1c8] sm:$0xff] }
  0xbd   :  { %v358_v19 = vmul.f32 %v3233_v47, %v139_v12  ;;  %v556_v22 = vsel %vm4617_vm0, %v343_v15, 0.0  ;;  %v185_v15 = vld [vmem:[#allocation11 + $0x338] sm:$0xff] }
  0xbe   :  { %773 = vadd.xlane.f32.xlu0 %v772_v16  ;;  %v154_v16 = vld [vmem:[#allocation11 + $0x240] sm:$0xff] }
  0xbf   :  { %v601_v25 = vsel %vm4617_vm0, %v358_v19, 0.0  ;;  %v389_v19 = vmul.f32 %v3274_v35, %v170_v6 }
  0xc0   :  { %458 = vadd.xlane.f32.xlu1 %v457_v20  ;;  %v3383_v20 = vand.u32 127, %v216_v0  ;;  %v403_v0 = vmul.f32 %v3295_v62, %v184_v24 }
  0xc2   :  { %506 = vadd.xlane.f32.xlu0 %v505_v23  ;;  %4623 = vst [vmem:[#allocation24_spill] sm:$0xff] %v3383_v20  ;;  %v373_v23 = vmul.f32 %v3253_v7, %v154_v16  ;;  %v952_v28 = vadd.s32 4294967288, %v3383_v20  ;;  %v3396_v37 = vsub.s32 %v3383_v20, %v3194_v3  ;;  %v959_v38 = vadd.s32 4294967280, %v3383_v20 }
  0xc3   :  { %v736_v41 = vsel %vm4617_vm0, %v403_v0, 0.0  ;;  %v966_v51 = vadd.s32 4294967272, %v3383_v20  ;;  %v694_v0 = vsel %vm4617_vm0, %v389_v19, 0.0 }
  0xc4   :  { %551 = vadd.xlane.f32.xlu1 %v550_v26  ;;  %v388_v26 = vmul.f32 %v3274_v35, %v169_v21 }
  0xc6   :  { %596 = vadd.xlane.f32.xlu0 %v595_v30  ;;  %v646_v30 = vsel %vm4617_vm0, %v373_v23, 0.0  ;;  %v200_v23 = vld [vmem:[#allocation11 + $0x3b0] sm:$0xff] }
  0xc7   :  { %v419_v31 = vmul.f32 %v3318_v36, %v200_v23 }
  0xc8   :  { %641 = vadd.xlane.f32.xlu1 %v640_v34  ;;  %v691_v34 = vsel %vm4617_vm0, %v388_v26, 0.0  ;;  %v404_v26 = vmul.f32 %v3295_v62, %v185_v15 }
  0xca   :  { %686 = vadd.xlane.f32.xlu0 %v685_v27  ;;  %v3399_v27 = vsub.s32 %v952_v28, %v3194_v3 }
  0xcc   :  { %731 = vadd.xlane.f32.xlu1 %v730_v40 }
  0xce   :  { %776 = vadd.xlane.f32.xlu0 %v775_v43  ;;  %v125_v43 = vld [vmem:[#allocation11 + $0x158] sm:$0xff] }
  0xcf   :  { %v344_v55 = vmul.f32 %v3222_v32, %v125_v43  ;;  %v973_v43 = vadd.s32 4294967264, %v3383_v20 }
  0xd0   :  { %461 = vadd.xlane.f32.xlu1 %v460_v46  ;;  %v329_v46 = vmul.f32 %v3210_v18, %v110_v39  ;;  %v739_v39 = vsel %vm4617_vm0, %v404_v26, 0.0 }
  0xd2   :  { %509 = vadd.xlane.f32.xlu0 %v508_v50  ;;  %v3409_v50 = vsub.s32 %v959_v38, %v3194_v3  ;;  %v514_v63 = vsel %vm4617_vm0, %v329_v46, 0.0  ;;  %v784_v46 = vsel %vm4617_vm0, %v419_v31, 0.0 }
  0xd4   :  { %554 = vadd.xlane.f32.xlu1 %v553_v53 }
  0xd6   :  { %599 = vadd.xlane.f32.xlu0 %v598_v56 }
  0xd8   :  { %644 = vadd.xlane.f32.xlu1 %v643_v59  ;;  %v155_v59 = vld [vmem:[#allocation11 + $0x248] sm:$0xff] }
  0xd9   :  { %v374_v11 = vmul.f32 %v3253_v7, %v155_v59 }
  0xda   :  { %689 = vadd.xlane.f32.xlu0 %v688_v1  ;;  %v359_v1 = vmul.f32 %v3233_v47, %v140_v52  ;;  %v141_v52 = vld [vmem:[#allocation11 + $0x1d8] sm:$0xff] }
  0xdc   :  { %734 = vadd.xlane.f32.xlu1 %v733_v4  ;;  %v3422_v4 = vsub.s32 %v966_v51, %v3194_v3 }
  0xde   :  { %779 = vadd.xlane.f32.xlu0 %v778_v10  ;;  %v559_v10 = vsel %vm4617_vm0, %v344_v55, 0.0 }
  0xe0   :  { %464 = vadd.xlane.f32.xlu1 %v463_v14 }
  0xe2   :  { %512 = vadd.xlane.f32.xlu0 %v511_v17  ;;  %v604_v17 = vsel %vm4617_vm0, %v359_v1, 0.0 }
  0xe4   :  { %557 = vadd.xlane.f32.xlu1 %v556_v22 }
  0xe6   :  { %602 = vadd.xlane.f32.xlu0 %v601_v25  ;;  %v649_v25 = vsel %vm4617_vm0, %v374_v11, 0.0 }
  0xe7   :  { %v432_v33 = vpop.xlane.xlu0 %431 }
  0xe8   :  { %647 = vadd.xlane.f32.xlu1 %v646_v30  ;;  %v951_v48 = vrot.slane %v432_v33, %v3396_v37 }
  0xe9   :  { %v480_v40 = vpop.xlane.xlu1 %479 }
  0xea   :  { %692 = vadd.xlane.f32.xlu0 %v691_v34  ;;  %v1060_v56 = vrot.slane %v480_v40, %v3396_v37  ;;  %v314_v40 = vmul.f32 %v3205_v13, %v95_v29 }
  0xeb   :  { %v435_v44 = vpop.xlane.xlu0 %434 }
  0xec   :  { %v956_v49 = vrot.slane %v435_v44, %v3399_v27  ;;  %737 = vadd.xlane.f32.xlu1 %v736_v41  ;;  %v126_v44 = vld [vmem:[#allocation11 + $0x160] sm:$0xff] }
  0xed   :  { %v483_v53 = vpop.xlane.xlu1 %482  ;;  %v345_v55 = vmul.f32 %v3222_v32, %v126_v44  ;;  %v127_v44 = vld [vmem:[#allocation11 + $0x168] sm:$0xff] }
  0xee   :  { %v958_v57 = vsel %vm957_vm1, %v956_v49, %v951_v48  ;;  %v1064_v58 = vrot.slane %v483_v53, %v3399_v27  ;;  %782 = vadd.xlane.f32.xlu0 %v781_v45  ;;  %v330_v48 = vmul.f32 %v3210_v18, %v111_v5 }
  0xef   :  { %v438_v60 = vpop.xlane.xlu0 %437 }
  0xf0   :  { %v1065_v61 = vsel %vm957_vm1, %v1064_v58, %v1060_v56  ;;  %v963_v2 = vrot.slane %v438_v60, %v3409_v50  ;;  %467 = vadd.xlane.f32.xlu1 %v466_v54  ;;  %v469_v54 = vsel %vm4617_vm0, %v314_v40, 0.0  ;;  %v156_v58 = vld [vmem:[#allocation11 + $0x250] sm:$0xff]  ;;  %v517_v60 = vsel %vm4617_vm0, %v330_v48, 0.0 }
  0xf1   :  { %v486_v9 = vpop.xlane.xlu1 %485 }
  0xf2   :  { %v965_v12 = vsel %vm964_vm2, %v963_v2, %v958_v57  ;;  %v1069_v14 = vrot.slane %v486_v9, %v3409_v50  ;;  %515 = vadd.xlane.f32.xlu0 %v514_v63  ;;  %v3452_v57 = vsub.s32 %v973_v43, %v3194_v3  ;;  %v360_v63 = vmul.f32 %v3233_v47, %v141_v52  ;;  %v171_v2 = vld [vmem:[#allocation11 + $0x2c8] sm:$0xff]  ;;  %v142_v52 = vld [vmem:[#allocation11 + $0x1e0] sm:$0xff] }
  0xf3   :  { %v441_v16 = vpop.xlane.xlu0 %440  ;;  %v562_v9 = vsel %vm4617_vm0, %v345_v55, 0.0  ;;  %v346_v55 = vmul.f32 %v3222_v32, %v127_v44 }
  0xf4   :  { %v1070_v21 = vsel %vm964_vm2, %v1069_v14, %v1065_v61  ;;  %v970_v22 = vrot.slane %v441_v16, %v3422_v4  ;;  %560 = vadd.xlane.f32.xlu1 %v559_v10  ;;  %v375_v10 = vmul.f32 %v3253_v7, %v156_v58  ;;  %v186_v14 = vld [vmem:[#allocation11 + $0x340] sm:$0xff]  ;;  %v607_v16 = vsel %vm4617_vm0, %v360_v63, 0.0 }
  0xf5   :  { %v531_v24 = vpop.xlane.xlu1 %530 }
  0xf6   :  { %v972_v28 = vsel %vm971_vm3, %v970_v22, %v965_v12  ;;  %605 = vadd.xlane.f32.xlu0 %v604_v17  ;;  %v1143_v33 = vrot.slane %v531_v24, %v3399_v27  ;;  %v390_v17 = vmul.f32 %v3274_v35, %v171_v2  ;;  %v201_v22 = vld [vmem:[#allocation11 + $0x3b8] sm:$0xff]  ;;  %v652_v24 = vsel %vm4617_vm0, %v375_v10, 0.0 }
  0xf7   :  { %v528_v30 = vpop.xlane.xlu0 %527  ;;  %v565_v10 = vsel %vm4617_vm0, %v346_v55, 0.0 }
  0xf8   :  { %v1139_v34 = vrot.slane %v528_v30, %v3396_v37  ;;  %650 = vadd.xlane.f32.xlu1 %v649_v25  ;;  %v405_v25 = vmul.f32 %v3295_v62, %v186_v14  ;;  %v980_v30 = vadd.s32 4294967256, %v3383_v20 }
  0xf9   :  { %v489_v38 = vpop.xlane.xlu1 %488 }
  0xfa   :  { %v1144_v41 = vsel %vm957_vm1, %v1143_v33, %v1139_v34  ;;  %v1074_v42 = vrot.slane %v489_v38, %v3422_v4  ;;  %695 = vadd.xlane.f32.xlu0 %v694_v0  ;;  %v96_v0 = vld [vmem:[#allocation11 + $0x70] sm:$0xff]  ;;  %v420_v33 = vmul.f32 %v3318_v36, %v201_v22  ;;  %v742_v40 = vsel %vm4617_vm0, %v405_v25, 0.0 }
  0xfb   :  { %v534_v45 = vpop.xlane.xlu0 %533  ;;  %v112_v38 = vld [vmem:[#allocation11 + $0xf0] sm:$0xff]  ;;  %v3479_v43 = vsub.s32 %v980_v30, %v3194_v3 }
  0xfc   :  { %v1075_v49 = vsel %vm971_vm3, %v1074_v42, %v1070_v21  ;;  %v1148_v51 = vrot.slane %v534_v45, %v3409_v50  ;;  %740 = vadd.xlane.f32.xlu1 %v739_v39  ;;  %v331_v48 = vmul.f32 %v3210_v18, %v112_v38 }
  0xfd   :  { %v576_v53 = vpop.xlane.xlu1 %575 }
  0xfe   :  { %v1149_v56 = vsel %vm964_vm2, %v1148_v51, %v1144_v41  ;;  %785 = vadd.xlane.f32.xlu0 %v784_v46  ;;  %v1218_v1 = vrot.slane %v576_v53, %v3396_v37  ;;  %v315_v41 = vmul.f32 %v3205_v13, %v96_v0  ;;  %v787_v46 = vsel %vm4617_vm0, %v420_v33, 0.0 }
  0xff   :  { %v579_v59 = vpop.xlane.xlu0 %578  ;;  %v520_v63 = vsel %vm4617_vm0, %v331_v48, 0.0 }
 0x100   :  { %v1222_v61 = vrot.slane %v579_v59, %v3399_v27  ;;  %470 = vadd.xlane.f32.xlu1 %v469_v54  ;;  %v472_v54 = vsel %vm4617_vm0, %v315_v41, 0.0  ;;  %v157_v59 = vld [vmem:[#allocation11 + $0x258] sm:$0xff] }
 0x101   :  { %v444_v6 = vpop.xlane.xlu1 %443 }
 0x102   :  { %v1223_v11 = vsel %vm957_vm1, %v1222_v61, %v1218_v1  ;;  %v977_v12 = vrot.slane %v444_v6, %v3452_v57  ;;  %518 = vadd.xlane.f32.xlu0 %v517_v60  ;;  %v361_v1 = vmul.f32 %v3233_v47, %v142_v52  ;;  %v172_v6 = vld [vmem:[#allocation11 + $0x2d0] sm:$0xff] }
 0x103   :  { %v492_v15 = vpop.xlane.xlu0 %491 }
 0x104   :  { %v979_v19 = vsel %vm978_vm4, %v977_v12, %v972_v28  ;;  %v1079_v21 = vrot.slane %v492_v15, %v3452_v57  ;;  %563 = vadd.xlane.f32.xlu1 %v562_v9  ;;  %v697_v28 = vsel %vm4617_vm0, %v390_v17, 0.0  ;;  %v187_v15 = vld [vmem:[#allocation11 + $0x348] sm:$0xff]  ;;  %v610_v17 = vsel %vm4617_vm0, %v361_v1, 0.0 }
 0x105   :  { %v537_v23 = vpop.xlane.xlu1 %536 }
 0x106   :  { %v1080_v26 = vsel %vm978_vm4, %v1079_v21, %v1075_v49  ;;  %v1153_v29 = vrot.slane %v537_v23, %v3422_v4  ;;  %608 = vadd.xlane.f32.xlu0 %v607_v16  ;;  %v987_v23 = vadd.s32 4294967248, %v3383_v20 }
 0x107   :  { %v582_v31 = vpop.xlane.xlu0 %581 }
 0x108   :  { %v1154_v34 = vsel %vm971_vm3, %v1153_v29, %v1149_v56  ;;  %v1227_v5 = vrot.slane %v582_v31, %v3409_v50  ;;  %653 = vadd.xlane.f32.xlu1 %v652_v24  ;;  %v202_v24 = vld [vmem:[#allocation11 + $0x3c0] sm:$0xff]  ;;  %v406_v29 = vmul.f32 %v3295_v62, %v187_v15  ;;  %v97_v31 = vld [vmem:[#allocation11 + $0x78] sm:$0xff] }
 0x109   :  { %v624_v39 = vpop.xlane.xlu1 %623  ;;  %v316_v44 = vmul.f32 %v3205_v13, %v97_v31 }
 0x10a   :  { %v1228_v42 = vsel %vm964_vm2, %v1227_v5, %v1223_v11  ;;  %698 = vadd.xlane.f32.xlu0 %v697_v28  ;;  %v1297_v49 = vrot.slane %v624_v39, %v3396_v37  ;;  %v376_v11 = vmul.f32 %v3253_v7, %v157_v59  ;;  %v3513_v39 = vsub.s32 %v987_v23, %v3194_v3  ;;  %v203_v23 = vld [vmem:[#allocation11 + $0x3c8] sm:$0xff] }
 0x10b   :  { %v627_v45 = vpop.xlane.xlu0 %626  ;;  %v475_v13 = vsel %vm4617_vm0, %v316_v44, 0.0  ;;  %v422_v31 = vmul.f32 %v3318_v36, %v203_v23  ;;  %v174_v44 = vld [vmem:[#allocation11 + $0x2e0] sm:$0xff] }
 0x10c   :  { %v1301_v51 = vrot.slane %v627_v45, %v3399_v27  ;;  %743 = vadd.xlane.f32.xlu1 %v742_v40  ;;  %v113_v40 = vld [vmem:[#allocation11 + $0xf8] sm:$0xff] }
 0x10d   :  { %v447_v53 = vpop.xlane.xlu1 %446 }
 0x10e   :  { %v1302_v56 = vsel %vm957_vm1, %v1301_v51, %v1297_v49  ;;  %v984_v58 = vrot.slane %v447_v53, %v3479_v43  ;;  %788 = vadd.xlane.f32.xlu0 %v787_v46  ;;  %v128_v46 = vld [vmem:[#allocation11 + $0x170] sm:$0xff]  ;;  %v332_v51 = vmul.f32 %v3210_v18, %v113_v40 }
 0x10f   :  { %v495_v60 = vpop.xlane.xlu0 %494 }
 0x110   :  { %v986_v61 = vsel %vm985_vm5, %v984_v58, %v979_v19  ;;  %v1084_v2 = vrot.slane %v495_v60, %v3479_v43  ;;  %473 = vadd.xlane.f32.xlu1 %v472_v54  ;;  %v391_v19 = vmul.f32 %v3274_v35, %v172_v6  ;;  %v143_v54 = vld [vmem:[#allocation11 + $0x1e8] sm:$0xff]  ;;  %v158_v60 = vld [vmem:[#allocation11 + $0x260] sm:$0xff] }
 0x111   :  { %v540_v9 = vpop.xlane.xlu1 %539  ;;  %v362_v1 = vmul.f32 %v3233_v47, %v143_v54  ;;  %v204_v54 = vld [vmem:[#allocation11 + $0x3d0] sm:$0xff] }
 0x112   :  { %v1085_v12 = vsel %vm985_vm5, %v1084_v2, %v1080_v26  ;;  %v1158_v14 = vrot.slane %v540_v9, %v3452_v57  ;;  %521 = vadd.xlane.f32.xlu0 %v520_v63  ;;  %v655_v26 = vsel %vm4617_vm0, %v376_v11, 0.0  ;;  %v700_v33 = vsel %vm4617_vm0, %v391_v19, 0.0  ;;  %v173_v9 = vld [vmem:[#allocation11 + $0x2d8] sm:$0xff] }
 0x113   :  { %v585_v16 = vpop.xlane.xlu0 %584  ;;  %v523_v63 = vsel %vm4617_vm0, %v332_v51, 0.0  ;;  %v377_v11 = vmul.f32 %v3253_v7, %v158_v60  ;;  %v392_v19 = vmul.f32 %v3274_v35, %v173_v9 }
 0x114   :  { %v1159_v21 = vsel %vm978_vm4, %v1158_v14, %v1154_v34  ;;  %v1232_v22 = vrot.slane %v585_v16, %v3422_v4  ;;  %566 = vadd.xlane.f32.xlu1 %v565_v10  ;;  %v421_v34 = vmul.f32 %v3318_v36, %v202_v24  ;;  %v188_v16 = vld [vmem:[#allocation11 + $0x350] sm:$0xff] }
 0x115   :  { %v630_v25 = vpop.xlane.xlu1 %629 }
 0x116   :  { %v1233_v30 = vsel %vm971_vm3, %v1232_v22, %v1228_v42  ;;  %v1306_v0 = vrot.slane %v630_v25, %v3409_v50  ;;  %611 = vadd.xlane.f32.xlu0 %v610_v17  ;;  %v745_v42 = vsel %vm4617_vm0, %v406_v29, 0.0  ;;  %v790_v49 = vsel %vm4617_vm0, %v421_v34, 0.0 }
 0x117   :  { %v672_v28 = vpop.xlane.xlu0 %671  ;;  %v407_v25 = vmul.f32 %v3295_v62, %v188_v16 }
 0x118   :  { %v3509_v5 = vsel %vm964_vm2, %v1306_v0, %v1302_v56  ;;  %v1376_v38 = vrot.slane %v672_v28, %v3396_v37  ;;  %656 = vadd.xlane.f32.xlu1 %v655_v26  ;;  %v347_v56 = vmul.f32 %v3222_v32, %v128_v46  ;;  %v129_v26 = vld [vmem:[#allocation11 + $0x178] sm:$0xff]  ;;  %v703_v0 = vsel %vm4617_vm0, %v392_v19, 0.0  ;;  %v144_v28 = vld [vmem:[#allocation11 + $0x1f0] sm:$0xff] }
 0x119   :  { %4624 = vst [vmem:[#allocation25_spill] sm:$0xff] %v3509_v5  ;;  %v675_v41 = vpop.xlane.xlu1 %674  ;;  %v348_v34 = vmul.f32 %v3222_v32, %v129_v26 }
 0x11a   :  { %v1380_v45 = vrot.slane %v675_v41, %v3399_v27  ;;  %701 = vadd.xlane.f32.xlu0 %v700_v33  ;;  %v748_v33 = vsel %vm4617_vm0, %v407_v25, 0.0  ;;  %v793_v41 = vsel %vm4617_vm0, %v422_v31, 0.0  ;;  %v205_v25 = vld [vmem:[#allocation11 + $0x3d8] sm:$0xff] }
 0x11b   :  { %v450_v48 = vpop.xlane.xlu0 %449  ;;  %v571_v46 = vsel %vm4617_vm0, %v348_v34, 0.0  ;;  %v161_v31 = vld [vmem:[#allocation11 + $0x278] sm:$0xff]  ;;  %v424_v34 = vmul.f32 %v3318_v36, %v205_v25 }
 0x11c   :  { %v3521_v52 = vsel %vm957_vm1, %v1380_v45, %v1376_v38  ;;  %v991_v53 = vrot.slane %v450_v48, %v3513_v39  ;;  %746 = vadd.xlane.f32.xlu1 %v745_v42  ;;  %v159_v38 = vld [vmem:[#allocation11 + $0x268] sm:$0xff]  ;;  %v363_v42 = vmul.f32 %v3233_v47, %v144_v28 }
 0x11d   :  { %4625 = vst [vmem:[#allocation26_spill] sm:$0xff] %v3521_v52  ;;  %v498_v55 = vpop.xlane.xlu1 %497  ;;  %v378_v48 = vmul.f32 %v3253_v7, %v159_v38  ;;  %v176_v38 = vld [vmem:[#allocation11 + $0x2f0] sm:$0xff]  ;;  %v1043_v52 = vadd.s32 4294967184, %v3383_v20 }
 0x11e   :  { %v3527_v58 = vsel %vm992_vm6, %v991_v53, %v986_v61  ;;  %v1089_v59 = vrot.slane %v498_v55, %v3513_v39  ;;  %791 = vadd.xlane.f32.xlu0 %v790_v49  ;;  %v568_v61 = vsel %vm4617_vm0, %v347_v56, 0.0  ;;  %v189_v49 = vld [vmem:[#allocation11 + $0x358] sm:$0xff]  ;;  %v616_v32 = vsel %vm4617_vm0, %v363_v42, 0.0 }
 0x11f   :  { %v543_v18 = vpop.xlane.xlu0 %542  ;;  %v393_v53 = vmul.f32 %v3274_v35, %v174_v44  ;;  %v408_v56 = vmul.f32 %v3295_v62, %v189_v49  ;;  %v380_v44 = vmul.f32 %v3253_v7, %v161_v31  ;;  %v799_v49 = vsel %vm4617_vm0, %v424_v34, 0.0  ;;  %v208_v31 = vld [vmem:[#allocation11 + $0x3f0] sm:$0xff] }
 0x120   :  { %v3533_v2 = vsel %vm992_vm6, %v1089_v59, %v1085_v12  ;;  %v1163_v6 = vrot.slane %v543_v18, %v3479_v43  ;;  %476 = vadd.xlane.f32.xlu1 %v475_v13  ;;  %v613_v12 = vsel %vm4617_vm0, %v362_v1, 0.0  ;;  %v661_v13 = vsel %vm4617_vm0, %v378_v48, 0.0  ;;  %v145_v59 = vld [vmem:[#allocation11 + $0x1f8] sm:$0xff]  ;;  %v160_v1 = vld [vmem:[#allocation11 + $0x270] sm:$0xff] }
 0x121   :  { %v588_v10 = vpop.xlane.xlu1 %587  ;;  %v706_v18 = vsel %vm4617_vm0, %v393_v53, 0.0  ;;  %v751_v9 = vsel %vm4617_vm0, %v408_v56, 0.0  ;;  %v379_v16 = vmul.f32 %v3253_v7, %v160_v1  ;;  %v206_v53 = vld [vmem:[#allocation11 + $0x3e0] sm:$0xff]  ;;  %v192_v1 = vld [vmem:[#allocation11 + $0x370] sm:$0xff] }
 0x122   :  { %v3539_v14 = vsel %vm985_vm5, %v1163_v6, %v1159_v21  ;;  %v1237_v15 = vrot.slane %v588_v10, %v3452_v57  ;;  %524 = vadd.xlane.f32.xlu0 %v523_v63  ;;  %v658_v21 = vsel %vm4617_vm0, %v377_v11, 0.0  ;;  %v423_v63 = vmul.f32 %v3318_v36, %v204_v54 }
 0x123   :  { %v3542_v17 = vpop.xlane.xlu0 %632  ;;  %v364_v10 = vmul.f32 %v3233_v47, %v145_v59  ;;  %v664_v47 = vsel %vm4617_vm0, %v379_v16, 0.0  ;;  %v177_v59 = vld [vmem:[#allocation11 + $0x2f8] sm:$0xff] }
 0x124   :  { %v3547_v22 = vsel %vm978_vm4, %v1237_v15, %v1233_v30  ;;  %569 = vadd.xlane.f32.xlu1 %v568_v61  ;;  %v175_v61 = vld [vmem:[#allocation11 + $0x2e8] sm:$0xff]  ;;  %v796_v15 = vsel %vm4617_vm0, %v423_v63, 0.0  ;;  %v425_v63 = vmul.f32 %v3318_v36, %v206_v53 }
 0x125   :  { %v3549_v24 = vpop.xlane.xlu1 %677  ;;  %v619_v23 = vsel %vm4617_vm0, %v364_v10, 0.0 }
 0x126   :  { %614 = vadd.xlane.f32.xlu0 %v613_v12  ;;  %v190_v12 = vld [vmem:[#allocation11 + $0x360] sm:$0xff] }
 0x127   :  { %v3553_v29 = vpop.xlane.xlu0 %719 }
 0x128   :  { %659 = vadd.xlane.f32.xlu1 %v658_v21  ;;  %v394_v21 = vmul.f32 %v3274_v35, %v175_v61  ;;  %v396_v61 = vmul.f32 %v3274_v35, %v177_v59 }
 0x129   :  { %v3557_v30 = vpop.xlane.xlu1 %722 }
 0x12a   :  { %704 = vadd.xlane.f32.xlu0 %v703_v0  ;;  %v409_v0 = vmul.f32 %v3295_v62, %v190_v12  ;;  %v802_v12 = vsel %vm4617_vm0, %v425_v63, 0.0 }
 0x12b   :  { %v3561_v40 = vpop.xlane.xlu0 %452 }
 0x12c   :  { %749 = vadd.xlane.f32.xlu1 %v748_v33  ;;  %v709_v33 = vsel %vm4617_vm0, %v394_v21, 0.0  ;;  %v754_v42 = vsel %vm4617_vm0, %v409_v0, 0.0  ;;  %v193_v21 = vld [vmem:[#allocation11 + $0x378] sm:$0xff] }
 0x12d   :  { %v3565_v45 = vpop.xlane.xlu1 %500  ;;  %v412_v34 = vmul.f32 %v3295_v62, %v193_v21 }
 0x12e   :  { %794 = vadd.xlane.f32.xlu0 %v793_v41 }
 0x12f   :  { %v3569_v51 = vpop.xlane.xlu0 %545 }
 0x130   :  { %572 = vadd.xlane.f32.xlu1 %v571_v46  ;;  %v191_v46 = vld [vmem:[#allocation11 + $0x368] sm:$0xff] }
 0x131   :  { %v3573_v55 = vpop.xlane.xlu1 %590  ;;  %v410_v56 = vmul.f32 %v3295_v62, %v191_v46  ;;  %v427_v46 = vmul.f32 %v3318_v36, %v208_v31  ;;  %v4611_v31 = vmov 0.0  }
 0x132   :  { %617 = vadd.xlane.f32.xlu0 %v616_v32  ;;  %v395_v32 = vmul.f32 %v3274_v35, %v176_v38  ;;  %v209_v38 = vld [vmem:[#allocation11 + $0x3f8] sm:$0xff]  ;;  %80 = vst.msk [vmem:[#allocation4] sm:$0xff] %vm4617_vm0, %v4611_v31 }
 0x133   :  { %v3577_v60 = vpop.xlane.xlu0 %635  ;;  %v757_v10 = vsel %vm4617_vm0, %v410_v56, 0.0  ;;  %v428_v53 = vmul.f32 %v3318_v36, %v209_v38  ;;  %81 = vst.msk [vmem:[#allocation5] sm:$0xff] %vm4618_vm7, %v4611_v31  ;;  %78 = vst.msk [vmem:[#allocation3] sm:$0xff] %vm4618_vm7, %v4611_v31 }
 0x134   :  { %662 = vadd.xlane.f32.xlu1 %v661_v13  ;;  %v667_v13 = vsel %vm4617_vm0, %v380_v44, 0.0  ;;  %v712_v7 = vsel %vm4617_vm0, %v395_v32, 0.0  ;;  %v763_v32 = vsel %vm4617_vm0, %v412_v34, 0.0 }
 0x135   :  { %v3581_v6 = vpop.xlane.xlu1 %680  ;;  %v811_v59 = vsel %vm4617_vm0, %v428_v53, 0.0 }
 0x136   :  { %4626 = vst [vmem:[#allocation27_spill] sm:$0xff] %v3581_v6  ;;  %707 = vadd.xlane.f32.xlu0 %v706_v18 }
 0x137   :  { %v3585_v11 = vpop.xlane.xlu0 %725 }
 0x138   :  { %4627 = vst [vmem:[#allocation28_spill] sm:$0xff] %v3585_v11  ;;  %752 = vadd.xlane.f32.xlu1 %v751_v9 }
 0x139   :  { %v3589_v19 = vpop.xlane.xlu1 %767 }
 0x13a   :  { %4628 = vst [vmem:[#allocation29_spill] sm:$0xff] %v3589_v19  ;;  %797 = vadd.xlane.f32.xlu0 %v796_v15  ;;  %v207_v15 = vld [vmem:[#allocation11 + $0x3e8] sm:$0xff] }
 0x13b   :  { %v3593_v26 = vpop.xlane.xlu0 %770  ;;  %v426_v0 = vmul.f32 %v3318_v36, %v207_v15 }
 0x13c   :  { %4629 = vst [vmem:[#allocation30_spill] sm:$0xff] %v3593_v26  ;;  %620 = vadd.xlane.f32.xlu1 %v619_v23  ;;  %v411_v23 = vmul.f32 %v3295_v62, %v192_v1  ;;  %v808_v62 = vsel %vm4617_vm0, %v427_v46, 0.0  ;;  %v1036_v26 = vadd.s32 4294967192, %v3383_v20 }
 0x13d   :  { %v3597_v28 = vpop.xlane.xlu1 %455  ;;  %v805_v44 = vsel %vm4617_vm0, %v426_v0, 0.0  ;;  %v3108_v0 = vmov -inf  }
 0x13e   :  { %665 = vadd.xlane.f32.xlu0 %v664_v47  ;;  %v715_v47 = vsel %vm4617_vm0, %v396_v61, 0.0  ;;  %v760_v35 = vsel %vm4617_vm0, %v411_v23, 0.0  ;;  %77 = vst.msk [vmem:[#allocation2] sm:$0xff] %vm4618_vm7, %v3108_v0  ;;  %vm1055_vm0 = vcmask 1048512   ;;  %vm4619_vm7 = vcmask 1041409  }
 0x13f   :  { %v3601_v41 = vpop.xlane.xlu0 %503 }
 0x140   :  { %710 = vadd.xlane.f32.xlu1 %v709_v33 }
 0x141   :  { %v3605_v48 = vpop.xlane.xlu1 %548 }
 0x142   :  { %755 = vadd.xlane.f32.xlu0 %v754_v42 }
 0x143   :  { %v3609_v54 = vpop.xlane.xlu0 %593 }
 0x144   :  { %800 = vadd.xlane.f32.xlu1 %v799_v49 }
 0x145   :  { %v3613_v18 = vpop.xlane.xlu1 %638 }
 0x146   :  { %4630 = vst [vmem:[#allocation31_spill] sm:$0xff] %v3613_v18  ;;  %668 = vadd.xlane.f32.xlu0 %v667_v13 }
 0x147   :  { %v3617_v9 = vpop.xlane.xlu0 %683 }
 0x148   :  { %4631 = vst [vmem:[#allocation32_spill] sm:$0xff] %v3617_v9  ;;  %713 = vadd.xlane.f32.xlu1 %v712_v7 }
 0x149   :  { %v3621_v16 = vpop.xlane.xlu1 %728 }
 0x14a   :  { %4632 = vst [vmem:[#allocation33_spill] sm:$0xff] %v3621_v16  ;;  %758 = vadd.xlane.f32.xlu0 %v757_v10 }
 0x14b   :  { %v3625_v25 = vpop.xlane.xlu0 %773 }
 0x14c   :  { %4633 = vst [vmem:[#allocation34_spill] sm:$0xff] %v3625_v25  ;;  %803 = vadd.xlane.f32.xlu1 %v802_v12 }
 0x14d   :  { %v3629_v33 = vpop.xlane.xlu1 %458 }
 0x14e   :  { %716 = vadd.xlane.f32.xlu0 %v715_v47 }
 0x14f   :  { %v3633_v42 = vpop.xlane.xlu0 %506 }
 0x150   :  { %761 = vadd.xlane.f32.xlu1 %v760_v35 }
 0x151   :  { %v3637_v49 = vpop.xlane.xlu1 %551 }
 0x152   :  { %806 = vadd.xlane.f32.xlu0 %v805_v44 }
 0x153   :  { %v3641_v13 = vpop.xlane.xlu0 %596 }
 0x154   :  { %764 = vadd.xlane.f32.xlu1 %v763_v32 }
 0x155   :  { %v3644_v56 = vpop.xlane.xlu1 %641 }
 0x156   :  { %4634 = vst [vmem:[#allocation35_spill] sm:$0xff] %v3644_v56  ;;  %809 = vadd.xlane.f32.xlu0 %v808_v62  ;;  %v1015_v56 = vadd.s32 4294967216, %v3383_v20 }
 0x157   :  { %v3647_v7 = vpop.xlane.xlu0 %686 }
 0x158   :  { %4635 = vst [vmem:[#allocation36_spill] sm:$0xff] %v3647_v7  ;;  %812 = vadd.xlane.f32.xlu1 %v811_v59 }
 0x159   :  { %v3649_v63 = vpop.xlane.xlu1 %731 }
 0x15a   :  { %4636 = vst [vmem:[#allocation37_spill] sm:$0xff] %v3649_v63 }
 0x15b   :  { %v3651_v1 = vpop.xlane.xlu0 %776 }
 0x15c   :  { %4637 = vst [vmem:[#allocation38_spill] sm:$0xff] %v3651_v1 }
 0x15d   :  { %v3653_v10 = vpop.xlane.xlu1 %461 }
 0x15f   :  { %v3655_v36 = vpop.xlane.xlu0 %509 }
 0x161   :  { %v3657_v61 = vpop.xlane.xlu1 %554 }
 0x163   :  { %v3659_v15 = vpop.xlane.xlu0 %599 }
 0x165   :  { %v3661_v12 = vpop.xlane.xlu1 %644 }
 0x166   :  { %4638 = vst [vmem:[#allocation39_spill] sm:$0xff] %v3661_v12  ;;  %v1008_v12 = vadd.s32 4294967224, %v3383_v20 }
 0x167   :  { %v3663_v23 = vpop.xlane.xlu0 %689 }
 0x168   :  { %4639 = vst [vmem:[#allocation40_spill] sm:$0xff] %v3663_v23  ;;  %v3745_v18 = vsub.s32 %v1008_v12, %v3194_v3 }
 0x169   :  { %v3665_v21 = vpop.xlane.xlu1 %734 }
 0x16a   :  { %4640 = vst [vmem:[#allocation41_spill] sm:$0xff] %v3665_v21 }
 0x16b   :  { %v3667_v47 = vpop.xlane.xlu0 %779 }
 0x16c   :  { %4641 = vst [vmem:[#allocation42_spill] sm:$0xff] %v3667_v47 }
 0x16d   :  { %v3676_v35 = vpop.xlane.xlu1 %464 }
 0x16f   :  { %v3678_v34 = vpop.xlane.xlu0 %512 }
 0x171   :  { %v3680_v38 = vpop.xlane.xlu1 %557 }
 0x173   :  { %v3682_v44 = vpop.xlane.xlu0 %602 }
 0x175   :  { %v3684_v46 = vpop.xlane.xlu1 %647 }
 0x176   :  { %4642 = vst [vmem:[#allocation43_spill] sm:$0xff] %v3684_v46 }
 0x177   :  { %v3686_v32 = vpop.xlane.xlu0 %692 }
 0x178   :  { %4643 = vst [vmem:[#allocation44_spill] sm:$0xff] %v3686_v32 }
 0x179   :  { %v3688_v53 = vpop.xlane.xlu1 %737 }
 0x17a   :  { %4644 = vst [vmem:[#allocation45_spill] sm:$0xff] %v3688_v53 }
 0x17b   :  { %v3690_v62 = vpop.xlane.xlu0 %782 }
 0x17c   :  { %4645 = vst [vmem:[#allocation46_spill] sm:$0xff] %v3690_v62 }
 0x17d   :  { %v3692_v59 = vpop.xlane.xlu1 %467 }
 0x17f   :  { %v3694_v0 = vpop.xlane.xlu0 %515 }
 0x181   :  { %v3696_v31 = vpop.xlane.xlu1 %560 }
 0x183   :  { %v3698_v8 = vpop.xlane.xlu0 %605 }
 0x185   :  { %v3700_v47 = vpop.xlane.xlu1 %650 }
 0x186   :  { %4646 = vst [vmem:[#allocation47_spill] sm:$0xff] %v3700_v47 }
 0x187   :  { %v3702_v21 = vpop.xlane.xlu0 %695 }
 0x188   :  { %4647 = vst [vmem:[#allocation48_spill] sm:$0xff] %v3702_v21 }
 0x189   :  { %v3704_v23 = vpop.xlane.xlu1 %740 }
 0x18a   :  { %4648 = vst [vmem:[#allocation49_spill] sm:$0xff] %v3704_v23  ;;  %v1001_v23 = vadd.s32 4294967232, %v3383_v20 }
 0x18b   :  { %v3706_v1 = vpop.xlane.xlu0 %785 }
 0x18c   :  { %4649 = vst [vmem:[#allocation50_spill] sm:$0xff] %v3706_v1  ;;  %v994_v1 = vadd.s32 4294967240, %v3383_v20 }
 0x18d   :  { %v3708_v32 = vpop.xlane.xlu1 %470 }
 0x18f   :  { %v3710_v53 = vpop.xlane.xlu0 %518 }
 0x191   :  { %v3712_v62 = vpop.xlane.xlu1 %563 }
 0x193   :  { %v3714_v63 = vpop.xlane.xlu0 %608 }
 0x194   :  { %4650 = vst [vmem:[#allocation51_spill] sm:$0xff] %v3714_v63 }
 0x195   :  { %v3716_v7 = vpop.xlane.xlu1 %653 }
 0x196   :  { %4651 = vst [vmem:[#allocation52_spill] sm:$0xff] %v3716_v7  ;;  %v1029_v7 = vadd.s32 4294967200, %v3383_v20 }
 0x197   :  { %v3718_v25 = vpop.xlane.xlu0 %698 }
 0x198   :  { %4652 = vst [vmem:[#allocation53_spill] sm:$0xff] %v3718_v25  ;;  %v3735_v25 = vsub.s32 %v994_v1, %v3194_v3  ;;  %v3749_v1 = vsub.s32 %v1015_v56, %v3194_v3 }
 0x199   :  { %v3720_v16 = vpop.xlane.xlu1 %743 }
 0x19a   :  { %4653 = vst [vmem:[#allocation54_spill] sm:$0xff] %v3720_v16  ;;  %v1022_v16 = vadd.s32 4294967208, %v3383_v20  ;;  %v1094_v12 = vrot.slane %v3565_v45, %v3735_v25  ;;  %v1104_v45 = vrot.slane %v3633_v42, %v3745_v18 }
 0x19b   :  { %v3722_v47 = vpop.xlane.xlu0 %788 }
 0x19c   :  { %4654 = vst [vmem:[#allocation55_spill] sm:$0xff] %v3722_v47  ;;  %v3739_v47 = vsub.s32 %v1001_v23, %v3194_v3  ;;  %v1050_v23 = vadd.s32 4294967176, %v3383_v20  ;;  %v3760_v63 = vsub.s32 %v1022_v16, %v3194_v3  ;;  %v3776_v16 = vsub.s32 %v1036_v26, %v3194_v3 }
 0x19d   :  { %v3724_v21 = vpop.xlane.xlu1 %473  ;;  %v1095_v26 = vsel %vm999_vm8, %v1094_v12, %v3533_v2 }
 0x19e   :  { %v1005_v56 = vrot.slane %v3597_v28, %v3739_v47  ;;  %v1099_v11 = vrot.slane %v3601_v41, %v3739_v47  ;;  %v1019_v28 = vrot.slane %v3653_v10, %v3749_v1  ;;  %v1109_v41 = vrot.slane %v3655_v36, %v3749_v1 }
 0x19f   :  { %v3728_v46 = vpop.xlane.xlu0 %521  ;;  %v1026_v10 = vrot.slane %v3676_v35, %v3760_v63  ;;  %v1114_v36 = vrot.slane %v3678_v34, %v3760_v63  ;;  %v1040_v35 = vrot.slane %v3708_v32, %v3776_v16  ;;  %v1124_v34 = vrot.slane %v3710_v53, %v3776_v16 }
 0x1a0   :  { %v1100_v6 = vsel %vm1006_vm9, %v1099_v11, %v1095_v26 }
 0x1a1   :  { %v3732_v9 = vpop.xlane.xlu1 %566 }
 0x1a3   :  { %v3742_v19 = vpop.xlane.xlu0 %611 }
 0x1a4   :  { %4655 = vst [vmem:[#allocation56_spill] sm:$0xff] %v3742_v19  ;;  %v998_v19 = vrot.slane %v3561_v40, %v3735_v25  ;;  %v1012_v40 = vrot.slane %v3629_v33, %v3745_v18  ;;  %v3788_v33 = vsub.s32 %v1050_v23, %v3194_v3 }
 0x1a5   :  { %v3752_v5 = vpop.xlane.xlu1 %656 }
 0x1a6   :  { %4656 = vst [vmem:[#allocation57_spill] sm:$0xff] %v3752_v5  ;;  %v3767_v5 = vsub.s32 %v1029_v7, %v3194_v3  ;;  %v3783_v7 = vsub.s32 %v1043_v52, %v3194_v3  ;;  %v1000_v42 = vsel %vm999_vm8, %v998_v19, %v3527_v58  ;;  %v1105_v19 = vsel %vm1013_vm10, %v1104_v45, %v1100_v6 }
 0x1a7   :  { %v3769_v20 = vpop.xlane.xlu0 %701  ;;  %v1007_v52 = vsel %vm1006_vm9, %v1005_v56, %v1000_v42  ;;  %v1110_v12 = vsel %vm1020_vm11, %v1109_v41, %v1105_v19  ;;  %v1173_v19 = vrot.slane %v3605_v48, %v3735_v25  ;;  %v1193_v48 = vrot.slane %v3696_v31, %v3760_v63 }
 0x1a8   :  { %4657 = vst [vmem:[#allocation58_spill] sm:$0xff] %v3769_v20  ;;  %v1033_v23 = vrot.slane %v3692_v59, %v3767_v5  ;;  %v1119_v3 = vrot.slane %v3694_v0, %v3767_v5  ;;  %v1014_v2 = vsel %vm1013_vm10, %v1012_v40, %v1007_v52  ;;  %v1047_v59 = vrot.slane %v3724_v21, %v3783_v7 }
 0x1a9   :  { %v3785_v20 = vpop.xlane.xlu1 %746  ;;  %v1021_v11 = vsel %vm1020_vm11, %v1019_v28, %v1014_v2  ;;  %v1129_v0 = vrot.slane %v3728_v46, %v3783_v7  ;;  %v1115_v6 = vsel %vm1027_vm12, %v1114_v36, %v1110_v12 }
 0x1aa   :  { %v1028_v40 = vsel %vm1027_vm12, %v1026_v10, %v1021_v11  ;;  %v1120_v45 = vsel %vm1034_vm13, %v1119_v3, %v1115_v6  ;;  %v1168_v3 = vrot.slane %v3569_v51, %v3513_v39  ;;  %v1183_v11 = vrot.slane %v3657_v61, %v3745_v18 }
 0x1ab   :  { %v3804_v58 = vpop.xlane.xlu0 %791  ;;  %v1035_v53 = vsel %vm1034_vm13, %v1033_v23, %v1028_v40  ;;  %v1125_v21 = vsel %vm1041_vm14, %v1124_v34, %v1120_v45  ;;  %v1188_v51 = vrot.slane %v3680_v38, %v3749_v1 }
 0x1ac   :  { %v1042_v41 = vsel %vm1041_vm14, %v1040_v35, %v1035_v53  ;;  %v1130_v26 = vsel %vm1048_vm15, %v1129_v0, %v1125_v21  ;;  %v1178_v35 = vrot.slane %v3637_v49, %v3739_v47  ;;  %v1169_v12 = vsel %vm992_vm6, %v1168_v3, %v3539_v14 }
 0x1ad   :  { %v477_v56 = vpop.xlane.xlu1 %476  ;;  %v1049_v42 = vsel %vm1048_vm15, %v1047_v59, %v1042_v41  ;;  %v1174_v0 = vsel %vm999_vm8, %v1173_v19, %v1169_v12  ;;  %v1203_v14 = vrot.slane %v3732_v9, %v3776_v16  ;;  %v1247_v9 = vrot.slane %v3609_v54, %v3513_v39 }
 0x1ae   :  { %v1054_v32 = vrot.slane %v477_v56, %v3788_v33  ;;  %v1179_v49 = vsel %vm1006_vm9, %v1178_v35, %v1174_v0  ;;  %v1198_v56 = vrot.slane %v3712_v62, %v3767_v5  ;;  %v1242_v62 = vrot.slane %v3573_v55, %v3479_v43  ;;  %v4661_v0 = vld [vmem:[#allocation25_spill] sm:$0xff] }
 0x1af   :  { %v525_v28 = vpop.xlane.xlu0 %524  ;;  %v1184_v61 = vsel %vm1013_vm10, %v1183_v11, %v1179_v49  ;;  %v1385_v55 = vrot.slane %v3549_v24, %v3409_v50  ;;  %v1455_v3 = vrot.slane %v3553_v29, %v3396_v37  ;;  %v1316_v24 = vrot.slane %v3577_v60, %v3452_v57  ;;  %v4658_v29 = vld [vmem:[#allocation27_spill] sm:$0xff] }
 0x1b0   :  { %v1134_v46 = vrot.slane %v525_v28, %v3788_v33  ;;  %v1056_v36 = vsel %vm1055_vm0, %v1054_v32, %v1049_v42  ;;  %v1189_v38 = vsel %vm1020_vm11, %v1188_v51, %v1184_v61  ;;  %v1252_v42 = vrot.slane %v3641_v13, %v3735_v25  ;;  %v4663_v61 = vld [vmem:[#allocation26_spill] sm:$0xff] }
 0x1b1   :  { %v570_v10 = vpop.xlane.xlu1 %569  ;;  %v1194_v31 = vsel %vm1027_vm12, %v1193_v48, %v1189_v38  ;;  %v1459_v13 = vrot.slane %v3557_v30, %v3399_v27  ;;  %v1243_v19 = vsel %vm985_vm5, %v1242_v62, %v3547_v22  ;;  %v1390_v11 = vrot.slane %v4658_v29, %v3422_v4  ;;  %v4659_v30 = vld [vmem:[#allocation28_spill] sm:$0xff]  ;;  %v4665_v62 = vld [vmem:[#allocation31_spill] sm:$0xff] }
 0x1b2   :  { %v1135_v52 = vsel %vm1055_vm0, %v1134_v46, %v1130_v26  ;;  %v1208_v6 = vrot.slane %v570_v10, %v3783_v7  ;;  %v1199_v53 = vsel %vm1034_vm13, %v1198_v56, %v1194_v31  ;;  %v1311_v10 = vrot.slane %v3542_v17, %v3422_v4 }
 0x1b3   :  { %v1611_v23 = vsel %vm4619_vm7, %v1135_v52, %v1056_v36  ;;  %v3833_v2 = vpop.xlane.xlu0 %614  ;;  %v1204_v28 = vsel %vm1041_vm14, %v1203_v14, %v1199_v53  ;;  %vm4620_vm7 = vcmask 1042434   ;;  %v1257_v36 = vrot.slane %v3659_v15, %v3739_v47  ;;  %v4664_v53 = vld [vmem:[#allocation30_spill] sm:$0xff] }
 0x1b4   :  { %v1209_v21 = vsel %vm1048_vm15, %v1208_v6, %v1204_v28  ;;  %v1262_v17 = vrot.slane %v3682_v44, %v3745_v18  ;;  %v1248_v15 = vsel %vm992_vm6, %v1247_v9, %v1243_v19  ;;  %v1464_v12 = vrot.slane %v4659_v30, %v3409_v50  ;;  %v4660_v44 = vld [vmem:[#allocation51_spill] sm:$0xff] }
 0x1b5   :  { %v3839_v34 = vpop.xlane.xlu1 %659  ;;  %v1253_v22 = vsel %vm999_vm8, %v1252_v42, %v1248_v15  ;;  %v1272_v51 = vrot.slane %v4660_v44, %v3760_v63  ;;  %v1312_v60 = vsel %vm971_vm3, %v1311_v10, %v4661_v0  ;;  %v1386_v14 = vsel %vm964_vm2, %v1385_v55, %v4663_v61  ;;  %v4666_v55 = vld [vmem:[#allocation29_spill] sm:$0xff]  ;;  %v4670_v30 = vld [vmem:[#allocation43_spill] sm:$0xff] }
 0x1b6   :  { %v1258_v48 = vsel %vm1006_vm9, %v1257_v36, %v1253_v22  ;;  %v1460_v38 = vsel %vm957_vm1, %v1459_v13, %v1455_v3  ;;  %v1282_v31 = vrot.slane %v3833_v2, %v3776_v16  ;;  %v1321_v28 = vrot.slane %v4665_v62, %v3479_v43  ;;  %v4667_v36 = vld [vmem:[#allocation32_spill] sm:$0xff]  ;;  %v4668_v13 = vld [vmem:[#allocation35_spill] sm:$0xff] }
 0x1b7   :  { %v3847_v59 = vpop.xlane.xlu0 %704  ;;  %v1263_v6 = vsel %vm1013_vm10, %v1262_v17, %v1258_v48  ;;  %v1317_v42 = vsel %vm978_vm4, %v1316_v24, %v1312_v60  ;;  %v1465_v10 = vsel %vm964_vm2, %v1464_v12, %v1460_v38  ;;  %v1395_v3 = vrot.slane %v4667_v36, %v3452_v57  ;;  %v4669_v24 = vld [vmem:[#allocation39_spill] sm:$0xff]  ;;  %v4672_v60 = vld [vmem:[#allocation34_spill] sm:$0xff]  ;;  %v4675_v62 = vld [vmem:[#allocation36_spill] sm:$0xff] }
 0x1b8   :  { %v1326_v19 = vrot.slane %v4668_v13, %v3513_v39  ;;  %v1331_v15 = vrot.slane %v4669_v24, %v3735_v25  ;;  %v1336_v12 = vrot.slane %v4670_v30, %v3739_v47  ;;  %v1543_v48 = vrot.slane %v4672_v60, %v3409_v50  ;;  %v4676_v50 = vld [vmem:[#allocation37_spill] sm:$0xff] }
 0x1b9   :  { %v3855_v40 = vpop.xlane.xlu1 %749 }
 0x1bb   :  { %v3862_v32 = vpop.xlane.xlu0 %794 }
 0x1bd   :  { %v573_v45 = vpop.xlane.xlu1 %572 }
 0x1be   :  { %v1213_v41 = vrot.slane %v573_v45, %v3788_v33  ;;  %v1538_v45 = vrot.slane %v4664_v53, %v3399_v27  ;;  %v1534_v27 = vrot.slane %v4666_v55, %v3396_v37  ;;  %v1322_v37 = vsel %vm985_vm5, %v1321_v28, %v1317_v42  ;;  %v4677_v42 = vld [vmem:[#allocation57_spill] sm:$0xff] }
 0x1bf   :  { %v618_v46 = vpop.xlane.xlu0 %617  ;;  %v1327_v38 = vsel %vm992_vm6, %v1326_v19, %v1322_v37  ;;  %v1400_v28 = vrot.slane %v4675_v62, %v3479_v43 }
 0x1c0   :  { %v1214_v26 = vsel %vm1055_vm0, %v1213_v41, %v1209_v21  ;;  %v1287_v9 = vrot.slane %v618_v46, %v3783_v7 }
 0x1c1   :  { %v1613_v52 = vsel %vm4620_vm7, %v1214_v26, %v1611_v23  ;;  %v3883_v54 = vpop.xlane.xlu1 %662  ;;  %v1267_v23 = vrot.slane %v3698_v8, %v3749_v1  ;;  %v4662_v8 = vld [vmem:[#allocation56_spill] sm:$0xff]  ;;  %v1391_v26 = vsel %vm971_vm3, %v1390_v11, %v1386_v14  ;;  %vm1614_vm7 = vcmask 1043459  }
 0x1c2   :  { %v1277_v49 = vrot.slane %v4662_v8, %v3767_v5  ;;  %v1539_v11 = vsel %vm957_vm1, %v1538_v45, %v1534_v27  ;;  %v4673_v8 = vld [vmem:[#allocation47_spill] sm:$0xff]  ;;  %v1396_v14 = vsel %vm978_vm4, %v1395_v3, %v1391_v26  ;;  %v1351_v26 = vrot.slane %v4677_v42, %v3760_v63  ;;  %v4679_v27 = vld [vmem:[#allocation40_spill] sm:$0xff] }
 0x1c3   :  { %v3898_v35 = vpop.xlane.xlu0 %707  ;;  %v1268_v41 = vsel %vm1020_vm11, %v1267_v23, %v1263_v6  ;;  %v4674_v6 = vld [vmem:[#allocation52_spill] sm:$0xff]  ;;  %v1405_v36 = vrot.slane %v4679_v27, %v3513_v39  ;;  %v1356_v3 = vrot.slane %v3839_v34, %v3767_v5  ;;  %v1361_v24 = vrot.slane %v3883_v54, %v3776_v16  ;;  %v4688_v27 = vld [vmem:[#allocation49_spill] sm:$0xff] }
 0x1c4   :  { %v1273_v2 = vsel %vm1027_vm12, %v1272_v51, %v1268_v41  ;;  %v4671_v51 = vld [vmem:[#allocation33_spill] sm:$0xff]  ;;  %v1474_v41 = vrot.slane %v4676_v50, %v3452_v57  ;;  %vm1616_vm1 = vcmask 1044484   ;;  %v1401_v34 = vsel %vm985_vm5, %v1400_v28, %v1396_v14  ;;  %v4686_v28 = vld [vmem:[#allocation58_spill] sm:$0xff] }
 0x1c5   :  { %v3912_v56 = vpop.xlane.xlu1 %752  ;;  %v1278_v46 = vsel %vm1034_vm13, %v1277_v49, %v1273_v2  ;;  %v1469_v0 = vrot.slane %v4671_v51, %v3422_v4  ;;  %v1341_v49 = vrot.slane %v4673_v8, %v3745_v18  ;;  %v4678_v2 = vld [vmem:[#allocation38_spill] sm:$0xff]  ;;  %v4682_v51 = vld [vmem:[#allocation41_spill] sm:$0xff]  ;;  %v1425_v50 = vrot.slane %v4686_v28, %v3749_v1 }
 0x1c6   :  { %v1283_v23 = vsel %vm1041_vm14, %v1282_v31, %v1278_v46  ;;  %v1346_v31 = vrot.slane %v4674_v6, %v3749_v1  ;;  %v1548_v55 = vrot.slane %v4678_v2, %v3422_v4  ;;  %v1544_v46 = vsel %vm964_vm2, %v1543_v48, %v1539_v11  ;;  %v4680_v4 = vld [vmem:[#allocation44_spill] sm:$0xff]  ;;  %v4683_v48 = vld [vmem:[#allocation42_spill] sm:$0xff] }
 0x1c7   :  { %v3926_v21 = vpop.xlane.xlu0 %797  ;;  %v1288_v22 = vsel %vm1048_vm15, %v1287_v9, %v1283_v23  ;;  %v1332_v9 = vsel %vm999_vm8, %v1331_v15, %v1327_v38  ;;  %v1470_v19 = vsel %vm971_vm3, %v1469_v0, %v1465_v10  ;;  %v1410_v15 = vrot.slane %v4680_v4, %v3735_v25  ;;  %v4681_v11 = vld [vmem:[#allocation48_spill] sm:$0xff] }
 0x1c8   :  { %v1475_v10 = vsel %vm978_vm4, %v1474_v41, %v1470_v19  ;;  %v1415_v30 = vrot.slane %v4681_v11, %v3739_v47  ;;  %v1549_v54 = vsel %vm971_vm3, %v1548_v55, %v1544_v46  ;;  %v1479_v0 = vrot.slane %v4682_v51, %v3479_v43 }
 0x1c9   :  { %v621_v17 = vpop.xlane.xlu1 %620  ;;  %v1553_v8 = vrot.slane %v4683_v48, %v3452_v57  ;;  %v4687_v57 = vld [vmem:[#allocation46_spill] sm:$0xff]  ;;  %v1430_v2 = vrot.slane %v3847_v59, %v3760_v63  ;;  %v1435_v19 = vrot.slane %v3898_v35, %v3767_v5  ;;  %vm1618_vm2 = vcmask 1045509  }
 0x1ca   :  { %v1292_v29 = vrot.slane %v621_v17, %v3788_v33  ;;  %v1558_v42 = vrot.slane %v4687_v57, %v3479_v43  ;;  %v1480_v43 = vsel %vm985_vm5, %v1479_v0, %v1475_v10  ;;  %v4691_v10 = vld [vmem:[#allocation55_spill] sm:$0xff]  ;;  %v1573_v0 = vrot.slane %v3804_v58, %v3739_v47 }
 0x1cb   :  { %v666_v44 = vpop.xlane.xlu0 %665  ;;  %v1554_v4 = vsel %vm978_vm4, %v1553_v8, %v1549_v54  ;;  %v1568_v11 = vrot.slane %v4691_v10, %v3735_v25  ;;  %v1499_v54 = vrot.slane %v3785_v20, %v3745_v18  ;;  %v1578_v8 = vrot.slane %v3862_v32, %v3745_v18  ;;  %v4695_v10 = vld [vmem:[#allocation23_spill] sm:$0xff] }
 0x1cc   :  { %v1293_v61 = vsel %vm1055_vm0, %v1292_v29, %v1288_v22  ;;  %v1366_v29 = vrot.slane %v666_v44, %v3783_v7  ;;  %v1406_v22 = vsel %vm992_vm6, %v1405_v36, %v1401_v34  ;;  %v1489_v36 = vrot.slane %v4688_v27, %v3735_v25 }
 0x1cd   :  { %v1615_v53 = vsel %vm1614_vm7, %v1293_v61, %v1613_v52  ;;  %v3960_v45 = vpop.xlane.xlu1 %710  ;;  %v1337_v52 = vsel %vm1006_vm9, %v1336_v12, %v1332_v9  ;;  %v1411_v6 = vsel %vm999_vm8, %v1410_v15, %v1406_v22  ;;  %v4690_v15 = vld [vmem:[#allocation54_spill] sm:$0xff]  ;;  %v1559_v34 = vsel %vm985_vm5, %v1558_v42, %v1554_v4 }
 0x1ce   :  { %v1342_v17 = vsel %vm1013_vm10, %v1341_v49, %v1337_v52  ;;  %v4684_v49 = vld [vmem:[#allocation53_spill] sm:$0xff]  ;;  %v4689_v52 = vld [vmem:[#allocation50_spill] sm:$0xff]  ;;  %v1440_v59 = vrot.slane %v3960_v45, %v3776_v16  ;;  %v1509_v20 = vrot.slane %v3912_v56, %v3760_v63  ;;  %v1583_v58 = vrot.slane %v3926_v21, %v3749_v1 }
 0x1cf   :  { %v3976_v13 = vpop.xlane.xlu0 %755  ;;  %v1347_v23 = vsel %vm1020_vm11, %v1346_v31, %v1342_v17  ;;  %v1420_v61 = vrot.slane %v4684_v49, %v3745_v18  ;;  %v4685_v31 = vld [vmem:[#allocation45_spill] sm:$0xff]  ;;  %vm1620_vm3 = vcmask 1046534   ;;  %vm1622_vm4 = vcmask 1047559  }
 0x1d0   :  { %v1352_v12 = vsel %vm1027_vm12, %v1351_v26, %v1347_v23  ;;  %v1484_v62 = vrot.slane %v4685_v31, %v3513_v39  ;;  %v1416_v26 = vsel %vm1006_vm9, %v1415_v30, %v1411_v6  ;;  %v1494_v23 = vrot.slane %v4690_v15, %v3739_v47 }
 0x1d1   :  { %v3987_v37 = vpop.xlane.xlu1 %800  ;;  %v1357_v44 = vsel %vm1034_vm13, %v1356_v3, %v1352_v12  ;;  %v1563_v3 = vrot.slane %v4689_v52, %v3513_v39 }
 0x1d2   :  { %v1362_v14 = vsel %vm1041_vm14, %v1361_v24, %v1357_v44  ;;  %v1421_v24 = vsel %vm1013_vm10, %v1420_v61, %v1416_v26  ;;  %v1504_v44 = vrot.slane %v3855_v40, %v3749_v1  ;;  %v1514_v40 = vrot.slane %v3976_v13, %v3767_v5 }
 0x1d3   :  { %v669_v60 = vpop.xlane.xlu0 %668  ;;  %v1367_v41 = vsel %vm1048_vm15, %v1366_v29, %v1362_v14  ;;  %v1426_v39 = vsel %vm1020_vm11, %v1425_v50, %v1421_v24  ;;  %v1564_v12 = vsel %vm992_vm6, %v1563_v3, %v1559_v34  ;;  %v1588_v18 = vrot.slane %v3987_v37, %v3760_v63 }
 0x1d4   :  { %v1371_v38 = vrot.slane %v669_v60, %v3788_v33  ;;  %v1431_v45 = vsel %vm1027_vm12, %v1430_v2, %v1426_v39  ;;  %v1569_v47 = vsel %vm999_vm8, %v1568_v11, %v1564_v12  ;;  %v3110_v24 = vmov 0  }
 0x1d5   :  { %v714_v9 = vpop.xlane.xlu1 %713  ;;  %v1436_v22 = vsel %vm1034_vm13, %v1435_v19, %v1431_v45  ;;  %v1574_v31 = vsel %vm1006_vm9, %v1573_v0, %v1569_v47  ;;  %v4692_v19 = vld [vmem:[#allocation24_spill] sm:$0xff]  ;;  %2818 = vset.pattern.permute.xlu1 %v3110_v24  ;;  %2819 = vset.pattern.permute.xlu0 %v3110_v24  ;;  %v4696_v45 = vld [vmem:[#allocation22_spill] sm:$0xff] }
 0x1d6   :  { %v1372_v55 = vsel %vm1055_vm0, %v1371_v38, %v1367_v41  ;;  %v1445_v35 = vrot.slane %v714_v9, %v3783_v7  ;;  %v1441_v25 = vsel %vm1041_vm14, %v1440_v59, %v1436_v22  ;;  %v1579_v13 = vsel %vm1013_vm10, %v1578_v8, %v1574_v31  ;;  %v4089_v59 = vld [vmem:[#allocation2] sm:$0xff] }
 0x1d7   :  { %v1617_v46 = vsel %vm1616_vm1, %v1372_v55, %v1615_v53  ;;  %v759_v17 = vpop.xlane.xlu0 %758  ;;  %v1485_v53 = vsel %vm992_vm6, %v1484_v62, %v1480_v43  ;;  %v1584_v37 = vsel %vm1020_vm11, %v1583_v58, %v1579_v13  ;;  %vm819_vm5 = vcmp.lt.s32.totalorder %v4692_v19, 8 }
 0x1d8   :  { %v1490_v30 = vsel %vm999_vm8, %v1489_v36, %v1485_v53  ;;  %v1446_v49 = vsel %vm1048_vm15, %v1445_v35, %v1441_v25  ;;  %v1519_v32 = vrot.slane %v759_v17, %v3776_v16  ;;  %v1589_v57 = vsel %vm1027_vm12, %v1588_v18, %v1584_v37 }
 0x1d9   :  { %v804_v29 = vpop.xlane.xlu1 %803  ;;  %v1495_v48 = vsel %vm1006_vm9, %v1494_v23, %v1490_v30  ;;  %vm2639_vm6 = vcmp.eq.s32.totalorder %v4692_v19, 0  ;;  %v1724_v30 = vsub.s32 1, %v4696_v45  ;;  %v2059_v8 = vsub.s32 6, %v4696_v45 }
 0x1da   :  { %v1500_v38 = vsel %vm1013_vm10, %v1499_v54, %v1495_v48  ;;  %v1593_v1 = vrot.slane %v804_v29, %v3767_v5  ;;  %v1791_v54 = vsub.s32 2, %v4696_v45  ;;  %vm4698_vm10 = vcmask 261120  }
 0x1db   :  { %v717_v51 = vpop.xlane.xlu0 %716  ;;  %v1505_v62 = vsel %vm1020_vm11, %v1504_v44, %v1500_v38  ;;  %v1925_v44 = vsub.s32 4, %v4696_v45  ;;  %vm4699_vm11 = vmmov %vm4698_vm10 }
 0x1dc   :  { %v1450_v60 = vrot.slane %v717_v51, %v3788_v33  ;;  %v1510_v28 = vsel %vm1027_vm12, %v1509_v20, %v1505_v62  ;;  %v1594_v26 = vsel %vm1034_vm13, %v1593_v1, %v1589_v57  ;;  %v1858_v51 = vsub.s32 3, %v4696_v45  ;;  %vm4700_vm12 = vmmov %vm4698_vm10 }
 0x1dd   :  { %v762_v61 = vpop.xlane.xlu1 %761  ;;  %v1515_v41 = vsel %vm1034_vm13, %v1514_v40, %v1510_v28  ;;  %vm4701_vm13 = vmmov %vm4698_vm10 }
 0x1de   :  { %v1451_v14 = vsel %vm1055_vm0, %v1450_v60, %v1446_v49  ;;  %v1524_v21 = vrot.slane %v762_v61, %v3783_v7  ;;  %v1520_v42 = vsel %vm1041_vm14, %v1519_v32, %v1515_v41  ;;  %v1992_v60 = vsub.s32 5, %v4696_v45 }
 0x1df   :  { %v807_v56 = vpop.xlane.xlu0 %806  ;;  %v1619_v6 = vsel %vm1618_vm2, %v1451_v14, %v1617_v46  ;;  %v2126_v49 = vsub.s32 7, %v4696_v45 }
 0x1e0   :  { %v1598_v50 = vrot.slane %v807_v56, %v3776_v16  ;;  %v1525_v2 = vsel %vm1048_vm15, %v1524_v21, %v1520_v42 }
 0x1e1   :  { %v765_v63 = vpop.xlane.xlu1 %764 }
 0x1e2   :  { %v1529_v9 = vrot.slane %v765_v63, %v3788_v33  ;;  %v1599_v16 = vsel %vm1041_vm14, %v1598_v50, %v1594_v26  ;;  %vm4702_vm14 = vmmov %vm4698_vm10 }
 0x1e3   :  { %v810_v5 = vpop.xlane.xlu0 %809 }
 0x1e4   :  { %v1603_v55 = vrot.slane %v810_v5, %v3783_v7  ;;  %v1530_v27 = vsel %vm1055_vm0, %v1529_v9, %v1525_v2 }
 0x1e5   :  { %v813_v36 = vpop.xlane.xlu1 %812  ;;  %v1621_v17 = vsel %vm1620_vm3, %v1530_v27, %v1619_v6  ;;  %v1641_v6 = vld [vmem:[#allocation3] sm:$0xff] }
 0x1e6   :  { %v1604_v52 = vsel %vm1048_vm15, %v1603_v55, %v1599_v16  ;;  %v1608_v3 = vrot.slane %v813_v36, %v3788_v33  ;;  %v2640_v33 = vld [vmem:[#allocation5] sm:$0xff]  ;;  %vm4703_vm15 = vmmov %vm4698_vm10 }
 0x1e8   :  { %v1609_v46 = vsel %vm1055_vm0, %v1608_v3, %v1604_v52  ;;  %vm4693_vm0 = vcmask 7168  }
 0x1e9   :  { %v1623_v43 = vsel %vm1622_vm4, %v1609_v46, %v1621_v17  ;;  %vm4694_vm8 = vmmov %vm4693_vm0 }
 0x1ea   :  { %v1625_v7 = vsel %vm819_vm5, %v1623_v43, -inf  ;;  %vm4697_vm9 = vmmov %vm4693_vm0 }
 0x1eb   :  { %1627 = vmax.xlane.f32.xlu0 %v1625_v7  ;;  %vm4704_vm5 = vmmov %vm4698_vm10 }
 0x278   :  { %v1628_v4 = vpop.xlane.xlu0 %1627 }
 0x279   :  { %v4093_v15 = vmax.f32 %v4089_v59, %v1628_v4  ;;  %v2831_v4 = vld [vmem:[#allocation11 + $0x108] sm:$0xff] }
 0x27b   :  { %v1630_v23 = vsub.f32 %v4089_v59, %v4093_v15  ;;  %2633 = vst.msk [vmem:[#allocation2] sm:$0xff] %vm4693_vm0, %v4093_v15  ;;  %v2641_v39 = vsel %vm2639_vm6, %v4093_v15, %v2640_v33  ;;  %1635 = vperm.xlu1 %2818, %v4093_v15   ;;  %v2832_v15 = vld [vmem:[#allocation11 + $0x288] sm:$0xff]  ;;  %vm4705_vm6 = vmmov %vm4704_vm5 }
 0x27c   :  { %2642 = vst.msk [vmem:[#allocation5] sm:$0xff] %vm4694_vm8, %v2641_v39  ;;  %vm4706_vm0 = vmmov %vm4704_vm5 }
 0x27d   :  { %v1631_v40 = vmul.f32 1.442695, %v1630_v23  ;;  %vm4707_vm8 = vmmov %vm4706_vm0 }
 0x2fa   :  { %v1636_v35 = vpop.permute.xlu1 %1635 }
 0x2fb   :  { %v1638_v29 = vsub.f32 %v1625_v7, %v1636_v35  ;;  %v2833_v35 = vld [vmem:[#allocation11 + $0x88] sm:$0xff] }
 0x2fd   :  { %v1639_v53 = vmul.f32 1.442695, %v1638_v29 }
 0x2ff   :  { %2821 = vpow2.f32 %v1639_v53  ;;  %v2834_v53 = vld [vmem:[#allocation11 + $0x100] sm:$0xff] }
 0x300   :  { %2823 = vpow2.f32 %v1631_v40 }
 0x309   :  { %v2822_v34 = vpop.eup %2821 }
 0x30a   :  { %2637 = vst [vmem:[#allocation15] sm:$0xff] %v2822_v34  ;;  %1643 = vadd.xlane.f32.xlu0 %v2822_v34  ;;  %v4103_v11 = vrot.slane %v2822_v34, %v4695_v10  ;;  %v4107_v12 = vrot.slane %v2822_v34, %v1724_v30  ;;  %v4112_v22 = vrot.slane %v2822_v34, %v1791_v54  ;;  %v4204_v56 = vpop.eup %2823  ;;  %v2835_v10 = vld [vmem:[#allocation11 + $0x280] sm:$0xff]  ;;  %v2836_v30 = vld [vmem:[#allocation11 + $0x290] sm:$0xff] }
 0x30b   :  { %v4117_v0 = vrot.slane %v2822_v34, %v1858_v51  ;;  %v4124_v25 = vrot.slane %v2822_v34, %v1925_v44  ;;  %v4131_v48 = vrot.slane %v2822_v34, %v1992_v60  ;;  %v4138_v20 = vrot.slane %v2822_v34, %v2059_v8  ;;  %v2837_v44 = vld [vmem:[#allocation11 + $0x80] sm:$0xff] }
 0x30c   :  { %1664 = vbcast.lane.b32.xlu1 %v4103_v11, 264  ;;  %v4147_v61 = vrot.slane %v2822_v34, %v2126_v49  ;;  %v1642_v62 = vmul.f32 %v4204_v56, %v1641_v6  ;;  %v2838_v49 = vld [vmem:[#allocation11 + $0x90] sm:$0xff] }
 0x310   :  { %1727 = vbcast.lane.b32.xlu1 %v4107_v12, 256 }
 0x314   :  { %1731 = vbcast.lane.b32.xlu1 %v4107_v12, 264 }
 0x318   :  { %1794 = vbcast.lane.b32.xlu1 %v4112_v22, 256 }
 0x31c   :  { %1668 = vbcast.lane.b32.xlu1 %v4103_v11, 272 }
 0x320   :  { %1861 = vbcast.lane.b32.xlu1 %v4117_v0, 256  ;;  %1660 = vbcast.lane.b32.xlu0 %v4103_v11, 256 }
 0x324   :  { %1802 = vbcast.lane.b32.xlu1 %v4112_v22, 272  ;;  %1798 = vbcast.lane.b32.xlu0 %v4112_v22, 264 }
 0x328   :  { %1932 = vbcast.lane.b32.xlu1 %v4124_v25, 264  ;;  %1735 = vbcast.lane.b32.xlu0 %v4107_v12, 272 }
 0x32c   :  { %1739 = vbcast.lane.b32.xlu1 %v4107_v12, 280  ;;  %1865 = vbcast.lane.b32.xlu0 %v4117_v0, 264 }
 0x330   :  { %1995 = vbcast.lane.b32.xlu1 %v4131_v48, 256  ;;  %1928 = vbcast.lane.b32.xlu0 %v4124_v25, 256 }
 0x334   :  { %1806 = vbcast.lane.b32.xlu1 %v4112_v22, 280  ;;  %1672 = vbcast.lane.b32.xlu0 %v4103_v11, 280 }
 0x338   :  { %2062 = vbcast.lane.b32.xlu1 %v4138_v20, 256  ;;  %1869 = vbcast.lane.b32.xlu0 %v4117_v0, 272 }
 0x33c   :  { %1676 = vbcast.lane.b32.xlu1 %v4103_v11, 288  ;;  %1999 = vbcast.lane.b32.xlu0 %v4131_v48, 264 }
 0x340   :  { %1873 = vbcast.lane.b32.xlu1 %v4117_v0, 280  ;;  %1936 = vbcast.lane.b32.xlu0 %v4124_v25, 272 }
 0x344   :  { %2129 = vbcast.lane.b32.xlu1 %v4147_v61, 256  ;;  %2066 = vbcast.lane.b32.xlu0 %v4138_v20, 264 }
 0x348   :  { %1810 = vbcast.lane.b32.xlu1 %v4112_v22, 288  ;;  %1743 = vbcast.lane.b32.xlu0 %v4107_v12, 288 }
 0x34c   :  { %2070 = vbcast.lane.b32.xlu1 %v4138_v20, 272  ;;  %2003 = vbcast.lane.b32.xlu0 %v4131_v48, 272 }
 0x350   :  { %1747 = vbcast.lane.b32.xlu1 %v4107_v12, 296  ;;  %2133 = vbcast.lane.b32.xlu0 %v4147_v61, 264 }
 0x354   :  { %2007 = vbcast.lane.b32.xlu1 %v4131_v48, 280  ;;  %1940 = vbcast.lane.b32.xlu0 %v4124_v25, 280 }
 0x358   :  { %1814 = vbcast.lane.b32.xlu1 %v4112_v22, 296  ;;  %1680 = vbcast.lane.b32.xlu0 %v4103_v11, 296 }
 0x35c   :  { %2074 = vbcast.lane.b32.xlu1 %v4138_v20, 280  ;;  %1877 = vbcast.lane.b32.xlu0 %v4117_v0, 288 }
 0x360   :  { %1751 = vbcast.lane.b32.xlu1 %v4107_v12, 304  ;;  %2137 = vbcast.lane.b32.xlu0 %v4147_v61, 272 }
 0x364   :  { %2011 = vbcast.lane.b32.xlu1 %v4131_v48, 288  ;;  %1944 = vbcast.lane.b32.xlu0 %v4124_v25, 288 }
 0x368   :  { %1818 = vbcast.lane.b32.xlu1 %v4112_v22, 304  ;;  %1684 = vbcast.lane.b32.xlu0 %v4103_v11, 304 }
 0x36c   :  { %2078 = vbcast.lane.b32.xlu1 %v4138_v20, 288  ;;  %1881 = vbcast.lane.b32.xlu0 %v4117_v0, 296 }
 0x370   :  { %1755 = vbcast.lane.b32.xlu1 %v4107_v12, 312  ;;  %2141 = vbcast.lane.b32.xlu0 %v4147_v61, 280 }
 0x374   :  { %2015 = vbcast.lane.b32.xlu1 %v4131_v48, 296  ;;  %1948 = vbcast.lane.b32.xlu0 %v4124_v25, 296 }
 0x378   :  { %1822 = vbcast.lane.b32.xlu1 %v4112_v22, 312  ;;  %1688 = vbcast.lane.b32.xlu0 %v4103_v11, 312 }
 0x37c   :  { %2082 = vbcast.lane.b32.xlu1 %v4138_v20, 296  ;;  %1885 = vbcast.lane.b32.xlu0 %v4117_v0, 304 }
 0x37e   :  { %v4179_v47 = vpop.permute.xlu1 %1664 }
 0x380   :  { %1759 = vbcast.lane.b32.xlu1 %v4107_v12, 320  ;;  %2145 = vbcast.lane.b32.xlu0 %v4147_v61, 288 }
 0x382   :  { %v4183_v58 = vpop.permute.xlu1 %1727 }
 0x383   :  { %v2207_v60 = vmul.f32 %v2837_v44, %v4183_v58 }
 0x384   :  { %2019 = vbcast.lane.b32.xlu1 %v4131_v48, 304  ;;  %1952 = vbcast.lane.b32.xlu0 %v4124_v25, 304 }
 0x386   :  { %v4190_v14 = vpop.permute.xlu1 %1731 }
 0x387   :  { %v2208_v29 = vmul.f32 %v2833_v35, %v4190_v14 }
 0x388   :  { %1826 = vbcast.lane.b32.xlu1 %v4112_v22, 320  ;;  %1692 = vbcast.lane.b32.xlu0 %v4103_v11, 320 }
 0x389   :  { %v2357_v6 = vsel %vm4700_vm12, %v2208_v29, 0.0  ;;  %v2356_v29 = vsel %vm4704_vm5, %v2207_v60, 0.0  ;;  %vm4711_vm12 = vmmov %vm4706_vm0 }
 0x38a   :  { %v4194_v38 = vpop.permute.xlu1 %1794  ;;  %vm4715_vm5 = vmmov %vm4706_vm0 }
 0x38b   :  { %v2223_v34 = vmul.f32 %v2834_v53, %v4194_v38  ;;  %v2843_v53 = vld [vmem:[#allocation11 + $0x308] sm:$0xff] }
 0x38c   :  { %2086 = vbcast.lane.b32.xlu1 %v4138_v20, 304  ;;  %1889 = vbcast.lane.b32.xlu0 %v4117_v0, 312 }
 0x38e   :  { %v4198_v18 = vpop.permute.xlu1 %1668 }
 0x390   :  { %1763 = vbcast.lane.b32.xlu1 %v4107_v12, 328  ;;  %2149 = vbcast.lane.b32.xlu0 %v4147_v61, 296 }
 0x392   :  { %v4202_v32 = vpop.permute.xlu1 %1861 }
 0x394   :  { %2023 = vbcast.lane.b32.xlu1 %v4131_v48, 312  ;;  %1956 = vbcast.lane.b32.xlu0 %v4124_v25, 312 }
 0x396   :  { %v4208_v31 = vpop.permute.xlu1 %1802 }
 0x397   :  { %v1644_v1 = vpop.xlane.xlu0 %1643 }
 0x398   :  { %v1645_v21 = vadd.f32 %v1644_v1, %v1642_v62  ;;  %1830 = vbcast.lane.b32.xlu1 %v4112_v22, 328  ;;  %1696 = vbcast.lane.b32.xlu0 %v4103_v11, 328  ;;  %v2393_v62 = vsel %vm4701_vm13, %v2223_v34, 0.0  ;;  %v2839_v1 = vld [vmem:[#allocation11 + $0x110] sm:$0xff]  ;;  %vm4712_vm13 = vmmov %vm4706_vm0 }
 0x39a   :  { %1647 = vst.msk [vmem:[#allocation3] sm:$0xff] %vm4697_vm9, %v1645_v21  ;;  %v4214_v13 = vpop.permute.xlu1 %1932  ;;  %v2225_v21 = vmul.f32 %v2839_v1, %v4208_v31  ;;  %vm4708_vm9 = vmmov %vm4706_vm0 }
 0x39b   :  { %v4216_v28 = vpop.permute.xlu0 %1660 }
 0x39c   :  { %2090 = vbcast.lane.b32.xlu1 %v4138_v20, 312  ;;  %1893 = vbcast.lane.b32.xlu0 %v4117_v0, 320 }
 0x39e   :  { %v4220_v50 = vpop.permute.xlu1 %1739 }
 0x39f   :  { %v1799_v63 = vpop.permute.xlu0 %1798 }
 0x3a0   :  { %1767 = vbcast.lane.b32.xlu1 %v4107_v12, 336  ;;  %2153 = vbcast.lane.b32.xlu0 %v4147_v61, 304  ;;  %v2224_v33 = vmul.f32 %v2831_v4, %v1799_v63  ;;  %v2840_v63 = vld [vmem:[#allocation11 + $0x118] sm:$0xff] }
 0x3a2   :  { %v1996_v37 = vpop.permute.xlu1 %1995  ;;  %v2394_v8 = vsel %vm4698_vm10, %v2224_v33, 0.0  ;;  %vm4709_vm10 = vmmov %vm4706_vm0 }
 0x3a3   :  { %v1736_v41 = vpop.permute.xlu0 %1735  ;;  %v2271_v45 = vmul.f32 %v2835_v10, %v1996_v37  ;;  %v2395_v4 = vadd.f32 %v2394_v8, %v2393_v62  ;;  %v2844_v10 = vld [vmem:[#allocation11 + $0x298] sm:$0xff]  ;;  %v2846_v8 = vld [vmem:[#allocation11 + $0x300] sm:$0xff] }
 0x3a4   :  { %2027 = vbcast.lane.b32.xlu1 %v4131_v48, 320  ;;  %1960 = vbcast.lane.b32.xlu0 %v4124_v25, 320  ;;  %v2209_v40 = vmul.f32 %v2838_v49, %v1736_v41 }
 0x3a5   :  { %v2504_v58 = vsel %vm4702_vm14, %v2271_v45, 0.0  ;;  %vm4713_vm14 = vmmov %vm4706_vm0 }
 0x3a6   :  { %v4226_v9 = vpop.permute.xlu1 %1806  ;;  %v2359_v31 = vsel %vm4705_vm6, %v2209_v40, 0.0  ;;  %v2848_v40 = vld [vmem:[#allocation11 + $0x98] sm:$0xff]  ;;  %vm4716_vm6 = vmmov %vm4706_vm0 }
 0x3a7   :  { %v4228_v57 = vpop.permute.xlu0 %1865  ;;  %v2226_v37 = vmul.f32 %v2840_v63, %v4226_v9  ;;  %v2849_v63 = vld [vmem:[#allocation11 + $0xa0] sm:$0xff] }
 0x3a8   :  { %1834 = vbcast.lane.b32.xlu1 %v4112_v22, 336  ;;  %1700 = vbcast.lane.b32.xlu0 %v4103_v11, 336 }
 0x3a9   :  { %v2398_v60 = vsel %vm4707_vm8, %v2226_v37, 0.0  ;;  %vm4717_vm8 = vmmov %vm4706_vm0 }
 0x3aa   :  { %v4232_v42 = vpop.permute.xlu1 %2062 }
 0x3ab   :  { %v4234_v5 = vpop.permute.xlu0 %1928 }
 0x3ac   :  { %2094 = vbcast.lane.b32.xlu1 %v4138_v20, 320  ;;  %1897 = vbcast.lane.b32.xlu0 %v4117_v0, 328 }
 0x3ae   :  { %v4238_v26 = vpop.permute.xlu1 %1676 }
 0x3af   :  { %v4240_v2 = vpop.permute.xlu0 %1672 }
 0x3b0   :  { %1771 = vbcast.lane.b32.xlu1 %v4107_v12, 344  ;;  %2157 = vbcast.lane.b32.xlu0 %v4147_v61, 312 }
 0x3b2   :  { %v4244_v55 = vpop.permute.xlu1 %1873 }
 0x3b3   :  { %v4246_v16 = vpop.permute.xlu0 %1869 }
 0x3b4   :  { %2031 = vbcast.lane.b32.xlu1 %v4131_v48, 328  ;;  %1964 = vbcast.lane.b32.xlu0 %v4124_v25, 328 }
 0x3b6   :  { %v4250_v27 = vpop.permute.xlu1 %2129 }
 0x3b7   :  { %v2000_v36 = vpop.permute.xlu0 %1999 }
 0x3b8   :  { %1838 = vbcast.lane.b32.xlu1 %v4112_v22, 344  ;;  %1704 = vbcast.lane.b32.xlu0 %v4103_v11, 344  ;;  %v2272_v23 = vmul.f32 %v2832_v15, %v2000_v36  ;;  %v2841_v36 = vld [vmem:[#allocation11 + $0x8] sm:$0xff]  ;;  %v2842_v15 = vld [vmem:[#allocation11 + $0x120] sm:$0xff] }
 0x3ba   :  { %v1811_v52 = vpop.permute.xlu1 %1810  ;;  %v2505_v14 = vsel %vm4699_vm11, %v2272_v23, 0.0  ;;  %vm4710_vm11 = vmmov %vm4706_vm0 }
 0x3bb   :  { %v4254_v3 = vpop.permute.xlu0 %1936  ;;  %v2506_v33 = vadd.f32 %v2505_v14, %v2504_v58  ;;  %v2227_v23 = vmul.f32 %v2842_v15, %v1811_v52  ;;  %v2396_v52 = vsel %vm4706_vm0, %v2225_v21, 0.0  ;;  %v2210_v14 = vmul.f32 %v2848_v40, %v4220_v50 }
 0x3bc   :  { %2098 = vbcast.lane.b32.xlu1 %v4138_v20, 328  ;;  %1901 = vbcast.lane.b32.xlu0 %v4117_v0, 336 }
 0x3bd   :  { %v2400_v62 = vsel %vm4708_vm9, %v2227_v23, 0.0  ;;  %vm4718_vm9 = vmmov %vm4706_vm0 }
 0x3be   :  { %v4258_v19 = vpop.permute.xlu1 %2070 }
 0x3bf   :  { %v2067_v46 = vpop.permute.xlu0 %2066 }
 0x3c0   :  { %1775 = vbcast.lane.b32.xlu1 %v4107_v12, 352  ;;  %2161 = vbcast.lane.b32.xlu0 %v4147_v61, 320  ;;  %v2288_v34 = vmul.f32 %v2843_v53, %v2067_v46  ;;  %v2287_v46 = vmul.f32 %v2846_v8, %v4232_v42  ;;  %v2853_v53 = vld [vmem:[#allocation11 + $0x188] sm:$0xff]  ;;  %v2855_v8 = vld [vmem:[#allocation11 + $0x130] sm:$0xff] }
 0x3c2   :  { %v4262_v17 = vpop.permute.xlu1 %1747  ;;  %v2542_v58 = vsel %vm4709_vm10, %v2288_v34, 0.0  ;;  %v2240_v34 = vmul.f32 %v2853_v53, %v4228_v57  ;;  %vm4719_vm10 = vmmov %vm4706_vm0 }
 0x3c3   :  { %v4264_v43 = vpop.permute.xlu0 %1743 }
 0x3c4   :  { %2035 = vbcast.lane.b32.xlu1 %v4131_v48, 336  ;;  %1968 = vbcast.lane.b32.xlu0 %v4124_v25, 336  ;;  %v2211_v21 = vmul.f32 %v2849_v63, %v4264_v43  ;;  %v2852_v43 = vld [vmem:[#allocation11 + $0x318] sm:$0xff] }
 0x3c6   :  { %v2008_v7 = vpop.permute.xlu1 %2007 }
 0x3c7   :  { %v2004_v24 = vpop.permute.xlu0 %2003  ;;  %v2274_v9 = vmul.f32 %v2844_v10, %v2008_v7  ;;  %v2847_v7 = vld [vmem:[#allocation11 + $0x128] sm:$0xff] }
 0x3c8   :  { %1842 = vbcast.lane.b32.xlu1 %v4112_v22, 352  ;;  %1708 = vbcast.lane.b32.xlu0 %v4103_v11, 352  ;;  %v2273_v54 = vmul.f32 %v2836_v30, %v2004_v24  ;;  %v4292_v24 = vmul.f32 %v2841_v36, %v4179_v47  ;;  %v2358_v30 = vadd.f32 %v2357_v6, %v2356_v29 }
 0x3c9   :  { %v2509_v37 = vsel %vm4710_vm11, %v2274_v9, 0.0  ;;  %vm4720_vm11 = vmmov %vm4706_vm0 }
 0x3ca   :  { %v1815_v59 = vpop.permute.xlu1 %1814  ;;  %v2507_v41 = vsel %vm4703_vm15, %v2273_v54, 0.0  ;;  %v2845_v54 = vld [vmem:[#allocation11 + $0x180] sm:$0xff]  ;;  %v2360_v6 = vadd.f32 %v2359_v31, %v2358_v30  ;;  %vm4714_vm15 = vmmov %vm4706_vm0 }
 0x3cb   :  { %v4270_v39 = vpop.permute.xlu0 %2133  ;;  %v4301_v47 = vmul.f32 %v2845_v54, %v4202_v32  ;;  %v2508_v44 = vadd.f32 %v2507_v41, %v2506_v33  ;;  %v2228_v49 = vmul.f32 %v2847_v7, %v1815_v59  ;;  %v2397_v32 = vadd.f32 %v2396_v52, %v2395_v4  ;;  %v2850_v41 = vld [vmem:[#allocation11 + $0x2a0] sm:$0xff]  ;;  %v2851_v33 = vld [vmem:[#allocation11 + $0x310] sm:$0xff] }
 0x3cc   :  { %2102 = vbcast.lane.b32.xlu1 %v4138_v20, 336  ;;  %1905 = vbcast.lane.b32.xlu0 %v4117_v0, 344  ;;  %v2289_v50 = vmul.f32 %v2851_v33, %v4258_v19  ;;  %v2541_v4 = vsel %vm4711_vm12, %v2287_v46, 0.0  ;;  %v2854_v54 = vld [vmem:[#allocation11] sm:$0xff]  ;;  %v2361_v52 = vsel %vm4714_vm15, %v2210_v14, 0.0  ;;  %v2856_v7 = vld [vmem:[#allocation11 + $0x190] sm:$0xff]  ;;  %vm4721_vm12 = vmmov %vm4706_vm0 }
 0x3cd   :  { %v2399_v59 = vadd.f32 %v2398_v60, %v2397_v32  ;;  %v2510_v15 = vadd.f32 %v2509_v37, %v2508_v44  ;;  %v2402_v23 = vsel %vm4712_vm13, %v2228_v49, 0.0  ;;  %v2543_v9 = vadd.f32 %v2542_v58, %v2541_v4  ;;  %v2861_v4 = vld [vmem:[#allocation11 + $0x208] sm:$0xff]  ;;  %vm4722_vm13 = vmmov %vm4706_vm0 }
 0x3ce   :  { %v4276_v51 = vpop.permute.xlu1 %2074  ;;  %v2191_v44 = vmul.f32 %v2854_v54, %v4216_v28  ;;  %v2363_v60 = vsel %vm4715_vm5, %v2211_v21, 0.0  ;;  %v2241_v49 = vmul.f32 %v2856_v7, %v4246_v16  ;;  %v2544_v57 = vsel %vm4716_vm6, %v2289_v50, 0.0  ;;  %v2857_v28 = vld [vmem:[#allocation11 + $0xa8] sm:$0xff]  ;;  %v2860_v50 = vld [vmem:[#allocation11 + $0x320] sm:$0xff]  ;;  %vm4724_vm15 = vmmov %vm4706_vm0 }
 0x3cf   :  { %v4281_v38 = vpop.permute.xlu0 %1940  ;;  %v2290_v29 = vmul.f32 %v2852_v43, %v4276_v51  ;;  %v2401_v10 = vadd.f32 %v2400_v62, %v2399_v59  ;;  %v2362_v40 = vadd.f32 %v2361_v52, %v2360_v6  ;;  %v2212_v14 = vmul.f32 %v2857_v28, %v4262_v17  ;;  %v2859_v59 = vld [vmem:[#allocation11 + $0x10] sm:$0xff]  ;;  %vm4725_vm5 = vmmov %vm4706_vm0  ;;  %v2865_v7 = vld [vmem:[#allocation11 + $0xb8] sm:$0xff] }
 0x3d0   :  { %1779 = vbcast.lane.b32.xlu1 %v4107_v12, 360  ;;  %2165 = vbcast.lane.b32.xlu0 %v4147_v61, 328  ;;  %v2431_v16 = vsel %vm4718_vm9, %v2240_v34, 0.0  ;;  %v2545_v37 = vadd.f32 %v2544_v57, %v2543_v9  ;;  %v2193_v17 = vmul.f32 %v2859_v59, %v4198_v18  ;;  %v2430_v33 = vsel %vm4720_vm11, %v4301_v47, 0.0  ;;  %v2862_v34 = vld [vmem:[#allocation11 + $0x198] sm:$0xff]  ;;  %v2863_v9 = vld [vmem:[#allocation11 + $0x1a0] sm:$0xff]  ;;  %vm4726_vm6 = vmmov %vm4706_vm0 }
 0x3d1   :  { %v2403_v32 = vadd.f32 %v2402_v23, %v2401_v10  ;;  %v2546_v62 = vsel %vm4706_vm0, %v2290_v29, 0.0  ;;  %v2364_v21 = vadd.f32 %v2363_v60, %v2362_v40  ;;  %v2256_v23 = vmul.f32 %v2861_v4, %v4214_v13  ;;  %v2864_v60 = vld [vmem:[#allocation11 + $0x200] sm:$0xff]  ;;  %v2867_v28 = vld [vmem:[#allocation11 + $0x388] sm:$0xff]  ;;  %vm4728_vm9 = vmmov %vm4706_vm0 }
 0x3d2   :  { %v4294_v35 = vpop.permute.xlu1 %1751  ;;  %v2319_v43 = vsel %vm4721_vm12, %v2191_v44, 0.0  ;;  %v2433_v29 = vsel %vm4722_vm13, %v2241_v49, 0.0  ;;  %v2432_v18 = vadd.f32 %v2431_v16, %v2430_v33  ;;  %v2242_v10 = vmul.f32 %v2862_v34, %v4244_v55  ;;  %vm4730_vm11 = vmmov %vm4706_vm0  ;;  %v2874_v34 = vld [vmem:[#allocation11 + $0x220] sm:$0xff] }
 0x3d3   :  { %v4298_v45 = vpop.permute.xlu0 %1680  ;;  %v2322_v40 = vsel %vm4726_vm6, %v2193_v17, 0.0  ;;  %vm4731_vm12 = vmmov %vm4706_vm0 }
 0x3d4   :  { %2039 = vbcast.lane.b32.xlu1 %v4131_v48, 344  ;;  %1972 = vbcast.lane.b32.xlu0 %v4124_v25, 344  ;;  %vm4732_vm13 = vmmov %vm4706_vm0 }
 0x3d5   :  { %vm4736_vm6 = vmmov %vm4706_vm0 }
 0x3d6   :  { %v2012_v1 = vpop.permute.xlu1 %2011 }
 0x3d7   :  { %v2275_v36 = vmul.f32 %v2850_v41, %v2012_v1  ;;  %v4313_v42 = vpop.permute.xlu0 %1877  ;;  %v2858_v1 = vld [vmem:[#allocation11 + $0xb0] sm:$0xff] }
 0x3d8   :  { %1846 = vbcast.lane.b32.xlu1 %v4112_v22, 360  ;;  %1712 = vbcast.lane.b32.xlu0 %v4103_v11, 360  ;;  %v2213_v58 = vmul.f32 %v2858_v1, %v4294_v35 }
 0x3d9   :  { %v2511_v31 = vsel %vm4713_vm14, %v2275_v36, 0.0  ;;  %v2320_v36 = vsel %vm4719_vm10, %v4292_v24, 0.0  ;;  %vm4723_vm14 = vmmov %vm4706_vm0 }
 0x3da   :  { %v4323_v19 = vadd.f32 %v2511_v31, %v2510_v15  ;;  %v1819_v30 = vpop.permute.xlu1 %1818  ;;  %v2547_v31 = vadd.f32 %v2546_v62, %v2545_v37  ;;  %v2365_v24 = vsel %vm4723_vm14, %v2212_v14, 0.0  ;;  %v2367_v47 = vsel %vm4724_vm15, %v2213_v58, 0.0  ;;  %v2868_v62 = vld [vmem:[#allocation11 + $0x380] sm:$0xff]  ;;  %v2869_v58 = vld [vmem:[#allocation11 + $0x210] sm:$0xff]  ;;  %vm4729_vm10 = vmmov %vm4706_vm0 }
 0x3db   :  { %v2229_v46 = vmul.f32 %v2855_v8, %v1819_v30  ;;  %v4328_v51 = vpop.permute.xlu0 %2137  ;;  %v2366_v13 = vadd.f32 %v2365_v24, %v2364_v21  ;;  %v2243_v30 = vmul.f32 %v2863_v9, %v4313_v42  ;;  %v2321_v52 = vadd.f32 %v2320_v36, %v2319_v43  ;;  %vm4733_vm14 = vmmov %vm4706_vm0 }
 0x3dc   :  { %2106 = vbcast.lane.b32.xlu1 %v4138_v20, 344  ;;  %1909 = vbcast.lane.b32.xlu0 %v4117_v0, 352  ;;  %v2255_v8 = vmul.f32 %v2864_v60, %v4234_v5  ;;  %v2304_v42 = vmul.f32 %v2867_v28, %v4270_v39  ;;  %v2468_v5 = vsel %vm4706_vm0, %v2256_v23, 0.0  ;;  %v2303_v1 = vmul.f32 %v2868_v62, %v4250_v27  ;;  %v2870_v39 = vld [vmem:[#allocation11 + $0x390] sm:$0xff]  ;;  %v2871_v27 = vld [vmem:[#allocation11 + $0x2a8] sm:$0xff]  ;;  %v2872_v23 = vld [vmem:[#allocation11 + $0x218] sm:$0xff] }
 0x3dd   :  { %v2404_v63 = vsel %vm4717_vm8, %v2229_v46, 0.0  ;;  %v2434_v46 = vadd.f32 %v2433_v29, %v2432_v18  ;;  %v2368_v14 = vadd.f32 %v2367_v47, %v2366_v13  ;;  %vm4727_vm8 = vmmov %vm4706_vm0  ;;  %v2437_v21 = vsel %vm4729_vm10, %v2243_v30, 0.0  ;;  %v2873_v29 = vld [vmem:[#allocation11 + $0x1a8] sm:$0xff]  ;;  %v2875_v60 = vld [vmem:[#allocation11 + $0x138] sm:$0xff] }
 0x3de   :  { %v4339_v6 = vadd.f32 %v2404_v63, %v2403_v32  ;;  %v2079_v41 = vpop.permute.xlu1 %2078  ;;  %v2866_v32 = vld [vmem:[#allocation11 + $0x18] sm:$0xff]  ;;  %v2257_v63 = vmul.f32 %v2869_v58, %v4254_v3  ;;  %v2305_v37 = vmul.f32 %v2870_v39, %v4328_v51  ;;  %v2467_v59 = vsel %vm4730_vm11, %v2255_v8, 0.0  ;;  %vm4734_vm15 = vmmov %vm4706_vm0 }
 0x3df   :  { %v2291_v35 = vmul.f32 %v2860_v50, %v2079_v41  ;;  %v4346_v15 = vpop.permute.xlu0 %1944  ;;  %v2194_v55 = vmul.f32 %v2866_v32, %v4240_v2  ;;  %v2435_v2 = vsel %vm4728_vm9, %v2242_v10, 0.0  ;;  %v2323_v17 = vadd.f32 %v2322_v40, %v2321_v52  ;;  %v2877_v32 = vld [vmem:[#allocation11 + $0x28] sm:$0xff]  ;;  %vm4738_vm9 = vmmov %vm4706_vm0 }
 0x3e0   :  { %1783 = vbcast.lane.b32.xlu1 %v4107_v12, 368  ;;  %2169 = vbcast.lane.b32.xlu0 %v4147_v61, 336  ;;  %v2436_v33 = vadd.f32 %v2435_v2, %v2434_v46  ;;  %v2579_v4 = vsel %vm4732_vm13, %v2304_v42, 0.0  ;;  %v2258_v43 = vmul.f32 %v2872_v23, %v4281_v38  ;;  %v2578_v51 = vsel %vm4733_vm14, %v2303_v1, 0.0  ;;  %vm4739_vm10 = vmmov %vm4706_vm0  ;;  %v2879_v1 = vld [vmem:[#allocation11 + $0x30] sm:$0xff] }
 0x3e1   :  { %v2548_v53 = vsel %vm4725_vm5, %v2291_v35, 0.0  ;;  %v2324_v3 = vsel %vm4731_vm12, %v2194_v55, 0.0  ;;  %v2470_v18 = vsel %vm4734_vm15, %v2257_v63, 0.0  ;;  %vm4735_vm5 = vmmov %vm4706_vm0  ;;  %v2259_v10 = vmul.f32 %v2874_v34, %v4346_v15 }
 0x3e2   :  { %v4358_v54 = vadd.f32 %v2548_v53, %v2547_v31  ;;  %v1756_v44 = vpop.permute.xlu1 %1755  ;;  %v2438_v24 = vadd.f32 %v2437_v21, %v2436_v33  ;;  %v2581_v53 = vsel %vm4736_vm6, %v2305_v37, 0.0  ;;  %v2469_v30 = vadd.f32 %v2468_v5, %v2467_v59  ;;  %vm4740_vm11 = vmmov %vm4706_vm0  ;;  %v2880_v21 = vld [vmem:[#allocation11 + $0x328] sm:$0xff] }
 0x3e3   :  { %v2214_v49 = vmul.f32 %v2865_v7, %v1756_v44  ;;  %v4361_v57 = vpop.permute.xlu0 %1684  ;;  %v2580_v44 = vadd.f32 %v2579_v4, %v2578_v51  ;;  %v2876_v7 = vld [vmem:[#allocation11 + $0x20] sm:$0xff]  ;;  %v2196_v15 = vmul.f32 %v2877_v32, %v4298_v45  ;;  %v2325_v28 = vadd.f32 %v2324_v3, %v2323_v17  ;;  %vm4741_vm12 = vmmov %vm4706_vm0  ;;  %v2881_v17 = vld [vmem:[#allocation11 + $0x228] sm:$0xff] }
 0x3e4   :  { %2043 = vbcast.lane.b32.xlu1 %v4131_v48, 352  ;;  %1976 = vbcast.lane.b32.xlu0 %v4124_v25, 352  ;;  %v2471_v42 = vadd.f32 %v2470_v18, %v2469_v30  ;;  %v2474_v62 = vsel %vm4739_vm10, %v2259_v10, 0.0  ;;  %vm4742_vm13 = vmmov %vm4706_vm0  ;;  %v2883_v18 = vld [vmem:[#allocation11 + $0x38] sm:$0xff] }
 0x3e5   :  { %v2369_v16 = vsel %vm4727_vm8, %v2214_v49, 0.0  ;;  %v2195_v49 = vmul.f32 %v2876_v7, %v4238_v26  ;;  %vm4737_vm8 = vmmov %vm4706_vm0  ;;  %v2197_v26 = vmul.f32 %v2879_v1, %v4361_v57  ;;  %v2328_v59 = vsel %vm4742_vm13, %v2196_v15, 0.0 }
 0x3e6   :  { %v4375_v41 = vadd.f32 %v2369_v16, %v2368_v14  ;;  %v2016_v36 = vpop.permute.xlu1 %2015  ;;  %v2472_v40 = vsel %vm4737_vm8, %v2258_v43, 0.0  ;;  %v2582_v14 = vadd.f32 %v2581_v53, %v2580_v44  ;;  %vm4743_vm14 = vmmov %vm4706_vm0  ;;  %v2885_v44 = vld [vmem:[#allocation11 + $0x1b0] sm:$0xff] }
 0x3e7   :  { %v2276_v50 = vmul.f32 %v2871_v27, %v2016_v36  ;;  %v1882_v35 = vpop.permute.xlu0 %1881  ;;  %v2473_v16 = vadd.f32 %v2472_v40, %v2471_v42  ;;  %v2326_v36 = vsel %vm4741_vm12, %v2195_v49, 0.0  ;;  %vm4744_vm15 = vmmov %vm4706_vm0  ;;  %v2886_v40 = vld [vmem:[#allocation11 + $0x140] sm:$0xff] }
 0x3e8   :  { %v2244_v31 = vmul.f32 %v2873_v29, %v1882_v35  ;;  %1850 = vbcast.lane.b32.xlu1 %v4112_v22, 368  ;;  %1716 = vbcast.lane.b32.xlu0 %v4103_v11, 368  ;;  %v2327_v57 = vadd.f32 %v2326_v36, %v2325_v28  ;;  %v2882_v29 = vld [vmem:[#allocation11 + $0xc0] sm:$0xff]  ;;  %vm4746_vm6 = vmmov %vm4706_vm0 }
 0x3e9   :  { %v2513_v47 = vsel %vm4735_vm5, %v2276_v50, 0.0  ;;  %v2330_v50 = vsel %vm4744_vm15, %v2197_v26, 0.0  ;;  %vm4745_vm5 = vmmov %vm4706_vm0 }
 0x3ea   :  { %v4389_v38 = vadd.f32 %v2513_v47, %v4323_v19  ;;  %v2439_v13 = vsel %vm4706_vm0, %v2244_v31, 0.0  ;;  %v1823_v9 = vpop.permute.xlu1 %1822  ;;  %v2878_v19 = vld [vmem:[#allocation11 + $0x398] sm:$0xff]  ;;  %v2329_v23 = vadd.f32 %v2328_v59, %v2327_v57  ;;  %vm4747_vm8 = vmmov %vm4706_vm0  ;;  %v2890_v59 = vld [vmem:[#allocation11 + $0xc8] sm:$0xff] }
 0x3eb   :  { %v4392_v52 = vadd.f32 %v2439_v13, %v2438_v24  ;;  %v2230_v8 = vmul.f32 %v2875_v60, %v1823_v9  ;;  %v2142_v46 = vpop.permute.xlu0 %2141  ;;  %v2884_v13 = vld [vmem:[#allocation11 + $0x2b0] sm:$0xff]  ;;  %vm4749_vm10 = vmmov %vm4706_vm0  ;;  %v2891_v57 = vld [vmem:[#allocation11 + $0x40] sm:$0xff] }
 0x3ec   :  { %v2306_v55 = vmul.f32 %v2878_v19, %v2142_v46  ;;  %2110 = vbcast.lane.b32.xlu1 %v4138_v20, 352  ;;  %1913 = vbcast.lane.b32.xlu0 %v4117_v0, 360  ;;  %v2331_v24 = vadd.f32 %v2330_v50, %v2329_v23  ;;  %v2887_v19 = vld [vmem:[#allocation11 + $0x3a0] sm:$0xff]  ;;  %vm4751_vm12 = vmmov %vm4706_vm0  ;;  %v2892_v23 = vld [vmem:[#allocation11 + $0x2b8] sm:$0xff] }
 0x3ed   :  { %v2406_v5 = vsel %vm4738_vm9, %v2230_v8, 0.0  ;;  %vm4748_vm9 = vmmov %vm4706_vm0 }
 0x3ee   :  { %v2407_v58 = vadd.f32 %v2406_v5, %v4339_v6  ;;  %v2583_v45 = vsel %vm4740_vm11, %v2306_v55, 0.0  ;;  %v2083_v63 = vpop.permute.xlu1 %2082  ;;  %v2475_v6 = vadd.f32 %v2474_v62, %v2473_v16  ;;  %vm4750_vm11 = vmmov %vm4706_vm0  ;;  %v2888_v62 = vld [vmem:[#allocation11 + $0x330] sm:$0xff] }
 0x3ef   :  { %v2584_v2 = vadd.f32 %v2583_v45, %v2582_v14  ;;  %v2292_v39 = vmul.f32 %v2880_v21, %v2083_v63  ;;  %v1949_v37 = vpop.permute.xlu0 %1948  ;;  %v2889_v45 = vld [vmem:[#allocation11 + $0x230] sm:$0xff]  ;;  %vm4752_vm13 = vmmov %vm4706_vm0 }
 0x3f0   :  { %v2260_v33 = vmul.f32 %v2881_v17, %v1949_v37  ;;  %1787 = vbcast.lane.b32.xlu1 %v4107_v12, 376  ;;  %2173 = vbcast.lane.b32.xlu0 %v4147_v61, 344  ;;  %v2647_v37 = vld [vmem:[#allocation3] sm:$0xff]  ;;  %vm4754_vm15 = vmmov %vm4706_vm0 }
 0x3f1   :  { %v2550_v27 = vsel %vm4743_vm14, %v2292_v39, 0.0  ;;  %vm4753_vm14 = vmmov %vm4706_vm0  ;;  %2825 = vrcp.f32 %v2647_v37 }
 0x3f2   :  { %v2551_v35 = vadd.f32 %v2550_v27, %v4358_v54  ;;  %v2476_v3 = vsel %vm4745_vm5, %v2260_v33, 0.0  ;;  %v1760_v4 = vpop.permute.xlu1 %1759  ;;  %vm4755_vm5 = vmmov %vm4706_vm0 }
 0x3f3   :  { %v2477_v43 = vadd.f32 %v2476_v3, %v2475_v6  ;;  %v2215_v31 = vmul.f32 %v2882_v29, %v1760_v4  ;;  %v1689_v51 = vpop.permute.xlu0 %1688 }
 0x3f4   :  { %v2198_v12 = vmul.f32 %v2883_v18, %v1689_v51  ;;  %2047 = vbcast.lane.b32.xlu1 %v4131_v48, 360  ;;  %1980 = vbcast.lane.b32.xlu0 %v4124_v25, 360 }
 0x3f5   :  { %v2371_v47 = vsel %vm4746_vm6, %v2215_v31, 0.0  ;;  %v2893_v31 = vld [vmem:[#allocation11 + $0x1b8] sm:$0xff]  ;;  %vm4756_vm6 = vmmov %vm4706_vm0 }
 0x3f6   :  { %v2372_v53 = vadd.f32 %v2371_v47, %v4375_v41  ;;  %v2332_v54 = vsel %vm4706_vm0, %v2198_v12, 0.0  ;;  %v2020_v34 = vpop.permute.xlu1 %2019 }
 0x3f7   :  { %v2333_v10 = vadd.f32 %v2332_v54, %v2331_v24  ;;  %v2277_v9 = vmul.f32 %v2884_v13, %v2020_v34  ;;  %v1886_v30 = vpop.permute.xlu0 %1885 }
 0x3f8   :  { %v2245_v60 = vmul.f32 %v2885_v44, %v1886_v30  ;;  %1854 = vbcast.lane.b32.xlu1 %v4112_v22, 376  ;;  %1720 = vbcast.lane.b32.xlu0 %v4103_v11, 376  ;;  %v2646_v22 = vld [vmem:[#allocation2] sm:$0xff]  ;;  %v2649_v11 = vld [vmem:[#allocation5] sm:$0xff] }
 0x3f9   :  { %v2515_v8 = vsel %vm4747_vm8, %v2277_v9, 0.0  ;;  %v2650_v26 = vsub.f32 %v2649_v11, %v2646_v22  ;;  %vm4757_vm8 = vmmov %vm4706_vm0 }
 0x3fa   :  { %v2516_v46 = vadd.f32 %v2515_v8, %v4389_v38  ;;  %v2441_v7 = vsel %vm4748_vm9, %v2245_v60, 0.0  ;;  %v1827_v41 = vpop.permute.xlu1 %1826  ;;  %v2896_v8 = vld [vmem:[#allocation11 + $0x338] sm:$0xff]  ;;  %vm4758_vm9 = vmmov %vm4706_vm0 }
 0x3fb   :  { %v2442_v49 = vadd.f32 %v2441_v7, %v4392_v52  ;;  %v2231_v32 = vmul.f32 %v2886_v40, %v1827_v41  ;;  %v2146_v15 = vpop.permute.xlu0 %2145  ;;  %v2651_v33 = vmul.f32 1.442695, %v2650_v26  ;;  %v2826_v44 = vpop.eup %2825  ;;  %v2897_v41 = vld [vmem:[#allocation11 + $0x238] sm:$0xff]  ;;  %v2900_v26 = vld [vmem:[#allocation11 + $0x2c0] sm:$0xff] }
 0x3fc   :  { %v2307_v55 = vmul.f32 %v2887_v19, %v2146_v15  ;;  %2114 = vbcast.lane.b32.xlu1 %v4138_v20, 360  ;;  %1917 = vbcast.lane.b32.xlu0 %v4117_v0, 368 }
 0x3fd   :  { %v2408_v28 = vsel %vm4749_vm10, %v2231_v32, 0.0  ;;  %2827 = vpow2.f32 %v2651_v33  ;;  %vm4759_vm10 = vmmov %vm4706_vm0 }
 0x3fe   :  { %v2409_v42 = vadd.f32 %v2408_v28, %v2407_v58  ;;  %v2585_v38 = vsel %vm4750_vm11, %v2307_v55, 0.0  ;;  %v2087_v14 = vpop.permute.xlu1 %2086  ;;  %v2898_v28 = vld [vmem:[#allocation11 + $0xd0] sm:$0xff]  ;;  %vm4760_vm11 = vmmov %vm4706_vm0 }
 0x3ff   :  { %v2586_v5 = vadd.f32 %v2585_v38, %v2584_v2  ;;  %v2293_v52 = vmul.f32 %v2888_v62, %v2087_v14  ;;  %v1953_v1 = vpop.permute.xlu0 %1952  ;;  %v2899_v14 = vld [vmem:[#allocation11 + $0x48] sm:$0xff] }
 0x400   :  { %v2261_v63 = vmul.f32 %v2889_v45, %v1953_v1  ;;  %2051 = vbcast.lane.b32.xlu1 %v4131_v48, 368  ;;  %2177 = vbcast.lane.b32.xlu0 %v4147_v61, 352 }
 0x401   :  { %v2552_v16 = vsel %vm4751_vm12, %v2293_v52, 0.0  ;;  %vm4761_vm12 = vmmov %vm4706_vm0 }
 0x402   :  { %v2553_v21 = vadd.f32 %v2552_v16, %v2551_v35  ;;  %v2478_v39 = vsel %vm4752_vm13, %v2261_v63, 0.0  ;;  %v1764_v58 = vpop.permute.xlu1 %1763  ;;  %v2901_v16 = vld [vmem:[#allocation11 + $0x1c0] sm:$0xff]  ;;  %vm4762_vm13 = vmmov %vm4706_vm0 }
 0x403   :  { %v2479_v36 = vadd.f32 %v2478_v39, %v2477_v43  ;;  %v2216_v2 = vmul.f32 %v2890_v59, %v1764_v58  ;;  %v1693_v17 = vpop.permute.xlu0 %1692 }
 0x404   :  { %v2199_v6 = vmul.f32 %v2891_v57, %v1693_v17  ;;  %1988 = vbcast.lane.b32.xlu1 %v4124_v25, 376  ;;  %1984 = vbcast.lane.b32.xlu0 %v4124_v25, 368  ;;  %v2903_v57 = vld [vmem:[#allocation11 + $0x3b0] sm:$0xff] }
 0x405   :  { %v2373_v27 = vsel %vm4753_vm14, %v2216_v2, 0.0  ;;  %vm4763_vm14 = vmmov %vm4706_vm0  ;;  %v2902_v2 = vld [vmem:[#allocation11 + $0x150] sm:$0xff] }
 0x406   :  { %v2374_v50 = vadd.f32 %v2373_v27, %v2372_v53  ;;  %v2334_v35 = vsel %vm4754_vm15, %v2199_v6, 0.0  ;;  %v2024_v3 = vpop.permute.xlu1 %2023  ;;  %v2894_v53 = vld [vmem:[#allocation11 + $0x148] sm:$0xff]  ;;  %vm4764_vm15 = vmmov %vm4706_vm0 }
 0x407   :  { %v2335_v4 = vadd.f32 %v2334_v35, %v2333_v10  ;;  %v2278_v43 = vmul.f32 %v2892_v23, %v2024_v3  ;;  %v1890_v29 = vpop.permute.xlu0 %1889  ;;  %v2895_v10 = vld [vmem:[#allocation11 + $0x3a8] sm:$0xff]  ;;  %v2828_v40 = vpop.eup %2827 }
 0x408   :  { %v2246_v51 = vmul.f32 %v2893_v31, %v1890_v29  ;;  %2055 = vbcast.lane.b32.xlu1 %v4131_v48, 376  ;;  %1921 = vbcast.lane.b32.xlu0 %v4117_v0, 376  ;;  %v2653_v22 = vmul.f32 %v2828_v40, %v2826_v44  ;;  %v2905_v29 = vld [vmem:[#allocation11 + $0x240] sm:$0xff]  ;;  %v2670_v40 = vld [vmem:[#allocation12 + $0x8] sm:$0xff] }
 0x409   :  { %v2517_v25 = vsel %vm4755_vm5, %v2278_v43, 0.0  ;;  %vm4765_vm5 = vmmov %vm4706_vm0 }
 0x40a   :  { %v2518_v18 = vadd.f32 %v2517_v25, %v2516_v46  ;;  %v2443_v12 = vsel %vm4756_vm6, %v2246_v51, 0.0  ;;  %v1831_v24 = vpop.permute.xlu1 %1830  ;;  %vm4766_vm6 = vmmov %vm4706_vm0 }
 0x40b   :  { %v2444_v47 = vadd.f32 %v2443_v12, %v2442_v49  ;;  %v2232_v54 = vmul.f32 %v2894_v53, %v1831_v24  ;;  %v2150_v34 = vpop.permute.xlu0 %2149 }
 0x40c   :  { %v2308_v13 = vmul.f32 %v2895_v10, %v2150_v34  ;;  %2122 = vbcast.lane.b32.xlu1 %v4138_v20, 376  ;;  %2181 = vbcast.lane.b32.xlu0 %v4147_v61, 360  ;;  %v2907_v34 = vld [vmem:[#allocation11 + $0x50] sm:$0xff] }
 0x40d   :  { %v2410_v48 = vsel %vm4706_vm0, %v2232_v54, 0.0 }
 0x40e   :  { %v2411_v9 = vadd.f32 %v2410_v48, %v2409_v42  ;;  %v2587_v0 = vsel %vm4757_vm8, %v2308_v13, 0.0  ;;  %v2091_v30 = vpop.permute.xlu1 %2090  ;;  %vm4767_vm8 = vmmov %vm4706_vm0 }
 0x40f   :  { %v2588_v60 = vadd.f32 %v2587_v0, %v2586_v5  ;;  %v2294_v46 = vmul.f32 %v2896_v8, %v2091_v30  ;;  %v1957_v7 = vpop.permute.xlu0 %1956 }
 0x410   :  { %v2262_v49 = vmul.f32 %v2897_v41, %v1957_v7  ;;  %2118 = vbcast.lane.b32.xlu0 %v4138_v20, 368  ;;  %1651 = vperm.xlu1 %2818, %v4204_v56  }
 0x411   :  { %v2554_v32 = vsel %vm4758_vm9, %v2294_v46, 0.0  ;;  %vm4768_vm9 = vmmov %vm4706_vm0  ;;  %v2909_v46 = vld [vmem:[#allocation11 + $0x1c8] sm:$0xff] }
 0x412   :  { %v2555_v15 = vadd.f32 %v2554_v32, %v2553_v21  ;;  %v2480_v19 = vsel %vm4759_vm10, %v2262_v49, 0.0  ;;  %v1768_v55 = vpop.permute.xlu1 %1767  ;;  %vm4769_vm10 = vmmov %vm4706_vm0  ;;  %v2669_v49 = vld [vmem:[#allocation12] sm:$0xff] }
 0x413   :  { %v2481_v11 = vadd.f32 %v2480_v19, %v2479_v36  ;;  %v2217_v42 = vmul.f32 %v2898_v28, %v1768_v55  ;;  %v1697_v38 = vpop.permute.xlu0 %1696  ;;  %v2799_v55 = vpack.c.bf16 %v2670_v40, %v2669_v49 }
 0x414   :  { %v2200_v5 = vmul.f32 %v2899_v14, %v1697_v38  ;;  %2185 = vbcast.lane.b32.xlu0 %v4147_v61, 368  ;;  %2657 = vperm.xlu1 %2818, %v2653_v22   ;;  %v3111_v38 = vmov 0.0|0.0   ;;  %v2911_v14 = vld [vmem:[#allocation11 + $0x3b8] sm:$0xff] }
 0x415   :  { %v2375_v20 = vsel %vm4760_vm11, %v2217_v42, 0.0  ;;  %vm4770_vm11 = vmmov %vm4706_vm0  ;;  %2798 = vmatprep.subr.bf16.mxu0 %v3111_v38 }
 0x416   :  { %v2376_v56 = vadd.f32 %v2375_v20, %v2374_v50  ;;  %v2336_v62 = vsel %vm4761_vm12, %v2200_v5, 0.0  ;;  %v2028_v52 = vpop.permute.xlu1 %2027  ;;  %2800 = vmatpush3.bf16.msra.mxu0 %v2799_v55  ;;  %vm4771_vm12 = vmmov %vm4706_vm0  ;;  %v2921_v55 = vld [vmem:[#allocation11 + $0x60] sm:$0xff] }
 0x417   :  { %v2337_v1 = vadd.f32 %v2336_v62, %v2335_v4  ;;  %v2279_v45 = vmul.f32 %v2900_v26, %v2028_v52  ;;  %v1894_v63 = vpop.permute.xlu0 %1893  ;;  %v2904_v4 = vld [vmem:[#allocation11 + $0x340] sm:$0xff]  ;;  %2801 = vmatprep.subr.bf16.mxu0 %v3111_v38  ;;  %v2672_v62 = vld [vmem:[#allocation12 + $0x18] sm:$0xff] }
 0x418   :  { %v2247_v21 = vmul.f32 %v2901_v16, %v1894_v63  ;;  %2189 = vbcast.lane.b32.xlu0 %v4147_v61, 376  ;;  %v2912_v16 = vld [vmem:[#allocation11 + $0x348] sm:$0xff] }
 0x419   :  { %v2519_v39 = vsel %vm4762_vm13, %v2279_v45, 0.0  ;;  %vm4772_vm13 = vmmov %vm4706_vm0 }
 0x41a   :  { %v2520_v58 = vadd.f32 %v2519_v39, %v2518_v18  ;;  %v2445_v37 = vsel %vm4763_vm14, %v2247_v21, 0.0  ;;  %v1835_v36 = vpop.permute.xlu1 %1834  ;;  %vm4773_vm14 = vmmov %vm4706_vm0 }
 0x41b   :  { %v2446_v59 = vadd.f32 %v2445_v37, %v2444_v47  ;;  %v2233_v17 = vmul.f32 %v2902_v2, %v1835_v36  ;;  %v2154_v33 = vpop.permute.xlu0 %2153  ;;  %v2906_v47 = vld [vmem:[#allocation11 + $0xd8] sm:$0xff] }
 0x41c   :  { %v2309_v6 = vmul.f32 %v2903_v57, %v2154_v33  ;;  %2665 = vperm.xlu0 %2819, %v2826_v44   ;;  %v2908_v44 = vld [vmem:[#allocation11 + $0x2c8] sm:$0xff] }
 0x41d   :  { %v2412_v27 = vsel %vm4764_vm15, %v2233_v17, 0.0  ;;  %vm3112_vm15 = vmmov 0  }
 0x41e   :  { %v2413_v50 = vadd.f32 %v2412_v27, %v2411_v9  ;;  %v2589_v35 = vsel %vm4765_vm5, %v2309_v6, 0.0  ;;  %v2095_v3 = vpop.permute.xlu1 %2094  ;;  %vm4775_vm5 = vmmov %vm4706_vm0  ;;  %v2914_v6 = vld [vmem:[#allocation11 + $0xe0] sm:$0xff] }
 0x41f   :  { %v2590_v61 = vadd.f32 %v2589_v35, %v2588_v60  ;;  %v2295_v23 = vmul.f32 %v2904_v4, %v2095_v3  ;;  %v1961_v43 = vpop.permute.xlu0 %1960  ;;  %v2915_v35 = vld [vmem:[#allocation11 + $0x58] sm:$0xff] }
 0x420   :  { %v2263_v31 = vmul.f32 %v2905_v29, %v1961_v43 }
 0x421   :  { %v2556_v51 = vsel %vm4766_vm6, %v2295_v23, 0.0  ;;  %vm4776_vm6 = vmmov %vm4706_vm0 }
 0x422   :  { %v2557_v25 = vadd.f32 %v2556_v51, %v2555_v15  ;;  %v2482_v18 = vsel %vm4706_vm0, %v2263_v31, 0.0  ;;  %v1772_v12 = vpop.permute.xlu1 %1771  ;;  %v2916_v31 = vld [vmem:[#allocation11 + $0x2d0] sm:$0xff] }
 0x423   :  { %v2483_v24 = vadd.f32 %v2482_v18, %v2481_v11  ;;  %v2218_v53 = vmul.f32 %v2906_v47, %v1772_v12  ;;  %v1701_v54 = vpop.permute.xlu0 %1700  ;;  %v2910_v11 = vld [vmem:[#allocation11 + $0x158] sm:$0xff]  ;;  %v2917_v18 = vld [vmem:[#allocation11 + $0x1d0] sm:$0xff] }
 0x424   :  { %v2201_v10 = vmul.f32 %v2907_v34, %v1701_v54 }
 0x425   :  { %v2377_v13 = vsel %vm4767_vm8, %v2218_v53, 0.0  ;;  %vm4777_vm8 = vmmov %vm4706_vm0 }
 0x426   :  { %v2378_v48 = vadd.f32 %v2377_v13, %v2376_v56  ;;  %v2338_v9 = vsel %vm4768_vm9, %v2201_v10, 0.0  ;;  %v2032_v0 = vpop.permute.xlu1 %2031  ;;  %v2671_v56 = vld [vmem:[#allocation12 + $0x10] sm:$0xff]  ;;  %vm4778_vm9 = vmmov %vm4706_vm0  ;;  %v2918_v10 = vld [vmem:[#allocation11 + $0x160] sm:$0xff] }
 0x427   :  { %v2339_v30 = vadd.f32 %v2338_v9, %v2337_v1  ;;  %v2280_v60 = vmul.f32 %v2908_v44, %v2032_v0  ;;  %v1898_v8 = vpop.permute.xlu0 %1897  ;;  %v2802_v45 = vpack.c.bf16 %v2672_v62, %v2671_v56  ;;  %v2919_v9 = vld [vmem:[#allocation11 + $0x3c0] sm:$0xff] }
 0x428   :  { %v2248_v7 = vmul.f32 %v2909_v46, %v1898_v8 }
 0x429   :  { %v2521_v41 = vsel %vm4769_vm10, %v2280_v60, 0.0  ;;  %2803 = vmatpush3.bf16.msra.mxu0 %v2802_v45  ;;  %vm4779_vm10 = vmmov %vm4706_vm0 }
 0x42a   :  { %v2522_v32 = vadd.f32 %v2521_v41, %v2520_v58  ;;  %v2447_v15 = vsel %vm4770_vm11, %v2248_v7, 0.0  ;;  %v1839_v19 = vpop.permute.xlu1 %1838  ;;  %v2913_v58 = vld [vmem:[#allocation11 + $0x248] sm:$0xff]  ;;  %vm4780_vm11 = vmmov %vm4706_vm0  ;;  %v2920_v41 = vld [vmem:[#allocation11 + $0x250] sm:$0xff] }
 0x42b   :  { %v2448_v22 = vadd.f32 %v2447_v15, %v2446_v59  ;;  %v2234_v28 = vmul.f32 %v2910_v11, %v1839_v19  ;;  %v2158_v42 = vpop.permute.xlu0 %2157  ;;  %v4774_v59 = vmov 0.0  }
 0x42c   :  { %v2310_v5 = vmul.f32 %v2911_v14, %v2158_v42  ;;  %2795 = vmatprep.mubr.msk.f32.mxu0 %vm3112_vm15, %v4774_v59  ;;  %v2922_v14 = vld [vmem:[#allocation11 + $0x1d8] sm:$0xff]  ;;  %v2923_v59 = vld [vmem:[#allocation11 + $0xe8] sm:$0xff]  ;;  %vm4784_vm15 = vmmov %vm4706_vm0 }
 0x42d   :  { %v2414_v20 = vsel %vm4771_vm12, %v2234_v28, 0.0  ;;  %vm4781_vm12 = vmmov %vm4706_vm0 }
 0x42e   :  { %v2415_v52 = vadd.f32 %v2414_v20, %v2413_v50  ;;  %v2591_v1 = vsel %vm4772_vm13, %v2310_v5, 0.0  ;;  %v2099_v26 = vpop.permute.xlu1 %2098  ;;  %vm4782_vm13 = vmmov %vm4706_vm0 }
 0x42f   :  { %v2592_v63 = vadd.f32 %v2591_v1, %v2590_v61  ;;  %v2296_v21 = vmul.f32 %v2912_v16, %v2099_v26  ;;  %v1965_v39 = vpop.permute.xlu0 %1964 }
 0x430   :  { %v2264_v37 = vmul.f32 %v2913_v58, %v1965_v39 }
 0x431   :  { %v2558_v36 = vsel %vm4773_vm14, %v2296_v21, 0.0  ;;  %vm4783_vm14 = vmmov %vm4706_vm0 }
 0x432   :  { %v4465_v2 = vadd.f32 %v2558_v36, %v2557_v25  ;;  %v2484_v17 = vsel %vm4775_vm5, %v2264_v37, 0.0  ;;  %v1776_v33 = vpop.permute.xlu1 %1775  ;;  %vm4785_vm5 = vmmov %vm4706_vm0 }
 0x433   :  { %v2485_v57 = vadd.f32 %v2484_v17, %v2483_v24  ;;  %v2219_v27 = vmul.f32 %v2914_v6, %v1776_v33  ;;  %v1705_v50 = vpop.permute.xlu0 %1704  ;;  %v2924_v33 = vld [vmem:[#allocation11 + $0xf0] sm:$0xff] }
 0x434   :  { %v2202_v3 = vmul.f32 %v2915_v35, %v1705_v50 }
 0x435   :  { %v2379_v61 = vsel %vm4776_vm6, %v2219_v27, 0.0  ;;  %v2925_v27 = vld [vmem:[#allocation11 + $0x168] sm:$0xff]  ;;  %vm4786_vm6 = vmmov %vm4706_vm0 }
 0x436   :  { %v4469_v4 = vadd.f32 %v2379_v61, %v2378_v48  ;;  %v2340_v23 = vsel %vm4706_vm0, %v2202_v3, 0.0  ;;  %v2036_v43 = vpop.permute.xlu1 %2035  ;;  %v2926_v61 = vld [vmem:[#allocation11 + $0xf8] sm:$0xff] }
 0x437   :  { %v2341_v29 = vadd.f32 %v2340_v23, %v2339_v30  ;;  %v2281_v51 = vmul.f32 %v2916_v31, %v2036_v43  ;;  %v1902_v25 = vpop.permute.xlu0 %1901  ;;  %v2927_v43 = vld [vmem:[#allocation11 + $0x170] sm:$0xff] }
 0x438   :  { %v2249_v12 = vmul.f32 %v2917_v18, %v1902_v25 }
 0x439   :  { %v2523_v24 = vsel %vm4777_vm8, %v2281_v51, 0.0  ;;  %vm4787_vm8 = vmmov %vm4706_vm0 }
 0x43a   :  { %v4473_v47 = vadd.f32 %v2523_v24, %v2522_v32  ;;  %v2449_v53 = vsel %vm4778_vm9, %v2249_v12, 0.0  ;;  %v1843_v54 = vpop.permute.xlu1 %1842  ;;  %vm4788_vm9 = vmmov %vm4706_vm0 }
 0x43b   :  { %v2450_v34 = vadd.f32 %v2449_v53, %v2448_v22  ;;  %v2235_v13 = vmul.f32 %v2918_v10, %v1843_v54  ;;  %v2162_v48 = vpop.permute.xlu0 %2161 }
 0x43c   :  { %v2311_v0 = vmul.f32 %v2919_v9, %v2162_v48  ;;  %v2928_v48 = vld [vmem:[#allocation11 + $0x178] sm:$0xff] }
 0x43d   :  { %v2416_v30 = vsel %vm4779_vm10, %v2235_v13, 0.0  ;;  %vm4789_vm10 = vmmov %vm4706_vm0 }
 0x43e   :  { %v2417_v44 = vadd.f32 %v2416_v30, %v2415_v52  ;;  %v2593_v60 = vsel %vm4780_vm11, %v2311_v0, 0.0  ;;  %v4478_v8 = vpop.permute.xlu1 %2102  ;;  %v2929_v30 = vld [vmem:[#allocation11 + $0x68] sm:$0xff]  ;;  %vm4790_vm11 = vmmov %vm4706_vm0 }
 0x43f   :  { %v4480_v46 = vadd.f32 %v2593_v60, %v2592_v63  ;;  %v1969_v7 = vpop.permute.xlu0 %1968 }
 0x440   :  { %v2265_v49 = vmul.f32 %v2920_v41, %v1969_v7  ;;  %v2930_v41 = vld [vmem:[#allocation11 + $0x70] sm:$0xff] }
 0x442   :  { %v2486_v40 = vsel %vm4781_vm12, %v2265_v49, 0.0  ;;  %v1780_v32 = vpop.permute.xlu1 %1779  ;;  %vm4791_vm12 = vmmov %vm4706_vm0 }
 0x443   :  { %v4483_v15 = vadd.f32 %v2486_v40, %v2485_v57  ;;  %v1709_v19 = vpop.permute.xlu0 %1708  ;;  %v2220_v17 = vmul.f32 %v2923_v59, %v1780_v32  ;;  %v2933_v59 = vld [vmem:[#allocation11 + $0x2e8] sm:$0xff] }
 0x444   :  { %v2203_v22 = vmul.f32 %v2921_v55, %v1709_v19  ;;  %v2931_v19 = vld [vmem:[#allocation11 + $0x2d8] sm:$0xff] }
 0x445   :  { %v2381_v3 = vsel %vm4784_vm15, %v2220_v17, 0.0  ;;  %vm4794_vm15 = vmmov %vm4706_vm0 }
 0x446   :  { %v2342_v11 = vsel %vm4782_vm13, %v2203_v22, 0.0  ;;  %v2040_v28 = vpop.permute.xlu1 %2039  ;;  %v2382_v25 = vadd.f32 %v2381_v3, %v4469_v4  ;;  %vm4792_vm13 = vmmov %vm4706_vm0 }
 0x447   :  { %v4486_v42 = vadd.f32 %v2342_v11, %v2341_v29  ;;  %v1906_v38 = vpop.permute.xlu0 %1905  ;;  %v2282_v55 = vmul.f32 %v2931_v19, %v2040_v28  ;;  %v2934_v28 = vld [vmem:[#allocation11 + $0x78] sm:$0xff] }
 0x448   :  { %v2250_v5 = vmul.f32 %v2922_v14, %v1906_v38  ;;  %v2932_v14 = vld [vmem:[#allocation11 + $0x2e0] sm:$0xff]  ;;  %v2942_v19 = vld [vmem:[#allocation11 + $0x2f8] sm:$0xff] }
 0x44a   :  { %v2451_v20 = vsel %vm4783_vm14, %v2250_v5, 0.0  ;;  %v1847_v56 = vpop.permute.xlu1 %1846  ;;  %vm4793_vm14 = vmmov %vm4706_vm0 }
 0x44b   :  { %v4489_v62 = vadd.f32 %v2451_v20, %v2450_v34  ;;  %v4491_v52 = vpop.permute.xlu0 %2165  ;;  %v2236_v50 = vmul.f32 %v2925_v27, %v1847_v56 }
 0x44d   :  { %v2418_v18 = vsel %vm4786_vm6, %v2236_v50, 0.0  ;;  %vm4796_vm6 = vmmov %vm4706_vm0 }
 0x44e   :  { %v4493_v1 = vpop.permute.xlu1 %2106  ;;  %v2419_v34 = vadd.f32 %v2418_v18, %v2417_v44 }
 0x44f   :  { %v4495_v26 = vpop.permute.xlu0 %1972 }
 0x452   :  { %v1784_v45 = vpop.permute.xlu1 %1783 }
 0x453   :  { %v1713_v63 = vpop.permute.xlu0 %1712  ;;  %v2221_v57 = vmul.f32 %v2924_v33, %v1784_v45  ;;  %v2525_v45 = vsel %vm4791_vm12, %v2282_v55, 0.0  ;;  %vm4801_vm12 = vmmov %vm4706_vm0 }
 0x454   :  { %v2204_v60 = vmul.f32 %v2929_v30, %v1713_v63 }
 0x455   :  { %v2383_v31 = vsel %vm4785_vm5, %v2221_v57, 0.0  ;;  %vm4795_vm5 = vmmov %vm4706_vm0 }
 0x456   :  { %v2044_v16 = vpop.permute.xlu1 %2043  ;;  %v2384_v53 = vadd.f32 %v2383_v31, %v2382_v25  ;;  %v2344_v11 = vsel %vm4789_vm10, %v2204_v60, 0.0  ;;  %v2940_v60 = vld [vmem:[#allocation11 + $0x268] sm:$0xff]  ;;  %vm4799_vm10 = vmmov %vm4706_vm0 }
 0x457   :  { %v4497_v21 = vpop.permute.xlu0 %1909  ;;  %v2283_v5 = vmul.f32 %v2932_v14, %v2044_v16  ;;  %v2345_v63 = vadd.f32 %v2344_v11, %v4486_v42  ;;  %v2526_v16 = vadd.f32 %v2525_v45, %v4473_v47  ;;  %v2943_v11 = vld [vmem:[#allocation11 + $0x1e8] sm:$0xff] }
 0x459   :  { %v2527_v27 = vsel %vm4792_vm13, %v2283_v5, 0.0  ;;  %vm4802_vm13 = vmmov %vm4706_vm0 }
 0x45a   :  { %v1851_v39 = vpop.permute.xlu1 %1850  ;;  %v2528_v18 = vadd.f32 %v2527_v27, %v2526_v16 }
 0x45b   :  { %v4499_v58 = vpop.permute.xlu0 %2169  ;;  %v2237_v29 = vmul.f32 %v2927_v43, %v1851_v39 }
 0x45d   :  { %v2420_v54 = vsel %vm4787_vm8, %v2237_v29, 0.0  ;;  %vm4797_vm8 = vmmov %vm4706_vm0 }
 0x45e   :  { %v4501_v37 = vpop.permute.xlu1 %2110  ;;  %v2421_v7 = vadd.f32 %v2420_v54, %v2419_v34  ;;  %v2938_v34 = vld [vmem:[#allocation11 + $0x350] sm:$0xff] }
 0x45f   :  { %v4503_v36 = vpop.permute.xlu0 %1976 }
 0x462   :  { %v1788_v6 = vpop.permute.xlu1 %1787 }
 0x463   :  { %v1717_v35 = vpop.permute.xlu0 %1716  ;;  %v2222_v23 = vmul.f32 %v2926_v61, %v1788_v6  ;;  %v2936_v61 = vld [vmem:[#allocation11 + $0x258] sm:$0xff] }
 0x464   :  { %v2205_v49 = vmul.f32 %v2930_v41, %v1717_v35  ;;  %v2935_v35 = vld [vmem:[#allocation11 + $0x2f0] sm:$0xff]  ;;  %v2941_v41 = vld [vmem:[#allocation11 + $0x3c8] sm:$0xff] }
 0x465   :  { %v2385_v24 = vsel %vm4706_vm0, %v2222_v23, 0.0  ;;  %v2266_v23 = vmul.f32 %v2936_v61, %v4495_v26 }
 0x466   :  { %v2048_v51 = vpop.permute.xlu1 %2047  ;;  %v2386_v13 = vadd.f32 %v2385_v24, %v2384_v53  ;;  %v2346_v20 = vsel %vm4790_vm11, %v2205_v49, 0.0  ;;  %v2937_v24 = vld [vmem:[#allocation11 + $0x260] sm:$0xff]  ;;  %v2312_v49 = vmul.f32 %v2941_v41, %v4491_v52  ;;  %vm4800_vm11 = vmmov %vm4706_vm0 }
 0x467   :  { %v4509_v12 = vpop.permute.xlu0 %1913  ;;  %v2284_v17 = vmul.f32 %v2933_v59, %v2048_v51  ;;  %v2347_v50 = vadd.f32 %v2346_v20, %v2345_v63  ;;  %v2267_v53 = vmul.f32 %v2937_v24, %v4503_v36  ;;  %v2488_v26 = vsel %vm4796_vm6, %v2266_v23, 0.0  ;;  %v2944_v63 = vld [vmem:[#allocation11 + $0x1f0] sm:$0xff] }
 0x468   :  { %v2387_v22 = vrot.slane %v2386_v13, 4  ;;  %vm4806_vm6 = vcmask 1041409  }
 0x469   :  { %v2529_v31 = vsel %vm4794_vm15, %v2284_v17, 0.0  ;;  %v2595_v17 = vsel %vm4801_vm12, %v2312_v49, 0.0  ;;  %vm4804_vm15 = vmmov %vm4706_vm0 }
 0x46a   :  { %v1855_v10 = vpop.permute.xlu1 %1854  ;;  %v2388_v39 = vadd.f32 %v2387_v22, %v2386_v13  ;;  %v2530_v30 = vadd.f32 %v2529_v31, %v2528_v18  ;;  %v2490_v22 = vsel %vm4706_vm0, %v2267_v53, 0.0  ;;  %vm4811_vm12 = vmmov %vm4706_vm0 }
 0x46b   :  { %v2238_v9 = vmul.f32 %v2928_v48, %v1855_v10  ;;  %v4513_v0 = vpop.permute.xlu0 %2173  ;;  %v2297_v10 = vmul.f32 %v2938_v34, %v4478_v8  ;;  %v2939_v48 = vld [vmem:[#allocation11 + $0x1e0] sm:$0xff] }
 0x46c   :  { %v2389_v29 = vrot.slane %v2388_v39, 2 }
 0x46d   :  { %v2422_v4 = vsel %vm4788_vm9, %v2238_v9, 0.0  ;;  %v2251_v9 = vmul.f32 %v2939_v48, %v4497_v21  ;;  %v2560_v5 = vsel %vm4797_vm8, %v2297_v10, 0.0  ;;  %vm4798_vm9 = vmmov %vm4706_vm0  ;;  %v2950_v48 = vld [vmem:[#allocation11 + $0x1f8] sm:$0xff]  ;;  %vm4807_vm8 = vcmask 1042434  }
 0x46e   :  { %v2423_v40 = vadd.f32 %v2422_v4, %v2421_v7  ;;  %v4516_v32 = vpop.permute.xlu1 %2114  ;;  %v2390_v36 = vadd.f32 %v2389_v29, %v2388_v39  ;;  %v2947_v29 = vld [vmem:[#allocation11 + $0x358] sm:$0xff] }
 0x46f   :  { %v1981_v44 = vpop.permute.xlu0 %1980  ;;  %v2298_v31 = vmul.f32 %v2947_v29, %v4493_v1 }
 0x470   :  { %v2424_v38 = vrot.slane %v2423_v40, 4  ;;  %v2268_v7 = vmul.f32 %v2940_v60, %v1981_v44  ;;  %v2489_v44 = vadd.f32 %v2488_v26, %v4483_v15  ;;  %v2945_v15 = vld [vmem:[#allocation11 + $0x278] sm:$0xff] }
 0x472   :  { %v2052_v56 = vpop.permute.xlu1 %2051  ;;  %v2425_v57 = vadd.f32 %v2424_v38, %v2423_v40  ;;  %v2252_v38 = vmul.f32 %v2943_v11, %v4509_v12  ;;  %v2492_v45 = vsel %vm4800_vm11, %v2268_v7, 0.0  ;;  %v2391_v12 = vrot.slane %v2390_v36, 1  ;;  %vm4810_vm11 = vmmov %vm4706_vm0 }
 0x473   :  { %v1721_v33 = vpop.permute.xlu0 %1720  ;;  %v2285_v3 = vmul.f32 %v2935_v35, %v2052_v56  ;;  %v2453_v56 = vsel %vm4799_vm10, %v2251_v9, 0.0  ;;  %v2946_v35 = vld [vmem:[#allocation11 + $0x270] sm:$0xff]  ;;  %v2562_v7 = vsel %vm4706_vm0, %v2298_v31, 0.0  ;;  %vm4809_vm10 = vmmov %vm4706_vm0 }
 0x474   :  { %v2206_v6 = vmul.f32 %v2934_v28, %v1721_v33  ;;  %v2426_v54 = vrot.slane %v2425_v57, 2  ;;  %v2491_v33 = vadd.f32 %v2490_v22, %v2489_v44  ;;  %v2454_v16 = vadd.f32 %v2453_v56, %v4489_v62 }
 0x475   :  { %v2531_v47 = vsel %vm4795_vm5, %v2285_v3, 0.0  ;;  %v2392_v53 = vadd.f32 %v2391_v12, %v2390_v36  ;;  %vm4805_vm5 = vmmov %vm4706_vm0  ;;  %v2561_v36 = vadd.f32 %v2560_v5, %v4465_v2  ;;  %v2596_v22 = vadd.f32 %v2595_v17, %v4480_v46  ;;  %v2953_v2 = vld [vmem:[#allocation11 + $0x3e0] sm:$0xff]  ;;  %v2954_v12 = vld [vmem:[#allocation11 + $0x378] sm:$0xff] }
 0x476   :  { %v2348_v43 = vsel %vm4793_vm14, %v2206_v6, 0.0  ;;  %v1989_v42 = vpop.permute.xlu1 %1988  ;;  %v2427_v14 = vadd.f32 %v2426_v54, %v2425_v57  ;;  %v2532_v21 = vadd.f32 %v2531_v47, %v2530_v30  ;;  %v2455_v6 = vsel %vm4802_vm13, %v2252_v38, 0.0  ;;  %vm4803_vm14 = vmmov %vm4706_vm0  ;;  %v2949_v47 = vld [vmem:[#allocation11 + $0x360] sm:$0xff] }
 0x477   :  { %v2349_v51 = vadd.f32 %v2348_v43, %v2347_v50  ;;  %v1918_v25 = vpop.permute.xlu0 %1917  ;;  %v2270_v50 = vmul.f32 %v2945_v15, %v1989_v42  ;;  %v2493_v61 = vadd.f32 %v2492_v45, %v2491_v33  ;;  %v2456_v54 = vadd.f32 %v2455_v6, %v2454_v16  ;;  %vm4812_vm13 = vmmov %vm4706_vm0  ;;  %v2956_v6 = vld [vmem:[#allocation11 + $0x370] sm:$0xff] }
 0x478   :  { %v2253_v39 = vmul.f32 %v2944_v63, %v1918_v25  ;;  %v2428_v27 = vrot.slane %v2427_v14, 1  ;;  %v2299_v62 = vmul.f32 %v2949_v47, %v4501_v37 }
 0x479   :  { %v2350_v13 = vrot.slane %v2349_v51, 4  ;;  %v2496_v26 = vsel %vm4805_vm5, %v2270_v50, 0.0  ;;  %vm4815_vm5 = vmmov %vm4706_vm0 }
 0x47a   :  { %v2056_v4 = vpop.permute.xlu1 %2055  ;;  %v2457_v18 = vsel %vm4803_vm14, %v2253_v39, 0.0  ;;  %v2564_v38 = vsel %vm4810_vm11, %v2299_v62, 0.0  ;;  %vm4813_vm14 = vmmov %vm4706_vm0 }
 0x47b   :  { %v2351_v40 = vadd.f32 %v2350_v13, %v2349_v51  ;;  %v2286_v55 = vmul.f32 %v2942_v19, %v2056_v4  ;;  %v4533_v8 = vpop.permute.xlu0 %2177  ;;  %v2948_v51 = vld [vmem:[#allocation11 + $0x3d0] sm:$0xff]  ;;  %v2429_v13 = vadd.f32 %v2428_v27, %v2427_v14  ;;  %v2951_v4 = vld [vmem:[#allocation11 + $0x368] sm:$0xff]  ;;  %v2952_v14 = vld [vmem:[#allocation11 + $0x3d8] sm:$0xff] }
 0x47c   :  { %v2313_v25 = vmul.f32 %v2948_v51, %v4499_v58  ;;  %v2458_v58 = vadd.f32 %v2457_v18, %v2456_v54  ;;  %v2300_v41 = vmul.f32 %v2951_v4, %v4516_v32  ;;  %v2563_v32 = vadd.f32 %v2562_v7, %v2561_v36 }
 0x47d   :  { %v2352_v20 = vrot.slane %v2351_v40, 2  ;;  %v2533_v52 = vsel %vm4798_vm9, %v2286_v55, 0.0  ;;  %vm4808_vm9 = vmmov %vm4706_vm0  ;;  %v2315_v5 = vmul.f32 %v2953_v2, %v4533_v8 }
 0x47e   :  { %v2534_v59 = vadd.f32 %v2533_v52, %v2532_v21  ;;  %v2597_v11 = vsel %vm4809_vm10, %v2313_v25, 0.0  ;;  %v2314_v21 = vmul.f32 %v2952_v14, %v4513_v0  ;;  %v2566_v45 = vsel %vm4811_vm12, %v2300_v41, 0.0  ;;  %v2955_v0 = vld [vmem:[#allocation11 + $0x3e8] sm:$0xff] }
 0x47f   :  { %v2353_v57 = vadd.f32 %v2352_v20, %v2351_v40  ;;  %v1985_v28 = vpop.permute.xlu0 %1984  ;;  %v2123_v20 = vpop.permute.xlu1 %2122  ;;  %v2598_v63 = vadd.f32 %v2597_v11, %v2596_v22  ;;  %v2565_v39 = vadd.f32 %v2564_v38, %v2563_v32  ;;  %v2601_v16 = vsel %vm4813_vm14, %v2315_v5, 0.0 }
 0x480   :  { %v2269_v3 = vmul.f32 %v2946_v35, %v1985_v28  ;;  %v2535_v43 = vrot.slane %v2534_v59, 4  ;;  %v2599_v33 = vsel %vm4812_vm13, %v2314_v21, 0.0 }
 0x481   :  { %v2354_v23 = vrot.slane %v2353_v57, 1  ;;  %v2567_v15 = vadd.f32 %v2566_v45, %v2565_v39 }
 0x482   :  { %v2494_v24 = vsel %vm4804_vm15, %v2269_v3, 0.0  ;;  %v2536_v30 = vadd.f32 %v2535_v43, %v2534_v59  ;;  %vm4814_vm15 = vmmov %vm4706_vm0 }
 0x483   :  { %v2355_v42 = vadd.f32 %v2354_v23, %v2353_v57  ;;  %v2495_v34 = vadd.f32 %v2494_v24, %v2493_v61  ;;  %v1922_v10 = vpop.permute.xlu0 %1921  ;;  %v2302_v57 = vmul.f32 %v2954_v12, %v2123_v20  ;;  %v2600_v61 = vadd.f32 %v2599_v33, %v2598_v63  ;;  %v2957_v24 = vld [vmem:[#allocation11 + $0x3f0] sm:$0xff] }
 0x484   :  { %v2254_v1 = vmul.f32 %v2950_v48, %v1922_v10  ;;  %v2537_v44 = vrot.slane %v2536_v30, 2 }
 0x485   :  { %v2623_v9 = vsel %vm4806_vm6, %v2392_v53, %v2355_v42  ;;  %v2497_v60 = vadd.f32 %v2496_v26, %v2495_v34  ;;  %v2570_v51 = vsel %vm4815_vm5, %v2302_v57, 0.0  ;;  %vm4816_vm6 = vmmov %vm4706_vm0  ;;  %v2602_v42 = vadd.f32 %v2601_v16, %v2600_v61 }
 0x486   :  { %v4555_v49 = vsel %vm4807_vm8, %v2429_v13, %v2623_v9  ;;  %v2459_v37 = vsel %vm4808_vm9, %v2254_v1, 0.0  ;;  %v2538_v50 = vadd.f32 %v2537_v44, %v2536_v30  ;;  %v2654_v1 = vld [vmem:[#allocation15] sm:$0xff]  ;;  %v2958_v30 = vld [vmem:[#allocation11 + $0x3f8] sm:$0xff]  ;;  %vm4817_vm8 = vmmov %vm4706_vm0 }
 0x487   :  { %v2498_v40 = vrot.slane %v2497_v60, 4  ;;  %v2460_v19 = vadd.f32 %v2459_v37, %v2458_v58  ;;  %v2182_v55 = vpop.permute.xlu0 %2181 }
 0x488   :  { %v2316_v28 = vmul.f32 %v2955_v0, %v2182_v55  ;;  %v2539_v54 = vrot.slane %v2538_v50, 1 }
 0x489   :  { %v2499_v52 = vadd.f32 %v2498_v40, %v2497_v60  ;;  %v2461_v56 = vrot.slane %v2460_v19, 4 }
 0x48a   :  { %v2603_v18 = vsel %vm4816_vm6, %v2316_v28, 0.0  ;;  %v2540_v4 = vadd.f32 %v2539_v54, %v2538_v50 }
 0x48b   :  { %v2500_v46 = vrot.slane %v2499_v52, 2  ;;  %v2462_v59 = vadd.f32 %v2461_v56, %v2460_v19  ;;  %v2119_v17 = vpop.permute.xlu0 %2118  ;;  %v2604_v13 = vadd.f32 %v2603_v18, %v2602_v42  ;;  %v1648_v56 = vld [vmem:[#allocation4] sm:$0xff] }
 0x48c   :  { %v2301_v27 = vmul.f32 %v2956_v6, %v2119_v17 }
 0x48d   :  { %v2501_v35 = vadd.f32 %v2500_v46, %v2499_v52  ;;  %v2463_v3 = vrot.slane %v2462_v59, 2 }
 0x48e   :  { %v2568_v8 = vsel %vm4814_vm15, %v2301_v27, 0.0 }
 0x48f   :  { %v2464_v23 = vadd.f32 %v2463_v3, %v2462_v59  ;;  %v2569_v43 = vadd.f32 %v2568_v8, %v2567_v15  ;;  %v2186_v29 = vpop.permute.xlu0 %2185  ;;  %v1652_v31 = vpop.permute.xlu1 %1651  ;;  %v2502_v25 = vrot.slane %v2501_v35, 1 }
 0x490   :  { %v2317_v53 = vmul.f32 %v2957_v24, %v2186_v29  ;;  %v1654_v5 = vmul.f32 %v1652_v31, %v1648_v56 }
 0x491   :  { %v2465_v34 = vrot.slane %v2464_v23, 1  ;;  %v2571_v10 = vadd.f32 %v2570_v51, %v2569_v43  ;;  %v2503_v58 = vadd.f32 %v2502_v25, %v2501_v35 }
 0x492   :  { %v2605_v47 = vsel %vm4706_vm0, %v2317_v53, 0.0 }
 0x493   :  { %v2466_v62 = vadd.f32 %v2465_v34, %v2464_v23  ;;  %v2572_v26 = vrot.slane %v2571_v10, 4  ;;  %v2190_v48 = vpop.permute.xlu0 %2189  ;;  %v2658_v9 = vpop.permute.xlu1 %2657  ;;  %v2606_v36 = vadd.f32 %v2605_v47, %v2604_v13 }
 0x494   :  { %v2318_v60 = vmul.f32 %v2958_v30, %v2190_v48  ;;  %v2660_v7 = vmul.f32 %v2658_v9, %v2654_v1 }
 0x495   :  { %v2625_v41 = vsel %vm1614_vm7, %v2466_v62, %v4555_v49  ;;  %v2573_v37 = vadd.f32 %v2572_v26, %v2571_v10  ;;  %vm4818_vm7 = vmmov %vm4706_vm0 }
 0x496   :  { %v2626_v40 = vsel %vm1616_vm1, %v2503_v58, %v2625_v41  ;;  %v2607_v19 = vsel %vm4817_vm8, %v2318_v60, 0.0  ;;  %2661 = vst [vmem:[#allocation15] sm:$0xff] %v2660_v7  ;;  %vm4819_vm1 = vmmov %vm4706_vm0 }
 0x497   :  { %v2627_v55 = vsel %vm1618_vm2, %v2540_v4, %v2626_v40  ;;  %v2574_v22 = vrot.slane %v2573_v37, 2  ;;  %v2608_v11 = vadd.f32 %v2607_v19, %v2606_v36 }
 0x499   :  { %v2575_v38 = vadd.f32 %v2574_v22, %v2573_v37  ;;  %v2609_v14 = vrot.slane %v2608_v11, 4 }
 0x49b   :  { %v2576_v21 = vrot.slane %v2575_v38, 1  ;;  %v2610_v32 = vadd.f32 %v2609_v14, %v2608_v11  ;;  %v2666_v59 = vpop.permute.xlu0 %2665 }
 0x49d   :  { %v2577_v44 = vadd.f32 %v2576_v21, %v2575_v38  ;;  %v2611_v20 = vrot.slane %v2610_v32, 2 }
 0x49f   :  { %v2628_v52 = vsel %vm1620_vm3, %v2577_v44, %v2627_v55  ;;  %v2612_v49 = vadd.f32 %v2611_v20, %v2610_v32 }
 0x4a1   :  { %v2613_v45 = vrot.slane %v2612_v49, 1 }
 0x4a3   :  { %v2614_v2 = vadd.f32 %v2613_v45, %v2612_v49 }
 0x4a5   :  { %v2629_v63 = vsel %vm1622_vm4, %v2614_v2, %v2628_v52 }
 0x4a6   :  { %v2631_v39 = vadd.f32 %v2629_v63, %v1654_v5 }
 0x4a8   :  { %2632 = vst.msk [vmem:[#allocation4] sm:$0xff] %vm4818_vm7, %v2631_v39 }
 0x4af   :  { %v2662_v46 = vld [vmem:[#allocation4] sm:$0xff] }
 0x4b0   :  { %v2668_v17 = vmul.f32 %v2666_v59, %v2662_v46 }
 0x4b2   :  { %2796 = vmatmul.mubr.msk.f32.vlgmr.msra.gmra.mrb[0].mxu0 %vm4819_vm1, %v2668_v17 }
 0x4b3   :  { %3058 = shalt.err (!%p3055_p8)
}
 0x4b4   :  { %s3059_s18 = scalar_lea.hbm %s4610_s5, 128 }
 0x4b5   :  { %p3060_p9 = scmp.ne.s32.totalorder %s4610_s5, %s3059_s18  ;;  %p3063_p10 = scmp.lt.u32.totalorder %s3059_s18, %s4610_s5 }
 0x4b7   :  { %p3065_p11 = pnand %p3063_p10, %p3060_p9 }
 0x4b9   :  { %3068 = shalt.err (!%p3065_p11)
}
 0x4ba   :  { %2768 = dma.vmem_to_hbm [thread:$0]  %s2766_s1, 128, %s4610_s5, [#allocation16]   ;;  %v2673_v33 = vld [vmem:[#allocation9] sm:$0xff]  ;;  %vm4820_vm2 = vmmov %vm4706_vm0 }
 0x4bb   :  { %s3114_s26 = smov [#allocation14]  }
 0x4bc   :  { %s2755_s0 = sshll.u32 %s3114_s26, 4  ;;  %s2756_s0 = int_to_ptr.vmem [resolvable:$true] %s2755_s0 }
 0x4bd   :  { %s3069_s21 = scalar_lea.vmem %s2756_s0, 128  ;;  %p3074_p13 = scmp.lt.s32.totalorder %s2756_s0, %s2756_s0 }
 0x4be   :  { %p3070_p12 = scmp.ne.s32.totalorder %s2756_s0, %s3069_s21  ;;  %p3075_p0 = scmp.lt.s32.totalorder %s3069_s21, %s3069_s21 }
 0x4c0   :  { %p3076_p1 = por %p3075_p0, %p3074_p13 }
 0x4c2   :  { %p3077_p2 = pnand %p3076_p1, %p3070_p12 }
 0x585   :  { %v2743_v12 = vpop.f32.mrb[0].mxu0 }
 0x586   :  { %v2744_v57 = vadd.f32 %v2743_v12, %v2673_v33  ;;  %v2797_v0 = vpop.f32.mrb[1].mxu0 }
 0x588   :  { %2829 = vtanh.f32 %v2744_v57 }
 0x592   :  { %v2830_v28 = vpop.eup %2829 }
 0x593   :  { %2748 = vst.msk [vmem:[#allocation14] sm:$0xff] %vm4820_vm2, %v2830_v28 }
 0x594   :  { %3080 = shalt.err (!%p3077_p2)
}
 0x595   :  { %s3081_s28 = scalar_lea.hbm %s4609_s4, 128 }
 0x596   :  { %p3082_p3 = scmp.ne.s32.totalorder %s4609_s4, %s3081_s28  ;;  %p3085_p4 = scmp.lt.u32.totalorder %s3081_s28, %s4609_s4 }
 0x598   :  { %p3087_p5 = pnand %p3085_p4, %p3082_p3 }
 0x59a   :  { %3090 = shalt.err (!%p3087_p5)
}
 0x59b   :  { %2758 = dma.vmem_to_hbm [thread:$0]  %s2756_s0, 128, %s4609_s4, [#allocation8]  }
 0x59c   :  { %3097 = dma.done.wait [#allocation8], 128  }
 0x59d   :  { %3098 = vsyncadd [#allocation8], 4294967168 }
 0x59e   :  { %3099 = dma.done.wait [#allocation16], 128  }
 0x59f   :  { %3100 = vsyncadd [#allocation16], 4294967168 }
 0x5a0   :  { %2775 = vsyncpa [#allocation7], 1 }
 0x5a1   :  { %2776 = vsyncpa [#allocation10], 1 }
 0x5a2   :  { %2777 = vsyncpa [#allocation13], 1 }
 0x5a3   :  { %2778 = vsyncpa [#allocation8], 1 }
 0x5a4   :  { %2779 = vsyncpa [#allocation16], 1 }

</bundles_post_ra>
